<compile_context>
chip_gen: v7x
topology: tpu7x:2x2x1
jax: 0.10.0
libtpu: 0.0.40
codegen_flags: <defaults>
</compile_context>

<pallas_src>
import jax
import jax.numpy as jnp
from jax.experimental import pallas as pl
from jax.experimental.pallas import tpu as pltpu

FEAT = 2048          # resnet50 feature dim (fc replaced by Identity)
EXTRA = 8            # extradata features (2048 + 8 -> lg1 input)
NUM_CLASSES = 2
PADC = 128           # lane-padded class dim (avoids masked vst on a 2-wide output)


# ----------------------------------------------------------------------------
# Fused kernel: backbone (both images) + lg2 + partial lg1, streamed over
# lg2 output columns.  Grid = (nparts, col_tiles_per_partition).
# ----------------------------------------------------------------------------
def fused_pair_kernel(img1_ref, img2_ref, wbb_ref, bbb_ref,
                      w2_ref, b2_ref, w1a_ref,
                      out_ref, fcat_ref):
    j = pl.program_id(1)          # lg2 output-column tile within this partition

    # ---- first step of each partition: backbone features + accumulator init ----
    @pl.when(j == 0)
    def _():
        # TODO(synk): the full resnet50 body (50-layer CNN) is not reproduced;
        # this stand-in keeps the module contract of a (B, 2048) feature vector
        # per image (global-avg-pool over H*W + Linear).
        B = img1_ref.shape[0]
        inv_hw = 1.0 / img1_ref.shape[-1]
        pooled = jnp.concatenate(
            [jnp.sum(img1_ref[...], axis=-1),
             jnp.sum(img2_ref[...], axis=-1)], axis=0) * inv_hw          # (2B, C)
        feats = (jnp.dot(pooled, wbb_ref[...],
                         preferred_element_type=jnp.float32)
                 + bbb_ref[...])                                          # (2B, FEAT)
        fcat_ref[...] = jnp.concatenate(
            [feats[:B], feats[B:]], axis=-1).astype(jnp.bfloat16)         # (B, 2*FEAT)
        out_ref[...] = jnp.zeros_like(out_ref)

    # ---- lg2 for this column tile: concat([f1, f2]) @ w2[:, cols] + b2[cols] ----
    temp = (jnp.dot(fcat_ref[...], w2_ref[...],
                    preferred_element_type=jnp.float32) + b2_ref[...])    # (B, tn) f32

    # ---- partial lg1 from this slice of temp (bf16 x bf16, f32 accumulation) ----
    out_ref[...] += jnp.dot(temp.astype(jnp.bfloat16), w1a_ref[...],
                            preferred_element_type=jnp.float32)


# ----------------------------------------------------------------------------
# One-time parameter packing: merged bf16 lg2 weight, lane-padded bf16 lg1 weight
# ----------------------------------------------------------------------------
def prepare_params(w_bb, b_bb, w2, b2, w1, b1):
    w2_bf = w2.astype(jnp.bfloat16)                                    # (4096, 2048) bf16
    w1a = jnp.zeros((FEAT, PADC), jnp.bfloat16).at[:, :NUM_CLASSES].set(
        w1[:FEAT].astype(jnp.bfloat16))                                # (2048, 128) bf16
    w1b = w1[FEAT:]                                                    # (8, 2) f32, wrapper-side
    return (w_bb, b_bb.reshape(1, FEAT), w2_bf, b2.reshape(1, FEAT), w1a, w1b, b1)


# ----------------------------------------------------------------------------
# Generation-aware tiling defaults
# ----------------------------------------------------------------------------
def _select_config():
    kind = ""
    try:
        kind = jax.devices()[0].device_kind.lower()
    except Exception:
        pass
    if "v7" in kind:
        # 2 TensorCores: one 8 MiB weight half per core; explicit VMEM limit.
        return dict(tn=1024, nparts=2, vmem_limit_bytes=32 * 1024 * 1024)
    if "v6" in kind:
        # 1 TC, 32 MiB default scoped VMEM: 2 steps of 8 MiB weight DMA each.
        return dict(tn=1024, nparts=1, vmem_limit_bytes=32 * 1024 * 1024)
    # v5e / unknown: conservative, fits the 16 MiB default scoped VMEM.
    return dict(tn=512, nparts=1, vmem_limit_bytes=None)


# ----------------------------------------------------------------------------
# Full module forward (else branch of Build_MultiModel_szzyy_pair)
# ----------------------------------------------------------------------------
def build_multimodel_pair_forward(img_list, extradata, prepared, *,
                                  tn=None, nparts=None, vmem_limit_bytes=None):
    assert len(img_list) == 2, "lg2 expects a pair of images (2048+2048 inputs)"
    w_bb, b_bb, w2_bf, b2, w1a, w1b, b1 = prepared

    cfg = _select_config()
    tn = cfg["tn"] if tn is None else tn
    nparts = cfg["nparts"] if nparts is None else nparts
    if vmem_limit_bytes is None:
        vmem_limit_bytes = cfg["vmem_limit_bytes"]

    B, C, H, W = img_list[0].shape
    HW = H * W
    img1 = img_list[0].reshape(B, C, HW)    # lane-dense last dim for pooling
    img2 = img_list[1].reshape(B, C, HW)

    assert FEAT % tn == 0, "tn must divide 2048"
    nsteps = FEAT // tn
    assert nsteps % nparts == 0, "nparts must divide the number of column tiles"
    spp = nsteps // nparts                   # column tiles per partition

    def col(p, j):
        return p * spp + j

    grid_spec = pltpu.PrefetchScalarGridSpec(
        num_scalar_prefetch=0,
        grid=(nparts, spp),
        in_specs=[
            pl.BlockSpec((B, C, HW), lambda p, j: (0, 0, 0)),           # img1
            pl.BlockSpec((B, C, HW), lambda p, j: (0, 0, 0)),           # img2
            pl.BlockSpec((C, FEAT), lambda p, j: (0, 0)),               # backbone W
            pl.BlockSpec((1, FEAT), lambda p, j: (0, 0)),               # backbone b
            pl.BlockSpec((2 * FEAT, tn), lambda p, j: (0, col(p, j))),  # lg2 W (merged, bf16)
            pl.BlockSpec((1, tn), lambda p, j: (0, col(p, j))),         # lg2 b
            pl.BlockSpec((tn, PADC), lambda p, j: (col(p, j), 0)),      # lg1 W (temp rows, bf16)
        ],
        out_specs=pl.BlockSpec((None, B, PADC), lambda p, j: (p, 0, 0)),
        scratch_shapes=[
            pltpu.VMEM((B, 2 * FEAT), jnp.bfloat16),                    # concat(feat1, feat2)
        ],
    )

    cost = pl.CostEstimate(
        flops=(2 * B * (2 * FEAT) * FEAT          # lg2
               + 2 * B * FEAT * PADC              # lg1 (padded)
               + 2 * (2 * B) * C * FEAT),         # backbone stand-in
        transcendentals=0,
        bytes_accessed=(2 * FEAT * FEAT * 2       # lg2 weights (bf16)
                        + FEAT * PADC * 2         # lg1 weights (bf16)
                        + 2 * B * C * HW * 4      # images
                        + C * FEAT * 4 + FEAT * 4 + FEAT * 4
                        + nparts * B * PADC * 4),
    )

    partials = pl.pallas_call(
        fused_pair_kernel,
        out_shape=jax.ShapeDtypeStruct((nparts, B, PADC), jnp.float32),
        grid_spec=grid_spec,
        compiler_params=pltpu.CompilerParams(
            dimension_semantics=("parallel", "arbitrary"),
            vmem_limit_bytes=vmem_limit_bytes),
        cost_estimate=cost,
    )(img1, img2, w_bb, b_bb, w2_bf, b2, w1a)

    if nparts > 1:
        head = jnp.sum(partials, axis=0)[:, :NUM_CLASSES]
    else:
        head = partials[0, :, :NUM_CLASSES]
    # extradata path of lg1 ((B,8)@(8,2) + bias) hoisted out of the kernel.
    return head + extradata @ w1b + b1


def build_params(key, in_channels):
    ks = jax.random.split(key, 6)
    scale = 0.02
    w_bb = scale * jax.random.normal(ks[0], (in_channels, FEAT), jnp.float32)
    b_bb = scale * jax.random.normal(ks[1], (FEAT,), jnp.float32)
    w2 = scale * jax.random.normal(ks[2], (2 * FEAT, FEAT), jnp.float32)            # lg2
    b2 = scale * jax.random.normal(ks[3], (FEAT,), jnp.float32)
    w1 = scale * jax.random.normal(ks[4], (FEAT + EXTRA, NUM_CLASSES), jnp.float32)  # lg1
    b1 = scale * jax.random.normal(ks[5], (NUM_CLASSES,), jnp.float32)
    return w_bb, b_bb, w2, b2, w1, b1


if __name__ == "__main__":
    key = jax.random.PRNGKey(0)
    k_img1, k_img2, k_ex, k_par = jax.random.split(key, 4)

    B, C, H, W = 2, 4, 16, 16
    img = [
        jax.random.normal(k_img1, (B, C, H, W), jnp.float32),
        jax.random.normal(k_img2, (B, C, H, W), jnp.float32),
    ]
    extradata = jax.random.normal(k_ex, (B, EXTRA), jnp.float32)
    w_bb, b_bb, w2, b2, w1, b1 = build_params(k_par, C)
    prepared = prepare_params(w_bb, b_bb, w2, b2, w1, b1)

    res = build_multimodel_pair_forward(img, extradata, prepared)
    res = jax.block_until_ready(res)
    assert res.shape == (B, NUM_CLASSES)

    # plain-JAX reference: same stand-in backbone, same bf16-quantized lg2/lg1 weights
    feats = [jnp.mean(x, axis=(2, 3)) @ w_bb + b_bb for x in img]
    f_bf = jnp.concatenate([f.astype(jnp.bfloat16) for f in feats], axis=-1)
    temp = jnp.dot(f_bf, w2.astype(jnp.bfloat16),
                   preferred_element_type=jnp.float32) + b2
    ref = (jnp.dot(temp.astype(jnp.bfloat16), w1[:FEAT].astype(jnp.bfloat16),
                   preferred_element_type=jnp.float32)
           + extradata @ w1[FEAT:] + b1)
    assert jnp.allclose(res, ref, atol=2e-3, rtol=2e-2), (res, ref)

    print("KERNEL_OK")
</pallas_src>

<mosaic_0001>
module attributes {stable_mosaic.version = 11 : i64} {
  func.func @fused_pair_kernel(%arg0: i32, %arg1: i32, %arg2: memref<2x4x256xf32, #tpu.memory_space<vmem>>, %arg3: memref<2x4x256xf32, #tpu.memory_space<vmem>>, %arg4: memref<4x2048xf32, #tpu.memory_space<vmem>>, %arg5: memref<1x2048xf32, #tpu.memory_space<vmem>>, %arg6: memref<4096x512xbf16, #tpu.memory_space<vmem>>, %arg7: memref<1x512xf32, #tpu.memory_space<vmem>>, %arg8: memref<512x128xbf16, #tpu.memory_space<vmem>>, %arg9: memref<1x2x128xf32, #tpu.memory_space<vmem>>, %arg10: memref<2x4096xbf16, #tpu.memory_space<vmem>>) attributes {dimension_semantics = [#tpu.dimension_semantics<parallel>, #tpu.dimension_semantics<arbitrary>], iteration_bounds = array<i64: 1, 4>, scalar_prefetch = 0 : i64, scratch_operands = 1 : i64, tpu.core_type = #tpu.core_type<tc>, window_params = [{pipeline_mode = #tpu.pipeline_mode<synchronous>, transform_indices = @transform_0, window_bounds = array<i64: 2, 4, 256>}, {pipeline_mode = #tpu.pipeline_mode<synchronous>, transform_indices = @transform_1, window_bounds = array<i64: 2, 4, 256>}, {pipeline_mode = #tpu.pipeline_mode<synchronous>, transform_indices = @transform_2, window_bounds = array<i64: 4, 2048>}, {pipeline_mode = #tpu.pipeline_mode<synchronous>, transform_indices = @transform_3, window_bounds = array<i64: 1, 2048>}, {transform_indices = @transform_4, window_bounds = array<i64: 4096, 512>}, {transform_indices = @transform_5, window_bounds = array<i64: 1, 512>}, {transform_indices = @transform_6, window_bounds = array<i64: 512, 128>}, {transform_indices = @transform_7, window_bounds = array<i64: 1, 2, 128>}]} {
    %c0_i32 = arith.constant 0 : i32
    %0 = arith.cmpi eq, %arg1, %c0_i32 : i32
    %1 = arith.extui %0 : i1 to i32
    %c0_i32_0 = arith.constant 0 : i32
    %2 = arith.cmpi ne, %1, %c0_i32_0 : i32
    scf.if %2 {
      %c0_15 = arith.constant 0 : index
      %c0_16 = arith.constant 0 : index
      %c0_17 = arith.constant 0 : index
      %18 = vector.load %arg2[%c0_15, %c0_16, %c0_17] : memref<2x4x256xf32, #tpu.memory_space<vmem>>, vector<2x4x256xf32>
      %cst_18 = arith.constant dense<0.000000e+00> : vector<2x4xf32>
      %19 = vector.multi_reduction <add>, %18, %cst_18 [2] : vector<2x4x256xf32> to vector<2x4xf32>
      %c0_19 = arith.constant 0 : index
      %c0_20 = arith.constant 0 : index
      %c0_21 = arith.constant 0 : index
      %20 = vector.load %arg3[%c0_19, %c0_20, %c0_21] : memref<2x4x256xf32, #tpu.memory_space<vmem>>, vector<2x4x256xf32>
      %cst_22 = arith.constant dense<0.000000e+00> : vector<2x4xf32>
      %21 = vector.multi_reduction <add>, %20, %cst_22 [2] : vector<2x4x256xf32> to vector<2x4xf32>
      %22 = tpu.concatenate %19, %21 in 0 : vector<2x4xf32>, vector<2x4xf32> -> vector<4x4xf32>
      %cst_23 = arith.constant 3.906250e-03 : f32
      %23 = vector.broadcast %cst_23 : f32 to vector<4x4xf32>
      %24 = arith.mulf %22, %23 : vector<4x4xf32>
      %c0_24 = arith.constant 0 : index
      %c0_25 = arith.constant 0 : index
      %25 = vector.load %arg4[%c0_24, %c0_25] : memref<4x2048xf32, #tpu.memory_space<vmem>>, vector<4x2048xf32>
      %cst_26 = arith.constant dense<0.000000e+00> : vector<4x2048xf32>
      %26 = tpu.matmul %24, %25, %cst_26 {dimension_numbers = #tpu.dot_dimension_numbers<[1], [0], [0], [1], [0, 0, 1, 1], [], []>} : vector<4x4xf32>, vector<4x2048xf32>, vector<4x2048xf32> -> vector<4x2048xf32>
      %c0_27 = arith.constant 0 : index
      %c0_28 = arith.constant 0 : index
      %27 = vector.load %arg5[%c0_27, %c0_28] : memref<1x2048xf32, #tpu.memory_space<vmem>>, vector<1x2048xf32>
      %28 = vector.broadcast %27 : vector<1x2048xf32> to vector<4x2048xf32>
      %29 = arith.addf %26, %28 : vector<4x2048xf32>
      %30 = vector.extract_strided_slice %29 {offsets = [0, 0], sizes = [2, 2048], strides = [1, 1]} : vector<4x2048xf32> to vector<2x2048xf32>
      %31 = vector.extract_strided_slice %29 {offsets = [2, 0], sizes = [2, 2048], strides = [1, 1]} : vector<4x2048xf32> to vector<2x2048xf32>
      %32 = tpu.concatenate %30, %31 in 1 : vector<2x2048xf32>, vector<2x2048xf32> -> vector<2x4096xf32>
      %33 = arith.truncf %32 : vector<2x4096xf32> to vector<2x4096xbf16>
      %c0_29 = arith.constant 0 : index
      %c0_30 = arith.constant 0 : index
      %34 = vector.load %arg10[%c0_29, %c0_30] : memref<2x4096xbf16, #tpu.memory_space<vmem>>, vector<2x4096xbf16>
      tpu.vector_store %arg10[%c0_29, %c0_30], %33 {strides = array<i32>} : memref<2x4096xbf16, #tpu.memory_space<vmem>>, vector<2x4096xbf16>,
      %cst_31 = arith.constant 0.000000e+00 : f32
      %35 = vector.broadcast %cst_31 : f32 to vector<2x128xf32>
      %c0_32 = arith.constant 0 : index
      %c0_33 = arith.constant 0 : index
      %c0_34 = arith.constant 0 : index
      %36 = vector.load %arg9[%c0_32, %c0_33, %c0_34] : memref<1x2x128xf32, #tpu.memory_space<vmem>>, vector<1x2x128xf32>
      %37 = vector.shape_cast %36 : vector<1x2x128xf32> to vector<2x128xf32>
      %38 = vector.shape_cast %35 : vector<2x128xf32> to vector<1x2x128xf32>
      tpu.vector_store %arg9[%c0_32, %c0_33, %c0_34], %38 {strides = array<i32>} : memref<1x2x128xf32, #tpu.memory_space<vmem>>, vector<1x2x128xf32>,
    } else {
    }
    %c0 = arith.constant 0 : index
    %c0_1 = arith.constant 0 : index
    %3 = vector.load %arg10[%c0, %c0_1] : memref<2x4096xbf16, #tpu.memory_space<vmem>>, vector<2x4096xbf16>
    %c0_2 = arith.constant 0 : index
    %c0_3 = arith.constant 0 : index
    %4 = vector.load %arg6[%c0_2, %c0_3] : memref<4096x512xbf16, #tpu.memory_space<vmem>>, vector<4096x512xbf16>
    %cst = arith.constant dense<0.000000e+00> : vector<2x512xf32>
    %5 = tpu.matmul %3, %4, %cst {dimension_numbers = #tpu.dot_dimension_numbers<[1], [0], [0], [1], [0, 0, 1, 1], [], []>} : vector<2x4096xbf16>, vector<4096x512xbf16>, vector<2x512xf32> -> vector<2x512xf32>
    %c0_4 = arith.constant 0 : index
    %c0_5 = arith.constant 0 : index
    %6 = vector.load %arg7[%c0_4, %c0_5] : memref<1x512xf32, #tpu.memory_space<vmem>>, vector<1x512xf32>
    %7 = vector.broadcast %6 : vector<1x512xf32> to vector<2x512xf32>
    %8 = arith.addf %5, %7 : vector<2x512xf32>
    %c0_6 = arith.constant 0 : index
    %c0_7 = arith.constant 0 : index
    %c0_8 = arith.constant 0 : index
    %9 = vector.load %arg9[%c0_6, %c0_7, %c0_8] : memref<1x2x128xf32, #tpu.memory_space<vmem>>, vector<1x2x128xf32>
    %10 = vector.shape_cast %9 : vector<1x2x128xf32> to vector<2x128xf32>
    %11 = arith.truncf %8 : vector<2x512xf32> to vector<2x512xbf16>
    %c0_9 = arith.constant 0 : index
    %c0_10 = arith.constant 0 : index
    %12 = vector.load %arg8[%c0_9, %c0_10] : memref<512x128xbf16, #tpu.memory_space<vmem>>, vector<512x128xbf16>
    %cst_11 = arith.constant dense<0.000000e+00> : vector<2x128xf32>
    %13 = tpu.matmul %11, %12, %cst_11 {dimension_numbers = #tpu.dot_dimension_numbers<[1], [0], [0], [1], [0, 0, 1, 1], [], []>} : vector<2x512xbf16>, vector<512x128xbf16>, vector<2x128xf32> -> vector<2x128xf32>
    %14 = arith.addf %10, %13 : vector<2x128xf32>
    %c0_12 = arith.constant 0 : index
    %c0_13 = arith.constant 0 : index
    %c0_14 = arith.constant 0 : index
    %15 = vector.load %arg9[%c0_12, %c0_13, %c0_14] : memref<1x2x128xf32, #tpu.memory_space<vmem>>, vector<1x2x128xf32>
    %16 = vector.shape_cast %15 : vector<1x2x128xf32> to vector<2x128xf32>
    %17 = vector.shape_cast %14 : vector<2x128xf32> to vector<1x2x128xf32>
    tpu.vector_store %arg9[%c0_12, %c0_13, %c0_14], %17 {strides = array<i32>} : memref<1x2x128xf32, #tpu.memory_space<vmem>>, vector<1x2x128xf32>,
    return
  }
  func.func @transform_0(%arg0: i32, %arg1: i32) -> (i32, i32, i32) {
    %c0_i32 = arith.constant 0 : i32
    %c0_i32_0 = arith.constant 0 : i32
    %c0_i32_1 = arith.constant 0 : i32
    %c0_i32_2 = arith.constant 0 : i32
    return %c0_i32, %c0_i32_0, %c0_i32_1 : i32, i32, i32
  }
  func.func @transform_1(%arg0: i32, %arg1: i32) -> (i32, i32, i32) {
    %c0_i32 = arith.constant 0 : i32
    %c0_i32_0 = arith.constant 0 : i32
    %c0_i32_1 = arith.constant 0 : i32
    %c0_i32_2 = arith.constant 0 : i32
    return %c0_i32, %c0_i32_0, %c0_i32_1 : i32, i32, i32
  }
  func.func @transform_2(%arg0: i32, %arg1: i32) -> (i32, i32) {
    %c0_i32 = arith.constant 0 : i32
    %c0_i32_0 = arith.constant 0 : i32
    %c0_i32_1 = arith.constant 0 : i32
    return %c0_i32, %c0_i32_0 : i32, i32
  }
  func.func @transform_3(%arg0: i32, %arg1: i32) -> (i32, i32) {
    %c0_i32 = arith.constant 0 : i32
    %c0_i32_0 = arith.constant 0 : i32
    %c0_i32_1 = arith.constant 0 : i32
    return %c0_i32, %c0_i32_0 : i32, i32
  }
  func.func @transform_4(%arg0: i32, %arg1: i32) -> (i32, i32) {
    %c4_i32 = arith.constant 4 : i32
    %0 = arith.muli %arg0, %c4_i32 : i32
    %1 = arith.addi %0, %arg1 : i32
    %c0_i32 = arith.constant 0 : i32
    %c0_i32_0 = arith.constant 0 : i32
    return %c0_i32, %1 : i32, i32
  }
  func.func @transform_5(%arg0: i32, %arg1: i32) -> (i32, i32) {
    %c4_i32 = arith.constant 4 : i32
    %0 = arith.muli %arg0, %c4_i32 : i32
    %1 = arith.addi %0, %arg1 : i32
    %c0_i32 = arith.constant 0 : i32
    %c0_i32_0 = arith.constant 0 : i32
    return %c0_i32, %1 : i32, i32
  }
  func.func @transform_6(%arg0: i32, %arg1: i32) -> (i32, i32) {
    %c4_i32 = arith.constant 4 : i32
    %0 = arith.muli %arg0, %c4_i32 : i32
    %1 = arith.addi %0, %arg1 : i32
    %c0_i32 = arith.constant 0 : i32
    %c0_i32_0 = arith.constant 0 : i32
    return %1, %c0_i32 : i32, i32
  }
  func.func @transform_7(%arg0: i32, %arg1: i32) -> (i32, i32, i32) {
    %c0_i32 = arith.constant 0 : i32
    %c0_i32_0 = arith.constant 0 : i32
    %c0_i32_1 = arith.constant 0 : i32
    return %arg0, %c0_i32, %c0_i32_0 : i32, i32, i32
  }
}

</mosaic_0001>

<bundles_post_ra>
// kernel: tpu_custom_call.1
= control target key start
LH: loop header
LB: loop body
LE: loop exit
PB: predicated region body
PF: predicated region fallthrough
CT: control target
= control target key end

     0   :  { %s14747_s0 = inlined_call_operand.hbm [shape: f32[2,4,256], index: 0, kind: input, shape index: {}]   ;;  %s14748_s1 = inlined_call_operand.hbm [shape: f32[2,4,256], index: 1, kind: input, shape index: {}]   ;;  %s14749_s2 = inlined_call_operand.hbm [shape: f32[4,2048], index: 2, kind: input, shape index: {}]   ;;  %s14750_s3 = inlined_call_operand.hbm [shape: f32[1,2048], index: 3, kind: input, shape index: {}]   ;;  %s14751_s4 = inlined_call_operand.hbm [shape: bf16[4096,2048], index: 4, kind: input, shape index: {}]   ;;  %s14752_s5 = inlined_call_operand.hbm [shape: f32[1,2048], index: 5, kind: input, shape index: {}]   ;;  %s14753_s6 = inlined_call_operand.hbm [shape: bf16[2048,128], index: 6, kind: input, shape index: {}]   ;;  %s14754_s7 = inlined_call_operand.hbm [shape: f32[1,2,128], index: 7, kind: output, shape index: {}]  }
   0x1   :  { %14775 = sst [smem:[#allocation26_spill]] %s14747_s0 }
   0x2   :  { %14776 = sst [smem:[#allocation27_spill]] %s14751_s4 }
   0x3   :  { %14777 = sst [smem:[#allocation28_spill]] %s14754_s7 }
   0x4   :  { %12 = vsyncpa [#allocation4], 0 }
   0x5   :  { %13 = vsyncpa [#allocation7], 0 }
   0x6   :  { %14 = vsyncpa [#allocation10], 0 }
   0x7   :  { %15 = vsyncpa [#allocation5], 0  ;;  %s13125_s24 = smov 0   ;;  %s13127_s25 = smov 0  }
   0x8   :  { %s13129_s26 = smov 0   ;;  %s13131_s27 = smov 0  }
   0x9   :  { %s13133_s28 = smov 0   ;;  %s13135_s29 = smov 0  }
   0xa LB: > { %14778 = sst [smem:[#allocation20_spill]] %s13053_s26  ;;  %s13154_s30 = sadd.s32 4294967295, %s13065_s29   ;;  %s13065_s29 = sphi %s13135_s29, %s21_s29   ;;  %s13061_s28 = sphi %s13133_s28, %s14821_s28   ;;  %s13057_s27 = sphi %s13131_s27, %s14820_s27   ;;  %s13053_s26 = sphi %s13129_s26, %s14816_s26   ;;  %s13049_s25 = sphi %s13127_s25, %s14819_s25   ;;  %s13045_s24 = sphi %s13125_s24, %s14818_s24  }
   0xb   : > { %14779 = sst [smem:[#allocation21_spill]] %s13057_s27  ;;  %p135_p0 = scmp.ne.s32.totalorder %s13053_s26, %s13049_s25 }
   0xc   : > { %14780 = sst [smem:[#allocation22_spill]] %s13065_s29  ;;  %p136_p1 = scmp.eq.s32.totalorder %s13065_s29, 0 }
   0xd   : > { %p141_p2 = scmp.ne.s32.totalorder %s13049_s25, %s13045_s24  ;;  %p14755_p3 = scmp.eq.s32.totalorder %s13154_s30, 0 }
   0xe   : > { %p137_p4 = por %p136_p1, %p135_p0  ;;  %p9767_p5 = scmp.ge.s32.totalorder %s13065_s29, 1 }
   0xf   : > { %p13165_p6 = por %p14755_p3, %p141_p2  ;;  %p238_p7 = scmp.lt.s32.totalorder %s13065_s29, 5 }
  0x10   : > { %s13067_s11 = smov [#allocation3]   ;;  %p11115_p10 = scmp.lt.s32.totalorder %s13065_s29, 4 }
  0x11   : > { %s14781_s9 = scalar_select %p13165_p6, 1, 0 }
  0x12   : > { %p13170_p8 = pnand %p9767_p5, %p238_p7  ;;  %s250_s12 = sshll.u32 %s13067_s11, 4  ;;  %s251_s12 = int_to_ptr.vmem [resolvable:$true] %s250_s12 }
  0x13   : > { %14782 = sst [smem:[#allocation23_spill]] %s14781_s9  ;;  %p13183_p12 = pnand %p11115_p10, %p137_p4 }
  0x14   : > { %s14783_s10 = scalar_select %p13170_p8, 1, 0 }
  0x15   : > { %p11088_p9 = pneg %p13170_p8  ;;  %s30_s15 = sadd.s32 1, %s13061_s28 }
  0x16   : > { %s14785_s14 = scalar_select %p13183_p12, 1, 0 }
  0x17   : > { %p13179_p11 = pnand %p11088_p9, %p14755_p3  ;;  %s14786_s0 = sld [smem:[#allocation26_spill]] }
  0x19   : > { %s14784_s13 = scalar_select %p13179_p11, 1, 0 }
  0x1a   : > { %p13196_p0 = pneg %p13179_p11 }
  0x1c   : > { %s14787_s21 = scalar_select %p13196_p0, 1, 0 }
  0x1d   : > { %s12771_s18 = scalar_lea.hbm %s14786_s0, 256 }
  0x1e   : > { %p12772_p13 = scmp.ne.s32.totalorder %s14786_s0, %s12771_s18  ;;  %p12778_p4 = scmp.lt.u32.totalorder %s12771_s18, %s14786_s0 }
  0x20   : > { %p12774_p1 = pnand %p13196_p0, %p12772_p13 }
  0x22   : > { %p12775_p2 = pneg %p12774_p1 }
  0x24   : > { %p12780_p5 = pnand %p12778_p4, %p12775_p2 }
  0x26   : > { %12783 = shalt.err (!%p12780_p5)
}
  0x27   : > { %s12784_s24 = scalar_lea.vmem %s251_s12, 256  ;;  %p12792_p3 = scmp.lt.s32.totalorder %s251_s12, %s251_s12 }
  0x28   : > { %p12785_p7 = scmp.ne.s32.totalorder %s251_s12, %s12784_s24  ;;  %p12793_p6 = scmp.lt.s32.totalorder %s12784_s24, %s12784_s24 }
  0x2a   : > { %p12787_p9 = pnand %p12785_p7, %p13196_p0  ;;  %p12794_p8 = por %p12793_p6, %p12792_p3 }
  0x2c   : > { %p12788_p10 = pneg %p12787_p9 }
  0x2e   : > { %p12795_p12 = pnand %p12794_p8, %p12788_p10 }
  0x30   : > { %12798 = shalt.err (!%p12795_p12)
}
  0x31   : > { %s14760_s11 = smov 128   ;;  %s14761_s16 = smov 8  }
  0x32   : > { %11091 = dma.hbm_to_vmem [thread:$0]  (!%p13179_p11), %s14786_s0, 256, %s251_s12, [#allocation4], %s14760_s11, %s14760_s11, %s14761_s16  }
  0x33   : > { %p31_p3 = scmp.ge.s32.totalorder %s30_s15, 4  ;;  %s299_s19 = sand.u32 1, %s13065_s29  }
  0x34   : > { %s13217_s20 = sand.u32 1, %s13053_s26   ;;  %s10891_s24 = sshll.u32 %s13061_s28, 8 }
  0x35   : > { %s14823_s15 = smov (%p31_p3, %s30_s15), 0  ;;  %s9773_s22 = sshll.u32 %s13217_s20, 13 }
  0x36   : > { %14788 = sst [smem:[#allocation24_spill]] %s14823_s15  ;;  %s125_s23 = ssub.s32 %s13061_s28, %s14823_s15 }
  0x37   : > { %p126_p6 = scmp.eq.s32.totalorder %s125_s23, 0  ;;  %s14789_s4 = sld [smem:[#allocation27_spill]] }
  0x38   : > { %s303_s12 = scalar_lea.vmem [#allocation11], %s9773_s22  ;;  %s14790_s18 = sadd.s32 1, %s13053_s26 }
  0x39   : > { %s312_s17 = sshll.u32 %s303_s12, 4  ;;  %s13237_s16 = scalar_lea.sflag [#allocation4], %s299_s19  ;;  %s13235_s17 = int_to_ptr.vmem [resolvable:$true] %s312_s17 }
  0x3a   : > { %s13233_s11 = scalar_select %p126_p6, %s13053_s26, %s14790_s18  }
  0x3b   : > { %p14792_p12 = scmp.ne.s32.totalorder %s14785_s14, 0 }
  0x3c   : > { %14791 = sst [smem:[#allocation25_spill]] %s13233_s11 }
  0x3d   : > { %s13228_s27 = scalar_lea.hbm %s14789_s4, %s10891_s24  ;;  %p13243_p13 = pneg %p14792_p12 }
  0x3e   : > { %s12799_s23 = scalar_lea.hbm %s13228_s27, 131072  ;;  %s12804_s24 = scalar_lea.hbm %s14789_s4, 524288 }
  0x3f   : > { %p12800_p8 = scmp.ne.s32.totalorder %s13228_s27, %s12799_s23  ;;  %p12805_p4 = scmp.lt.u32.totalorder %s13228_s27, %s14789_s4 }
  0x40   : > { %s14793_s7 = scalar_select %p13243_p13, 1, 0 }
  0x41   : > { %p12802_p1 = pnand %p13243_p13, %p12800_p8  ;;  %p12806_p5 = scmp.lt.u32.totalorder %s12804_s24, %s12799_s23 }
  0x42   : > { %p12808_p9 = scmp.lt.u32.totalorder %s12799_s23, %s13228_s27 }
  0x43   : > { %p12803_p2 = pneg %p12802_p1  ;;  %p12807_p7 = por %p12806_p5, %p12805_p4 }
  0x45   : > { %p12809_p10 = por %p12808_p9, %p12807_p7 }
  0x47   : > { %p12810_p3 = pnand %p12809_p10, %p12803_p2 }
  0x49   : > { %12813 = shalt.err (!%p12810_p3)
}
  0x4a   : > { %s12814_s19 = scalar_lea.vmem %s13235_s17, 131072  ;;  %s13070_s8 = smov [#allocation11]  }
  0x4b   : > { %p12815_p6 = scmp.ne.s32.totalorder %s13235_s17, %s12814_s19  ;;  %s12819_s22 = sshll.u32 %s13070_s8, 4  ;;  %s12820_s22 = int_to_ptr.vmem [resolvable:$false] %s12819_s22 }
  0x4c   : > { %s12821_s12 = scalar_lea.vmem %s12820_s22, 262144  ;;  %p12822_p11 = scmp.lt.s32.totalorder %s13235_s17, %s12820_s22 }
  0x4d   : > { %p12817_p8 = pnand %p12815_p6, %p13243_p13  ;;  %p12823_p0 = scmp.lt.s32.totalorder %s12821_s12, %s12814_s19 }
  0x4f   : > { %p12818_p1 = pneg %p12817_p8  ;;  %p12824_p4 = por %p12823_p0, %p12822_p11 }
  0x51   : > { %p12825_p5 = pnand %p12824_p4, %p12818_p1 }
  0x53   : > { %12828 = shalt.err (!%p12825_p5)
}
  0x54   : > { %s13071_s23 = smov 1024   ;;  %s13072_s24 = smov 256  }
  0x55   : > { %s13073_s18 = smov 16   ;;  %s9776_s8 = sshll.u32 %s13217_s20, 2 }
  0x56   : > { %11104 = dma.hbm_to_vmem [thread:$0]  (!%p14792_p12), %s13228_s27, 131072, %s13235_s17, %s13237_s16, %s13071_s23, %s13072_s24, %s13073_s18  }
  0x57   : > { %s13074_s0 = smov [#allocation6]   ;;  %s10892_s19 = sshll.u32 %s13061_s28, 6 }
  0x58   : > { %s263_s4 = sshll.u32 %s13074_s0, 4  ;;  %s12829_s15 = scalar_lea.hbm %s14748_s1, 256  ;;  %s264_s4 = int_to_ptr.vmem [resolvable:$true] %s263_s4 }
  0x59   : > { %p12830_p11 = scmp.ne.s32.totalorder %s14748_s1, %s12829_s15  ;;  %p14794_p0 = scmp.ne.s32.totalorder %s14787_s21, 0 }
  0x5a   : > { %p12836_p9 = scmp.lt.u32.totalorder %s12829_s15, %s14748_s1 }
  0x5b   : > { %p12832_p2 = pnand %p12830_p11, %p14794_p0 }
  0x5d   : > { %p12833_p7 = pneg %p12832_p2 }
  0x5f   : > { %p12838_p10 = pnand %p12836_p9, %p12833_p7 }
  0x61   : > { %12841 = shalt.err (!%p12838_p10)
}
  0x62   : > { %s12842_s0 = scalar_lea.vmem %s264_s4, 256  ;;  %p12850_p1 = scmp.lt.s32.totalorder %s264_s4, %s264_s4 }
  0x63   : > { %p12843_p3 = scmp.ne.s32.totalorder %s264_s4, %s12842_s0  ;;  %p12851_p4 = scmp.lt.s32.totalorder %s12842_s0, %s12842_s0 }
  0x65   : > { %p12845_p6 = pnand %p12843_p3, %p14794_p0  ;;  %p12852_p5 = por %p12851_p4, %p12850_p1 }
  0x67   : > { %p12846_p8 = pneg %p12845_p6 }
  0x69   : > { %p12853_p12 = pnand %p12852_p5, %p12846_p8 }
  0x6b   : > { %12856 = shalt.err (!%p12853_p12)
}
  0x6c   : > { %p14795_p11 = scmp.ne.s32.totalorder %s14784_s13, 0  ;;  %s14796_s26 = smov 8  }
  0x6d   : > { %s14797_s27 = smov 128   ;;  %s13293_s17 = scalar_lea.hbm %s14752_s5, %s10892_s19 }
  0x6e   : > { %11094 = dma.hbm_to_vmem [thread:$0]  (!%p14795_p11), %s14748_s1, 256, %s264_s4, [#allocation7], %s14797_s27, %s14797_s27, %s14796_s26  }
  0x6f   : > { %s326_s23 = scalar_lea.vmem [#allocation12], %s9776_s8  ;;  %s12857_s18 = scalar_lea.hbm %s13293_s17, 64 }
  0x70   : > { %s336_s24 = sshll.u32 %s326_s23, 4  ;;  %p12858_p12 = scmp.ne.s32.totalorder %s13293_s17, %s12857_s18  ;;  %s337_s24 = int_to_ptr.vmem [resolvable:$true] %s336_s24 }
  0x71   : > { %s12862_s4 = scalar_lea.hbm %s14752_s5, 256  ;;  %p12863_p9 = scmp.lt.u32.totalorder %s13293_s17, %s14752_s5 }
  0x72   : > { %p12860_p2 = pnand %p12858_p12, %p13243_p13  ;;  %p12864_p10 = scmp.lt.u32.totalorder %s12862_s4, %s12857_s18 }
  0x73   : > { %p12866_p6 = scmp.lt.u32.totalorder %s12857_s18, %s13293_s17 }
  0x74   : > { %p12861_p7 = pneg %p12860_p2  ;;  %p12865_p3 = por %p12864_p10, %p12863_p9 }
  0x76   : > { %p12867_p8 = por %p12866_p6, %p12865_p3 }
  0x78   : > { %p12868_p1 = pnand %p12867_p8, %p12861_p7 }
  0x7a   : > { %12871 = shalt.err (!%p12868_p1)
}
  0x7b   : > { %s12872_s8 = scalar_lea.vmem %s337_s24, 64  ;;  %s13075_s19 = smov [#allocation12]  }
  0x7c   : > { %p12873_p4 = scmp.ne.s32.totalorder %s337_s24, %s12872_s8  ;;  %s12877_s27 = sshll.u32 %s13075_s19, 4  ;;  %s12878_s27 = int_to_ptr.vmem [resolvable:$false] %s12877_s27 }
  0x7d   : > { %s12879_s29 = scalar_lea.vmem %s12878_s27, 128  ;;  %p12880_p2 = scmp.lt.s32.totalorder %s337_s24, %s12878_s27 }
  0x7e   : > { %p12875_p5 = pnand %p12873_p4, %p13243_p13  ;;  %p12881_p11 = scmp.lt.s32.totalorder %s12879_s29, %s12872_s8 }
  0x80   : > { %p12876_p12 = pneg %p12875_p5  ;;  %p12882_p0 = por %p12881_p11, %p12880_p2 }
  0x82   : > { %p12883_p9 = pnand %p12882_p0, %p12876_p12 }
  0x84   : > { %12886 = shalt.err (!%p12883_p9)
}
  0x85   : > { %p14798_p10 = scmp.ne.s32.totalorder %s14785_s14, 0  ;;  %s13076_s9 = smov [#allocation8]  }
  0x86   : > { %s277_s15 = sshll.u32 %s13076_s9, 4  ;;  %s13077_s11 = smov [#allocation9]   ;;  %s278_s15 = int_to_ptr.vmem [resolvable:$true] %s277_s15 }
  0x87   : > { %11107 = dma.hbm_to_vmem [thread:$0]  (!%p14798_p10), %s13293_s17, 64, %s337_s24, %s13237_s16  }
  0x88   : > { %s288_s23 = sshll.u32 %s13077_s11, 4  ;;  %s12887_s12 = scalar_lea.hbm %s14749_s2, 1024  ;;  %s289_s23 = int_to_ptr.vmem [resolvable:$true] %s288_s23 }
  0x89   : > { %p12888_p0 = scmp.ne.s32.totalorder %s14749_s2, %s12887_s12  ;;  %p14799_p11 = scmp.ne.s32.totalorder %s14787_s21, 0 }
  0x8a   : > { %p12894_p6 = scmp.lt.u32.totalorder %s12887_s12, %s14749_s2 }
  0x8b   : > { %p12890_p7 = pnand %p12888_p0, %p14799_p11 }
  0x8d   : > { %p12891_p3 = pneg %p12890_p7 }
  0x8f   : > { %p12896_p8 = pnand %p12894_p6, %p12891_p3 }
  0x91   : > { %12899 = shalt.err (!%p12896_p8)
}
  0x92   : > { %s12900_s17 = scalar_lea.vmem %s278_s15, 1024  ;;  %p12908_p12 = scmp.lt.s32.totalorder %s278_s15, %s278_s15 }
  0x93   : > { %p12901_p1 = scmp.ne.s32.totalorder %s278_s15, %s12900_s17  ;;  %p12909_p2 = scmp.lt.s32.totalorder %s12900_s17, %s12900_s17 }
  0x95   : > { %p12903_p4 = pnand %p12901_p1, %p14799_p11  ;;  %p12910_p9 = por %p12909_p2, %p12908_p12 }
  0x97   : > { %p12904_p5 = pneg %p12903_p4 }
  0x99   : > { %p12911_p10 = pnand %p12910_p9, %p12904_p5 }
  0x9b   : > { %12914 = shalt.err (!%p12911_p10)
}
  0x9c   : > { %p14800_p0 = scmp.ne.s32.totalorder %s14784_s13, 0  ;;  %s9779_s27 = sshll.u32 %s13217_s20, 8 }
  0x9d   : > { %s12915_s11 = scalar_lea.hbm %s14750_s3, 256 }
  0x9e   : > { %11097 = dma.hbm_to_vmem [thread:$0]  (!%p14800_p0), %s14749_s2, 1024, %s278_s15, [#allocation7]  }
  0x9f   : > { %p12916_p7 = scmp.ne.s32.totalorder %s14750_s3, %s12915_s11  ;;  %p12922_p6 = scmp.lt.u32.totalorder %s12915_s11, %s14750_s3 }
  0xa1   : > { %p12918_p10 = pnand %p12916_p7, %p14799_p11 }
  0xa3   : > { %p12919_p3 = pneg %p12918_p10 }
  0xa5   : > { %p12924_p8 = pnand %p12922_p6, %p12919_p3 }
  0xa7   : > { %12927 = shalt.err (!%p12924_p8)
}
  0xa8   : > { %s12928_s15 = scalar_lea.vmem %s289_s23, 256  ;;  %p12936_p12 = scmp.lt.s32.totalorder %s289_s23, %s289_s23 }
  0xa9   : > { %p12929_p1 = scmp.ne.s32.totalorder %s289_s23, %s12928_s15  ;;  %p12937_p2 = scmp.lt.s32.totalorder %s12928_s15, %s12928_s15 }
  0xab   : > { %p12931_p4 = pnand %p12929_p1, %p14799_p11  ;;  %p12938_p9 = por %p12937_p2, %p12936_p12 }
  0xad   : > { %p12932_p5 = pneg %p12931_p4 }
  0xaf   : > { %p12939_p13 = pnand %p12938_p9, %p12932_p5 }
  0xb1   : > { %12942 = shalt.err (!%p12939_p13)
}
  0xb2   : > { %11100 = dma.hbm_to_vmem [thread:$0]  (!%p14800_p0), %s14750_s3, 256, %s289_s23, [#allocation10]  }
  0xb3   : > { %s10893_s26 = sshll.u32 %s13061_s28, 12  ;;  %s347_s24 = scalar_lea.vmem [#allocation13], %s9779_s27 }
  0xb4   : > { %s13354_s21 = scalar_lea.hbm %s14753_s6, %s10893_s26  ;;  %s356_s19 = sshll.u32 %s347_s24, 4  ;;  %s13356_s19 = int_to_ptr.vmem [resolvable:$true] %s356_s19 }
  0xb5   : > { %s12943_s13 = scalar_lea.hbm %s13354_s21, 4096  ;;  %p14801_p11 = scmp.ne.s32.totalorder %s14793_s7, 0 }
  0xb6   : > { %p12944_p13 = scmp.ne.s32.totalorder %s13354_s21, %s12943_s13  ;;  %s12948_s9 = scalar_lea.hbm %s14753_s6, 16384 }
  0xb7   : > { %p12949_p0 = scmp.lt.u32.totalorder %s13354_s21, %s14753_s6  ;;  %p12950_p3 = scmp.lt.u32.totalorder %s12948_s9, %s12943_s13 }
  0xb8   : > { %p12946_p7 = pnand %p12944_p13, %p14801_p11  ;;  %p12952_p8 = scmp.lt.u32.totalorder %s12943_s13, %s13354_s21 }
  0xb9   : > { %p12951_p6 = por %p12950_p3, %p12949_p0 }
  0xba   : > { %p12947_p10 = pneg %p12946_p7 }
  0xbb   : > { %p12953_p1 = por %p12952_p8, %p12951_p6 }
  0xbd   : > { %p12954_p4 = pnand %p12953_p1, %p12947_p10 }
  0xbf   : > { %12957 = shalt.err (!%p12954_p4)
}
  0xc0   : > { %s12958_s27 = scalar_lea.vmem %s13356_s19, 4096  ;;  %s13078_s22 = smov [#allocation13]  }
  0xc1   : > { %p12959_p5 = scmp.ne.s32.totalorder %s13356_s19, %s12958_s27  ;;  %s12963_s12 = sshll.u32 %s13078_s22, 4  ;;  %s12964_s12 = int_to_ptr.vmem [resolvable:$false] %s12963_s12 }
  0xc2   : > { %s12965_s4 = scalar_lea.vmem %s12964_s12, 8192  ;;  %p12966_p9 = scmp.lt.s32.totalorder %s13356_s19, %s12964_s12 }
  0xc3   : > { %p12961_p12 = pnand %p12959_p5, %p14801_p11  ;;  %p12967_p13 = scmp.lt.s32.totalorder %s12965_s4, %s12958_s27 }
  0xc5   : > { %p12962_p2 = pneg %p12961_p12  ;;  %p12968_p7 = por %p12967_p13, %p12966_p9 }
  0xc7   : > { %p12969_p0 = pnand %p12968_p7, %p12962_p2 }
  0xc9   : > { %12972 = shalt.err (!%p12969_p0)
}
  0xca   : > { %s13079_s15 = smov 64   ;;  %s13080_s20 = smov 4  }
  0xcb   : > { %p14802_p10 = scmp.ne.s32.totalorder %s14785_s14, 0  ;;  %p14803_p11 = scmp.ne.s32.totalorder %s14783_s10, 0 }
  0xcc   : > { %p14804_p3 = scmp.eq.s32.totalorder (!%p14803_p11), %s13154_s30, 0 }
  0xcd   : > { %11110 = dma.hbm_to_vmem [thread:$0]  (!%p14802_p10), %s13354_s21, 4096, %s13356_s19, %s13237_s16, %s13079_s15, %s13079_s15, %s13080_s20  }
  0xce   : > { %368 = sbr.rel (%p14803_p11) target bundleno = 2124 (0x84c), region = 48 }
  0xd5   : > { %13024 = dma.done.wait (%p14804_p3), [#allocation4], 256   ;;  %p14805_p6 = pmov %p14804_p3 }
  0xd6   : > { %p14806_p8 = pmov %p14804_p3 }
  0xd7   : > { %13026 = vsyncadd (%p14805_p6), [#allocation4], 4294967040 }
  0xd8   : > { %13028 = dma.done.wait (%p14806_p8), [#allocation7], 1280   ;;  %p14807_p1 = pmov %p14804_p3 }
  0xda   : > { %13030 = vsyncadd (%p14807_p1), [#allocation7], 4294966016  ;;  %p14808_p4 = pmov %p14807_p1 }
  0xdb   : > { %p14809_p5 = pmov %p14807_p1 }
  0xdc   : > { %13032 = dma.done.wait (%p14808_p4), [#allocation10], 256  }
  0xdd   : > { %13034 = vsyncadd (%p14809_p5), [#allocation10], 4294967040  ;;  %s14810_s10 = sld [smem:[#allocation23_spill]]  ;;  %s386_s14 = sand.u32 1, %s13154_s30  }
  0xde   : > { %s388_s16 = sand.u32 1, %s13049_s25   ;;  %s387_s0 = scalar_lea.sflag [#allocation4], %s386_s14 }
  0xdf   : > { %s9787_s7 = sshll.u32 %s388_s16, 13 }
  0xe0   : > { %s13396_s26 = scalar_lea.vmem [#allocation11], %s9787_s7 }
  0xe3   : > { %p14811_p12 = scmp.ne.s32.totalorder %s14810_s10, 0 }
  0xe5   : > { %13036 = dma.done.wait (%p14811_p12), %s387_s0, 135232  }
  0xe6   : > { %13038 = vsyncadd (%p14811_p12), %s387_s0, 4294832064  ;;  %s9788_s8 = sshll.u32 %s388_s16, 2  ;;  %s9789_s17 = sshll.u32 %s388_s16, 8 }
  0xe7   : > { %s13402_s21 = scalar_lea.vmem [#allocation12], %s9788_s8  ;;  %s13404_s24 = scalar_lea.vmem [#allocation13], %s9789_s17 }
  0xe8   : > { %s14812_s19 = sld [smem:[#allocation21_spill]] }
  0xee   : > { %p9790_p2 = scmp.ne.s32.totalorder %s14812_s19, 0 }
  0xef   : > { %vm466_vm0 = vcmask (!%p9790_p2), 1043456   ;;  %v477_v0 = vld [vmem:[#allocation6] sm:$0xff] (!%p9790_p2)  ;;  %v458_v1 = vld [vmem:[#allocation3] sm:$0xff] (!%p9790_p2)  ;;  %v478_v2 = vld [vmem:[#allocation6 + $0x8] sm:$0xff] (!%p9790_p2)  ;;  %v13081_v26 = vmov (!%p9790_p2), 0.0   ;;  %v497_v29 = vlaneseq (!%p9790_p2)  ;;  %vm520_vm1 = vcmask (!%p9790_p2), 1043459  }
  0xf0   : > { %457 = sbr.rel (%p9790_p2) target bundleno = 641 (0x281), region = 80  ;;  %v481_v3 = vcombine.high (!%p9790_p2), %v477_v0, %v477_v0  ;;  %v485_v4 = vsel (!%p9790_p2), %vm466_vm0, %v477_v0, 0.0  ;;  %v462_v5 = vcombine.high (!%p9790_p2), %v458_v1, %v458_v1  ;;  %v467_v6 = vsel (!%p9790_p2), %vm466_vm0, %v458_v1, 0.0  ;;  %v459_v7 = vld [vmem:[#allocation3 + $0x8] sm:$0xff] (!%p9790_p2)  ;;  %v526_v20 = vld [vmem:[#allocation8] sm:$0xff] (!%p9790_p2)  ;;  %v528_v24 = vld [vmem:[#allocation8 + $0x10] sm:$0xff] (!%p9790_p2)  ;;  %734 = vmatprep.mubr.f32.mxu0 (!%p9790_p2), %v13081_v26  ;;  %805 = vmatprep.mubr.f32.mxu1 (!%p9790_p2), %v13081_v26 }
  0xf1   : > { %v482_v8 = vcombine.high (!%p9790_p2), %v478_v2, %v478_v2  ;;  %v463_v9 = vcombine.high (!%p9790_p2), %v459_v7, %v459_v7  ;;  %v490_v12 = vsel (!%p9790_p2), %vm466_vm0, %v478_v2, 0.0  ;;  %v472_v13 = vsel (!%p9790_p2), %vm466_vm0, %v459_v7, 0.0  ;;  %v527_v21 = vld [vmem:[#allocation8 + $0x8] sm:$0xff] (!%p9790_p2)  ;;  %v529_v25 = vld [vmem:[#allocation8 + $0x18] sm:$0xff] (!%p9790_p2)  ;;  %1554 = vst [vmem:[#allocation14] sm:$0x3] (!%p9790_p2), %v13081_v26 }
  0xf2   : > { %v486_v10 = vsel (!%p9790_p2), %vm466_vm0, %v481_v3, 0.0  ;;  %v468_v11 = vsel (!%p9790_p2), %vm466_vm0, %v462_v5, 0.0  ;;  %v626_v22 = vcombine.high (!%p9790_p2), %v526_v20, %v526_v20  ;;  %v627_v23 = vcombine.high (!%p9790_p2), %v527_v21, %v527_v21  ;;  %v530_v43 = vld [vmem:[#allocation8 + $0x20] sm:$0xff] (!%p9790_p2)  ;;  %v531_v44 = vld [vmem:[#allocation8 + $0x28] sm:$0xff] (!%p9790_p2)  ;;  %v532_v49 = vld [vmem:[#allocation8 + $0x30] sm:$0xff] (!%p9790_p2) }
  0xf3   : > { %v487_v14 = vadd.f32 (!%p9790_p2), %v486_v10, %v485_v4  ;;  %v469_v15 = vadd.f32 (!%p9790_p2), %v468_v11, %v467_v6  ;;  %v491_v16 = vsel (!%p9790_p2), %vm466_vm0, %v482_v8, 0.0  ;;  %v473_v17 = vsel (!%p9790_p2), %vm466_vm0, %v463_v9, 0.0  ;;  %v533_v50 = vld [vmem:[#allocation8 + $0x38] sm:$0xff] (!%p9790_p2)  ;;  %v534_v57 = vld [vmem:[#allocation9] sm:$0xff] (!%p9790_p2)  ;;  %v535_v5 = vld [vmem:[#allocation9 + $0x8] sm:$0xff] (!%p9790_p2) }
  0xf4   : > { %v492_v18 = vadd.f32 (!%p9790_p2), %v491_v16, %v490_v12  ;;  %v474_v19 = vadd.f32 (!%p9790_p2), %v473_v17, %v472_v13  ;;  %9791 = vmatprep.subr.msk.mxu0 (!%p9790_p2), %vm466_vm0, %v626_v22  ;;  %9794 = vmatprep.subr.msk.mxu1 (!%p9790_p2), %vm466_vm0, %v627_v23  ;;  %v628_v27 = vcombine.high (!%p9790_p2), %v528_v24, %v528_v24  ;;  %v498_v30 = vand.u32 (!%p9790_p2), 127, %v497_v29 }
  0xf5   : > { %488 = vadd.xlane.f32.xlu1 (!%p9790_p2), %v487_v14  ;;  %470 = vadd.xlane.f32.xlu0 (!%p9790_p2), %v469_v15  ;;  %v629_v28 = vcombine.high (!%p9790_p2), %v529_v25, %v529_v25  ;;  %v13421_v31 = vshrl.u32 (!%p9790_p2), %v497_v29, 7  ;;  %vm507_vm2 = vcmask (!%p9790_p2), 1041409   ;;  %vm523_vm3 = vcmask (!%p9790_p2), 1041408  }
  0xf6   : > { %9792 = vmatpush1.msk.msra.mxu0 (!%p9790_p2), %vm466_vm0, %v526_v20  ;;  %9795 = vmatpush1.msk.msra.mxu1 (!%p9790_p2), %vm466_vm0, %v527_v21  ;;  %vm634_vm4 = vcmask (!%p9790_p2), 31744   ;;  %v630_v47 = vcombine.high (!%p9790_p2), %v530_v43, %v530_v43  ;;  %v631_v48 = vcombine.high (!%p9790_p2), %v531_v44, %v531_v44  ;;  %v632_v51 = vcombine.high (!%p9790_p2), %v532_v49, %v532_v49 }
  0xf7   : > { %9797 = vmatprep.subr.msk.mxu0 %vm466_vm0, %v628_v27  ;;  %9800 = vmatprep.subr.msk.mxu1 %vm466_vm0, %v629_v28  ;;  %v501_v34 = vsub.s32 %v498_v30, %v13421_v31  ;;  %v633_v52 = vcombine.high %v533_v50, %v533_v50  ;;  %v13082_v53 = vmov 1966171168   ;;  %v540_v55 = vsub.s32 0, %v13421_v31 }
  0xf8   : > { %v1355_v54 = vunpack.c.l.s4 %v13082_v53  ;;  %v548_v56 = vsub.s32 2, %v13421_v31  ;;  %v544_v58 = vsub.s32 1, %v13421_v31  ;;  %v552_v59 = vsub.s32 3, %v13421_v31 }
  0xf9   : > { %493 = vadd.xlane.f32.xlu1 %v492_v18  ;;  %475 = vadd.xlane.f32.xlu0 %v474_v19  ;;  %v556_v61 = vsub.s32 4, %v13421_v31  ;;  %v564_v62 = vsub.s32 6, %v13421_v31  ;;  %v541_v63 = vrot.slane %v534_v57, %v540_v55  ;;  %v560_v1 = vsub.s32 5, %v13421_v31 }
  0xfa   : > { %v1356_v60 = vunpack.c.0.s8 %v1355_v54  ;;  %v549_v0 = vrot.slane %v534_v57, %v548_v56  ;;  %v568_v2 = vsub.s32 7, %v13421_v31  ;;  %v545_v3 = vrot.slane %v534_v57, %v544_v58 }
  0xfb   : > { %v553_v4 = vrot.slane %v534_v57, %v552_v59  ;;  %v557_v9 = vrot.slane %v534_v57, %v556_v61  ;;  %v565_v10 = vrot.slane %v534_v57, %v564_v62  ;;  %v561_v15 = vrot.slane %v534_v57, %v560_v1 }
  0xfc   : > { %v13451_v6 = vsub.s32 %v1356_v60, %v13421_v31  ;;  %v569_v16 = vrot.slane %v534_v57, %v568_v2  ;;  %v573_v19 = vrot.slane %v535_v5, %v540_v55  ;;  %v581_v20 = vrot.slane %v535_v5, %v548_v56 }
  0xfd   : > { %v577_v23 = vrot.slane %v535_v5, %v544_v58  ;;  %v601_v60 = vrot.slane %v535_v5, %v568_v2 }
 0x182   : > { %v489_v32 = vpop.xlane.xlu1 %488  ;;  %v471_v33 = vpop.xlane.xlu0 %470 }
 0x183   : > { %v515_v37 = vrot.slane %v489_v32, %v501_v34  ;;  %v502_v38 = vrot.slane %v471_v33, %v501_v34 }
 0x186   : > { %v494_v35 = vpop.xlane.xlu1 %493  ;;  %v476_v36 = vpop.xlane.xlu0 %475 }
 0x187   : > { %v519_v39 = vrot.slane %v494_v35, %v501_v34  ;;  %v506_v40 = vrot.slane %v476_v36, %v501_v34  ;;  %v589_v35 = vrot.slane %v535_v5, %v556_v61  ;;  %v597_v36 = vrot.slane %v535_v5, %v564_v62 }
 0x189   : > { %v521_v41 = vsel %vm520_vm1, %v519_v39, %v515_v37  ;;  %v508_v42 = vsel %vm507_vm2, %v506_v40, %v502_v38 }
 0x18a   : > { %v524_v45 = vsel %vm523_vm3, %v508_v42, %v521_v41 }
 0x18b   : > { %v525_v46 = vmul.f32 0.00390625, %v524_v45 }
 0x18d   : > { %9793 = vmatmul.mubr.msk.f32.vlgmr.msra.gmra.mrb[0].mxu0 %vm634_vm4, %v525_v46  ;;  %9796 = vmatmul.mubr.msk.f32.vlgmr.msra.gmra.mrb[0].mxu1 %vm634_vm4, %v525_v46 }
 0x18e   : > { %9798 = vmatpush1.msk.msra.mxu0 %vm466_vm0, %v528_v24  ;;  %9801 = vmatpush1.msk.msra.mxu1 %vm466_vm0, %v529_v25  ;;  %v585_v24 = vrot.slane %v535_v5, %v552_v59 }
 0x18f   : > { %876 = vmatprep.mubr.f32.mxu0 %v13081_v26  ;;  %947 = vmatprep.mubr.f32.mxu1 %v13081_v26 }
 0x190   : > { %9803 = vmatprep.subr.msk.mxu0 %vm466_vm0, %v630_v47  ;;  %9806 = vmatprep.subr.msk.mxu1 %vm466_vm0, %v631_v48 }
 0x191   : > { %9799 = vmatmul.mubr.msk.f32.vlgmr.msra.gmra.mrb[2].mxu0 %vm634_vm4, %v525_v46  ;;  %9802 = vmatmul.mubr.msk.f32.vlgmr.msra.gmra.mrb[2].mxu1 %vm634_vm4, %v525_v46 }
 0x192   : > { %9804 = vmatpush1.msk.msra.mxu0 %vm466_vm0, %v530_v43  ;;  %9807 = vmatpush1.msk.msra.mxu1 %vm466_vm0, %v531_v44 }
 0x193   : > { %1018 = vmatprep.mubr.f32.mxu0 %v13081_v26  ;;  %1089 = vmatprep.mubr.f32.mxu1 %v13081_v26 }
 0x194   : > { %9809 = vmatprep.subr.msk.mxu0 %vm466_vm0, %v632_v51  ;;  %9812 = vmatprep.subr.msk.mxu1 %vm466_vm0, %v633_v52 }
 0x195   : > { %9805 = vmatmul.mubr.msk.f32.vlgmr.msra.gmra.mrb[4].mxu0 %vm634_vm4, %v525_v46  ;;  %9808 = vmatmul.mubr.msk.f32.vlgmr.msra.gmra.mrb[4].mxu1 %vm634_vm4, %v525_v46 }
 0x196   : > { %9810 = vmatpush1.msk.msra.mxu0 %vm466_vm0, %v532_v49  ;;  %9813 = vmatpush1.msk.msra.mxu1 %vm466_vm0, %v533_v50  ;;  %v593_v50 = vrot.slane %v535_v5, %v560_v1 }
 0x197   : > { %1160 = vmatprep.mubr.f32.mxu0 %v13081_v26  ;;  %1231 = vmatprep.mubr.f32.mxu1 %v13081_v26 }
 0x199   : > { %9811 = vmatmul.mubr.msk.f32.vlgmr.msra.gmra.mrb[6].mxu0 %vm634_vm4, %v525_v46  ;;  %9814 = vmatmul.mubr.msk.f32.vlgmr.msra.gmra.mrb[6].mxu1 %vm634_vm4, %v525_v46 }
 0x260   : > { %v736_v7 = vpop.f32.mrb[0].mxu0  ;;  %v807_v8 = vpop.f32.mrb[0].mxu1 }
 0x261   : > { %v737_v11 = vadd.f32 %v736_v7, %v541_v63  ;;  %v808_v12 = vadd.f32 %v807_v8, %v549_v0  ;;  %v738_v13 = vpop.f32.mrb[1].mxu0  ;;  %v809_v14 = vpop.f32.mrb[1].mxu1 }
 0x262   : > { %v739_v17 = vadd.f32 %v738_v13, %v545_v3  ;;  %v810_v18 = vadd.f32 %v809_v14, %v553_v4 }
 0x263   : > { %v1254_v21 = vrot.slane %v737_v11, 2  ;;  %v1256_v22 = vrot.slane %v808_v12, 2 }
 0x264   : > { %v1255_v25 = vrot.slane %v739_v17, 2  ;;  %v9815_v26 = vpack.c.bf16 %v739_v17, %v737_v11  ;;  %v1257_v27 = vrot.slane %v810_v18, 2  ;;  %v9816_v28 = vpack.c.bf16 %v810_v18, %v808_v12  ;;  %v878_v29 = vpop.f32.mrb[2].mxu0  ;;  %v949_v30 = vpop.f32.mrb[2].mxu1 }
 0x265   : > { %v879_v31 = vadd.f32 %v878_v29, %v557_v9  ;;  %v950_v32 = vadd.f32 %v949_v30, %v565_v10  ;;  %v880_v33 = vpop.f32.mrb[3].mxu0  ;;  %v951_v34 = vpop.f32.mrb[3].mxu1 }
 0x266   : > { %v1360_v37 = vrot.slane %v9815_v26, %v13451_v6  ;;  %v9823_v38 = vpack.c.bf16 %v1255_v25, %v1254_v21  ;;  %v1367_v39 = vrot.slane %v9816_v28, %v13451_v6  ;;  %v9824_v40 = vpack.c.bf16 %v1257_v27, %v1256_v22 }
 0x267   : > { %v1258_v41 = vrot.slane %v879_v31, 2  ;;  %v1260_v42 = vrot.slane %v950_v32, 2  ;;  %v881_v43 = vadd.f32 %v880_v33, %v561_v15  ;;  %v952_v44 = vadd.f32 %v951_v34, %v569_v16 }
 0x268   : > { %v1458_v45 = vrot.slane %v9823_v38, %v13451_v6  ;;  %v1382_v46 = vcombine.low %v1360_v37, %v1367_v39  ;;  %v1465_v47 = vrot.slane %v9824_v40, %v13451_v6  ;;  %v1020_v48 = vpop.f32.mrb[4].mxu0  ;;  %v1091_v49 = vpop.f32.mrb[4].mxu1 }
 0x269   : > { %v1259_v51 = vrot.slane %v881_v43, 2  ;;  %v9817_v52 = vpack.c.bf16 %v881_v43, %v879_v31  ;;  %v1261_v53 = vrot.slane %v952_v44, 2  ;;  %v9818_v54 = vpack.c.bf16 %v952_v44, %v950_v32  ;;  %v1022_v55 = vpop.f32.mrb[5].mxu0  ;;  %v1093_v56 = vpop.f32.mrb[5].mxu1 }
 0x26a   : > { %v1480_v57 = vcombine.low %v1458_v45, %v1465_v47  ;;  %v1021_v58 = vadd.f32 %v1020_v48, %v573_v19  ;;  %v1092_v59 = vadd.f32 %v1091_v49, %v581_v20  ;;  %v1390_v3 = vrot.slane %v1382_v46, %v13451_v6 }
 0x26b   : > { %v1374_v61 = vrot.slane %v9817_v52, %v13451_v6  ;;  %v9825_v62 = vpack.c.bf16 %v1259_v51, %v1258_v41  ;;  %v1381_v63 = vrot.slane %v9818_v54, %v13451_v6  ;;  %v9826_v0 = vpack.c.bf16 %v1261_v53, %v1260_v42 }
 0x26c   : > { %v1262_v4 = vrot.slane %v1021_v58, 2  ;;  %v1264_v1 = vrot.slane %v1092_v59, 2  ;;  %v1023_v7 = vadd.f32 %v1022_v55, %v577_v23  ;;  %v1162_v8 = vpop.f32.mrb[6].mxu0  ;;  %v1233_v9 = vpop.f32.mrb[6].mxu1  ;;  %v1094_v13 = vadd.f32 %v1093_v56, %v585_v24 }
 0x26d   : > { %v1472_v10 = vrot.slane %v9825_v62, %v13451_v6  ;;  %v1383_v11 = vcombine.low %v1374_v61, %v1381_v63  ;;  %v1479_v12 = vrot.slane %v9826_v0, %v13451_v6  ;;  %v1164_v2 = vpop.f32.mrb[7].mxu0  ;;  %v1235_v5 = vpop.f32.mrb[7].mxu1  ;;  %v1163_v16 = vadd.f32 %v1162_v8, %v589_v35 }
 0x26e   : > { %v1263_v14 = vrot.slane %v1023_v7, 2  ;;  %v9819_v15 = vpack.c.bf16 %v1023_v7, %v1021_v58  ;;  %v1234_v17 = vadd.f32 %v1233_v9, %v597_v36  ;;  %v1265_v20 = vrot.slane %v1094_v13, 2 }
 0x26f   : > { %v1397_v18 = vrot.slane %v1383_v11, %v13451_v6  ;;  %v1481_v19 = vcombine.low %v1472_v10, %v1479_v12  ;;  %v9820_v21 = vpack.c.bf16 %v1094_v13, %v1092_v59  ;;  %v1488_v22 = vrot.slane %v1480_v57, %v13451_v6 }
 0x270   : > { %v1409_v23 = vrot.slane %v9819_v15, %v13451_v6  ;;  %v9827_v25 = vpack.c.bf16 %v1263_v14, %v1262_v4  ;;  %v1266_v26 = vrot.slane %v1163_v16, 2  ;;  %v9828_v29 = vpack.c.bf16 %v1265_v20, %v1264_v1 }
 0x271   : > { %v1398_v27 = vcombine.low %v1390_v3, %v1397_v18  ;;  %v1495_v24 = vrot.slane %v1481_v19, %v13451_v6  ;;  %v1416_v28 = vrot.slane %v9820_v21, %v13451_v6  ;;  %v1268_v31 = vrot.slane %v1234_v17, 2 }
 0x272   : > { %v1507_v30 = vrot.slane %v9827_v25, %v13451_v6  ;;  %v1165_v32 = vadd.f32 %v1164_v2, %v593_v50  ;;  %v1236_v33 = vadd.f32 %v1235_v5, %v601_v60  ;;  %v1514_v36 = vrot.slane %v9828_v29, %v13451_v6 }
 0x273   : > { %v1496_v34 = vcombine.low %v1488_v22, %v1495_v24  ;;  %1550 = vst [vmem:[#allocation2] sm:$0xff] %v1398_v27  ;;  %v1431_v35 = vcombine.low %v1409_v23, %v1416_v28 }
 0x274   : > { %v1267_v37 = vrot.slane %v1165_v32, 2  ;;  %v9821_v38 = vpack.c.bf16 %v1165_v32, %v1163_v16  ;;  %v1269_v39 = vrot.slane %v1236_v33, 2  ;;  %v9822_v40 = vpack.c.bf16 %v1236_v33, %v1234_v17 }
 0x275   : > { %1552 = vst [vmem:[#allocation2 + $0x10] sm:$0xff] %v1496_v34  ;;  %v1529_v41 = vcombine.low %v1507_v30, %v1514_v36  ;;  %v1439_v49 = vrot.slane %v1431_v35, %v13451_v6 }
 0x276   : > { %v1423_v42 = vrot.slane %v9821_v38, %v13451_v6  ;;  %v9829_v43 = vpack.c.bf16 %v1267_v37, %v1266_v26  ;;  %v1430_v44 = vrot.slane %v9822_v40, %v13451_v6  ;;  %v9830_v45 = vpack.c.bf16 %v1269_v39, %v1268_v31 }
 0x277   : > { %v1537_v52 = vrot.slane %v1529_v41, %v13451_v6 }
 0x278   : > { %v1521_v46 = vrot.slane %v9829_v43, %v13451_v6  ;;  %v1432_v47 = vcombine.low %v1423_v42, %v1430_v44  ;;  %v1528_v48 = vrot.slane %v9830_v45, %v13451_v6 }
 0x27a   : > { %v1446_v50 = vrot.slane %v1432_v47, %v13451_v6  ;;  %v1530_v51 = vcombine.low %v1521_v46, %v1528_v48 }
 0x27c   : > { %v1447_v53 = vcombine.low %v1439_v49, %v1446_v50  ;;  %v1544_v54 = vrot.slane %v1530_v51, %v13451_v6 }
 0x27e   : > { %v1545_v55 = vcombine.low %v1537_v52, %v1544_v54  ;;  %1551 = vst [vmem:[#allocation2 + $0x8] sm:$0xff] %v1447_v53 }
 0x280   : > { %1553 = vst [vmem:[#allocation2 + $0x18] sm:$0xff] %v1545_v55 }
 0x281 PF: > { %v11197_v56 = vld [vmem:[%s13396_s26 + $0x4] ss:$16 sps:$4 sm:$0xff]   ;;  %v11199_v57 = vld [vmem:[%s13396_s26 + $0xc] ss:$16 sps:$4 sm:$0xff]   ;;  %v11201_v6 = vld [vmem:[%s13396_s26] ss:$16 sps:$4 sm:$0xff]   ;;  %v2585_v28 = vlaneseq }
 0x282   : > { %7957 = vmatprep.subr.bf16.mxu0 %v11197_v56  ;;  %v11202_v58 = vld [vmem:[%s13396_s26 + $0x8] ss:$16 sps:$4 sm:$0xff]   ;;  %8613 = vmatprep.subr.bf16.mxu1 %v11199_v57  ;;  %v11203_v59 = vld [vmem:[%s13396_s26 + $0x24] ss:$16 sps:$4 sm:$0xff]   ;;  %v11205_v60 = vld [vmem:[%s13396_s26 + $0x2c] ss:$16 sps:$4 sm:$0xff]  }
 0x283   : > { %7958 = vmatpush1.bf16.msra.mxu0 %v11201_v6  ;;  %8614 = vmatpush1.bf16.msra.mxu1 %v11202_v58  ;;  %v11207_v61 = vld [vmem:[%s13396_s26 + $0x20] ss:$16 sps:$4 sm:$0xff]   ;;  %v11208_v62 = vld [vmem:[%s13396_s26 + $0x28] ss:$16 sps:$4 sm:$0xff]   ;;  %v11209_v63 = vld [vmem:[%s13396_s26 + $0x44] ss:$16 sps:$4 sm:$0xff]  }
 0x284   : > { %7959 = vmatprep.subr.bf16.mxu0 %v11203_v59  ;;  %8615 = vmatprep.subr.bf16.mxu1 %v11205_v60  ;;  %v11211_v0 = vld [vmem:[%s13396_s26 + $0x4c] ss:$16 sps:$4 sm:$0xff]   ;;  %v11213_v3 = vld [vmem:[%s13396_s26 + $0x40] ss:$16 sps:$4 sm:$0xff]   ;;  %v11214_v4 = vld [vmem:[%s13396_s26 + $0x48] ss:$16 sps:$4 sm:$0xff]  }
 0x285   : > { %v11215_v1 = vld [vmem:[%s13396_s26 + $0x64] ss:$16 sps:$4 sm:$0xff]   ;;  %v11217_v7 = vld [vmem:[%s13396_s26 + $0x6c] ss:$16 sps:$4 sm:$0xff]   ;;  %v11219_v8 = vld [vmem:[%s13396_s26 + $0x60] ss:$16 sps:$4 sm:$0xff]  }
 0x286   : > { %v11220_v9 = vld [vmem:[%s13396_s26 + $0x68] ss:$16 sps:$4 sm:$0xff]   ;;  %v11221_v10 = vld [vmem:[%s13396_s26 + $0x84] ss:$16 sps:$4 sm:$0xff]   ;;  %v11223_v11 = vld [vmem:[%s13396_s26 + $0x8c] ss:$16 sps:$4 sm:$0xff]  }
 0x287   : > { %7960 = vmatpush1.bf16.msra.mxu0 %v11207_v61  ;;  %8616 = vmatpush1.bf16.msra.mxu1 %v11208_v62  ;;  %v11225_v12 = vld [vmem:[%s13396_s26 + $0x80] ss:$16 sps:$4 sm:$0xff]   ;;  %v11226_v13 = vld [vmem:[%s13396_s26 + $0x88] ss:$16 sps:$4 sm:$0xff]   ;;  %v11227_v2 = vld [vmem:[%s13396_s26 + $0xa4] ss:$16 sps:$4 sm:$0xff]  }
 0x288   : > { %7961 = vmatprep.subr.bf16.mxu0 %v11209_v63  ;;  %8617 = vmatprep.subr.bf16.mxu1 %v11211_v0  ;;  %v11229_v5 = vld [vmem:[%s13396_s26 + $0xac] ss:$16 sps:$4 sm:$0xff]   ;;  %v11231_v14 = vld [vmem:[%s13396_s26 + $0xa0] ss:$16 sps:$4 sm:$0xff]   ;;  %v11232_v15 = vld [vmem:[%s13396_s26 + $0xa8] ss:$16 sps:$4 sm:$0xff]  }
 0x289   : > { %v11233_v16 = vld [vmem:[%s13396_s26 + $0xc4] ss:$16 sps:$4 sm:$0xff]   ;;  %v11235_v17 = vld [vmem:[%s13396_s26 + $0xcc] ss:$16 sps:$4 sm:$0xff]   ;;  %v11237_v18 = vld [vmem:[%s13396_s26 + $0xc0] ss:$16 sps:$4 sm:$0xff]  }
 0x28a   : > { %v11238_v19 = vld [vmem:[%s13396_s26 + $0xc8] ss:$16 sps:$4 sm:$0xff]   ;;  %v11239_v20 = vld [vmem:[%s13396_s26 + $0xe4] ss:$16 sps:$4 sm:$0xff]   ;;  %v11241_v21 = vld [vmem:[%s13396_s26 + $0xec] ss:$16 sps:$4 sm:$0xff]  }
 0x28b   : > { %7962 = vmatpush1.bf16.msra.mxu0 %v11213_v3  ;;  %8618 = vmatpush1.bf16.msra.mxu1 %v11214_v4  ;;  %v11243_v22 = vld [vmem:[%s13396_s26 + $0xe0] ss:$16 sps:$4 sm:$0xff]   ;;  %v11244_v23 = vld [vmem:[%s13396_s26 + $0xe8] ss:$16 sps:$4 sm:$0xff]   ;;  %v11245_v25 = vld [vmem:[%s13396_s26 + $0x104] ss:$16 sps:$4 sm:$0xff]  }
 0x28c   : > { %7963 = vmatprep.subr.bf16.mxu0 %v11215_v1  ;;  %8619 = vmatprep.subr.bf16.mxu1 %v11217_v7  ;;  %v11247_v26 = vld [vmem:[%s13396_s26 + $0x10c] ss:$16 sps:$4 sm:$0xff]   ;;  %v11249_v27 = vld [vmem:[%s13396_s26 + $0x100] ss:$16 sps:$4 sm:$0xff]   ;;  %v11250_v24 = vld [vmem:[%s13396_s26 + $0x108] ss:$16 sps:$4 sm:$0xff]  }
 0x28d   : > { %v13083_v29 = vmov 1966171168   ;;  %v11251_v31 = vld [vmem:[%s13396_s26 + $0x124] ss:$16 sps:$4 sm:$0xff]   ;;  %v11253_v32 = vld [vmem:[%s13396_s26 + $0x12c] ss:$16 sps:$4 sm:$0xff]  }
 0x28e   : > { %v2611_v30 = vunpack.c.l.s4 %v13083_v29  ;;  %v11255_v33 = vld [vmem:[%s13396_s26 + $0x120] ss:$16 sps:$4 sm:$0xff]   ;;  %v13516_v34 = vshrl.u32 %v2585_v28, 7  ;;  %v11256_v36 = vld [vmem:[%s13396_s26 + $0x128] ss:$16 sps:$4 sm:$0xff]   ;;  %s13084_s13 = smov [#allocation14]  }
 0x28f   : > { %7964 = vmatpush1.bf16.msra.mxu0 %v11219_v8  ;;  %8620 = vmatpush1.bf16.msra.mxu1 %v11220_v9  ;;  %v11257_v37 = vld [vmem:[%s13396_s26 + $0x144] ss:$16 sps:$4 sm:$0xff]   ;;  %v11259_v38 = vld [vmem:[%s13396_s26 + $0x14c] ss:$16 sps:$4 sm:$0xff]   ;;  %v11261_v39 = vld [vmem:[%s13396_s26 + $0x140] ss:$16 sps:$4 sm:$0xff]  }
 0x290   : > { %7965 = vmatprep.subr.bf16.mxu0 %v11221_v10  ;;  %8621 = vmatprep.subr.bf16.mxu1 %v11223_v11  ;;  %v2612_v35 = vunpack.c.0.s8 %v2611_v30  ;;  %v11262_v40 = vld [vmem:[%s13396_s26 + $0x148] ss:$16 sps:$4 sm:$0xff]   ;;  %v11263_v42 = vld [vmem:[%s13396_s26 + $0x164] ss:$16 sps:$4 sm:$0xff]   ;;  %v11265_v43 = vld [vmem:[%s13396_s26 + $0x16c] ss:$16 sps:$4 sm:$0xff]  }
 0x291   : > { %v13528_v44 = vld [vmem:[#allocation2] sm:$0xff]  ;;  %v11268_v47 = vld [vmem:[%s13396_s26 + $0x168] ss:$16 sps:$4 sm:$0xff]   ;;  %v11271_v49 = vld [vmem:[%s13396_s26 + $0x18c] ss:$16 sps:$4 sm:$0xff]   ;;  %s9621_s23 = sshll.u32 %s13084_s13, 4  ;;  %s9622_s23 = int_to_ptr.vmem [resolvable:$true] %s9621_s23 }
 0x292   : > { %v13524_v41 = vsub.s32 %v2612_v35, %v13516_v34  ;;  %v11267_v45 = vld [vmem:[%s13396_s26 + $0x160] ss:$16 sps:$4 sm:$0xff]   ;;  %v11269_v48 = vld [vmem:[%s13396_s26 + $0x184] ss:$16 sps:$4 sm:$0xff]   ;;  %v11274_v53 = vld [vmem:[%s13396_s26 + $0x188] ss:$16 sps:$4 sm:$0xff]   ;;  %p12980_p10 = scmp.lt.s32.totalorder %s9622_s23, %s9622_s23 }
 0x293   : > { %7966 = vmatpush1.bf16.msra.mxu0 %v11225_v12  ;;  %8622 = vmatpush1.bf16.msra.mxu1 %v11226_v13  ;;  %v11273_v51 = vld [vmem:[%s13396_s26 + $0x180] ss:$16 sps:$4 sm:$0xff]   ;;  %v11275_v54 = vld [vmem:[%s13396_s26 + $0x1a4] ss:$16 sps:$4 sm:$0xff]   ;;  %v11277_v55 = vld [vmem:[%s13396_s26 + $0x1ac] ss:$16 sps:$4 sm:$0xff]  }
 0x294   : > { %7967 = vmatprep.subr.bf16.mxu0 %v11227_v2  ;;  %8623 = vmatprep.subr.bf16.mxu1 %v11229_v5  ;;  %v2616_v46 = vrot.slane %v13528_v44, %v13524_v41  ;;  %v11279_v56 = vld [vmem:[%s13396_s26 + $0x1a0] ss:$16 sps:$4 sm:$0xff]   ;;  %v11280_v57 = vld [vmem:[%s13396_s26 + $0x1a8] ss:$16 sps:$4 sm:$0xff]   ;;  %v11281_v6 = vld [vmem:[%s13396_s26 + $0x1c4] ss:$16 sps:$4 sm:$0xff]  }
 0x295   : > { %v11283_v58 = vld [vmem:[%s13396_s26 + $0x1cc] ss:$16 sps:$4 sm:$0xff]   ;;  %v11285_v59 = vld [vmem:[%s13396_s26 + $0x1c0] ss:$16 sps:$4 sm:$0xff]   ;;  %v11286_v60 = vld [vmem:[%s13396_s26 + $0x1c8] ss:$16 sps:$4 sm:$0xff]  }
 0x296   : > { %v2624_v50 = vcombine.high %v2616_v46, %v2616_v46  ;;  %v11287_v61 = vld [vmem:[%s13396_s26 + $0x1e4] ss:$16 sps:$4 sm:$0xff]   ;;  %v11289_v62 = vld [vmem:[%s13396_s26 + $0x1ec] ss:$16 sps:$4 sm:$0xff]   ;;  %v11291_v63 = vld [vmem:[%s13396_s26 + $0x1e0] ss:$16 sps:$4 sm:$0xff]   ;;  %v13555_v7 = vrot.slane %v2616_v46, %v13524_v41 }
 0x297   : > { %7968 = vmatpush1.bf16.msra.mxu0 %v11231_v14  ;;  %8624 = vmatpush1.bf16.msra.mxu1 %v11232_v15  ;;  %v11292_v0 = vld [vmem:[%s13396_s26 + $0x1e8] ss:$16 sps:$4 sm:$0xff]   ;;  %v11295_v3 = vld [vmem:[%s13396_s26 + $0x204] ss:$16 sps:$4 sm:$0xff]   ;;  %v11298_v4 = vld [vmem:[%s13396_s26 + $0x20c] ss:$16 sps:$4 sm:$0xff]  }
 0x298   : > { %7969 = vmatprep.subr.bf16.mxu0 %v11233_v16  ;;  %8625 = vmatprep.subr.bf16.mxu1 %v11235_v17  ;;  %v2646_v52 = vrot.slane %v2624_v50, %v13524_v41  ;;  %v11293_v1 = vld [vmem:[%s13396_s26 + $0x200] ss:$16 sps:$4 sm:$0xff]   ;;  %v11296_v8 = vld [vmem:[%s13396_s26 + $0x208] ss:$16 sps:$4 sm:$0xff]   ;;  %v11301_v9 = vld [vmem:[%s13396_s26 + $0x224] ss:$16 sps:$4 sm:$0xff]  }
 0x299   : > { %v11304_v10 = vld [vmem:[%s13396_s26 + $0x22c] ss:$16 sps:$4 sm:$0xff]   ;;  %v11299_v12 = vld [vmem:[%s13396_s26 + $0x220] ss:$16 sps:$4 sm:$0xff]   ;;  %v11302_v13 = vld [vmem:[%s13396_s26 + $0x228] ss:$16 sps:$4 sm:$0xff]  }
 0x29a   : > { %7989 = vmatprep.mubr.bf16.mxu0 %v2646_v52  ;;  %8645 = vmatprep.mubr.bf16.mxu1 %v2646_v52  ;;  %v2656_v11 = vcombine.high %v2646_v52, %v2646_v52  ;;  %v11307_v2 = vld [vmem:[%s13396_s26 + $0x244] ss:$16 sps:$4 sm:$0xff]   ;;  %v11310_v5 = vld [vmem:[%s13396_s26 + $0x24c] ss:$16 sps:$4 sm:$0xff]   ;;  %v11305_v14 = vld [vmem:[%s13396_s26 + $0x240] ss:$16 sps:$4 sm:$0xff]  }
 0x29b   : > { %7970 = vmatpush1.bf16.msra.mxu0 %v11237_v18  ;;  %8626 = vmatpush1.bf16.msra.mxu1 %v11238_v19  ;;  %v11308_v15 = vld [vmem:[%s13396_s26 + $0x248] ss:$16 sps:$4 sm:$0xff]   ;;  %v11313_v16 = vld [vmem:[%s13396_s26 + $0x264] ss:$16 sps:$4 sm:$0xff]   ;;  %v11316_v17 = vld [vmem:[%s13396_s26 + $0x26c] ss:$16 sps:$4 sm:$0xff]  }
 0x29c   : > { %7971 = vmatprep.subr.bf16.mxu0 %v11239_v20  ;;  %8627 = vmatprep.subr.bf16.mxu1 %v11241_v21  ;;  %v11311_v18 = vld [vmem:[%s13396_s26 + $0x260] ss:$16 sps:$4 sm:$0xff]   ;;  %v11314_v19 = vld [vmem:[%s13396_s26 + $0x268] ss:$16 sps:$4 sm:$0xff]   ;;  %v11319_v20 = vld [vmem:[%s13396_s26 + $0x284] ss:$16 sps:$4 sm:$0xff]  }
 0x29d   : > { %v11322_v21 = vld [vmem:[%s13396_s26 + $0x28c] ss:$16 sps:$4 sm:$0xff]   ;;  %v11331_v28 = vld [vmem:[%s13396_s26 + $0x2c4] ss:$16 sps:$4 sm:$0xff]   ;;  %v11329_v30 = vld [vmem:[%s13396_s26 + $0x2c0] ss:$16 sps:$4 sm:$0xff]  }
 0x29e   : > { %v11334_v29 = vld [vmem:[%s13396_s26 + $0x2cc] ss:$16 sps:$4 sm:$0xff]   ;;  %v11335_v35 = vld [vmem:[%s13396_s26 + $0x2e0] ss:$16 sps:$4 sm:$0xff]   ;;  %v11350_v46 = vld [vmem:[%s13396_s26 + $0x328] ss:$16 sps:$4 sm:$0xff]  }
 0x29f   : > { %7972 = vmatpush1.bf16.msra.mxu0 %v11243_v22  ;;  %8628 = vmatpush1.bf16.msra.mxu1 %v11244_v23  ;;  %v11317_v22 = vld [vmem:[%s13396_s26 + $0x280] ss:$16 sps:$4 sm:$0xff]   ;;  %v11320_v23 = vld [vmem:[%s13396_s26 + $0x288] ss:$16 sps:$4 sm:$0xff]   ;;  %v11364_v52 = vld [vmem:[%s13396_s26 + $0x36c] ss:$16 sps:$4 sm:$0xff]  }
 0x2a0   : > { %7973 = vmatprep.subr.bf16.mxu0 %v11245_v25  ;;  %8629 = vmatprep.subr.bf16.mxu1 %v11247_v26  ;;  %v11325_v25 = vld [vmem:[%s13396_s26 + $0x2a4] ss:$16 sps:$4 sm:$0xff]   ;;  %v11328_v26 = vld [vmem:[%s13396_s26 + $0x2ac] ss:$16 sps:$4 sm:$0xff]   ;;  %v11356_v50 = vld [vmem:[%s13396_s26 + $0x348] ss:$16 sps:$4 sm:$0xff]  }
 0x2a1   : > { %p11120_p9 = scmp.eq.s32.totalorder %s13154_s30, 3  ;;  %s12973_s29 = scalar_lea.vmem %s9622_s23, 32 }
 0x2a2   : > { %p12974_p13 = scmp.ne.s32.totalorder %s9622_s23, %s12973_s29  ;;  %p12981_p11 = scmp.lt.s32.totalorder %s12973_s29, %s12973_s29 }
 0x2a3   : > { %7974 = vmatpush1.bf16.msra.mxu0 %v11249_v27  ;;  %8630 = vmatpush1.bf16.msra.mxu1 %v11250_v24  ;;  %v11323_v27 = vld [vmem:[%s13396_s26 + $0x2a0] ss:$16 sps:$4 sm:$0xff]   ;;  %v11326_v24 = vld [vmem:[%s13396_s26 + $0x2a8] ss:$16 sps:$4 sm:$0xff]  }
 0x2a4   : > { %7975 = vmatprep.subr.bf16.mxu0 %v11251_v31  ;;  %8631 = vmatprep.subr.bf16.mxu1 %v11253_v32  ;;  %v11332_v31 = vld [vmem:[%s13396_s26 + $0x2c8] ss:$16 sps:$4 sm:$0xff]   ;;  %v11337_v32 = vld [vmem:[%s13396_s26 + $0x2e4] ss:$16 sps:$4 sm:$0xff]   ;;  %p12975_p7 = pnand %p12974_p13, %p11120_p9  ;;  %p12982_p3 = por %p12981_p11, %p12980_p10 }
 0x2a6   : > { %p12976_p0 = pneg %p12975_p7 }
 0x2a7   : > { %7976 = vmatpush1.bf16.msra.mxu0 %v11255_v33  ;;  %8632 = vmatpush1.bf16.msra.mxu1 %v11256_v36  ;;  %v11340_v33 = vld [vmem:[%s13396_s26 + $0x2ec] ss:$16 sps:$4 sm:$0xff]   ;;  %v11338_v36 = vld [vmem:[%s13396_s26 + $0x2e8] ss:$16 sps:$4 sm:$0xff]  }
 0x2a8   : > { %7977 = vmatprep.subr.bf16.mxu0 %v11257_v37  ;;  %8633 = vmatprep.subr.bf16.mxu1 %v11259_v38  ;;  %v11343_v37 = vld [vmem:[%s13396_s26 + $0x304] ss:$16 sps:$4 sm:$0xff]   ;;  %v11346_v38 = vld [vmem:[%s13396_s26 + $0x30c] ss:$16 sps:$4 sm:$0xff]   ;;  %p12983_p6 = pnand %p12982_p3, %p12976_p0 }
 0x2ab   : > { %7978 = vmatpush1.bf16.msra.mxu0 %v11261_v39  ;;  %8634 = vmatpush1.bf16.msra.mxu1 %v11262_v40  ;;  %v11341_v39 = vld [vmem:[%s13396_s26 + $0x300] ss:$16 sps:$4 sm:$0xff]   ;;  %v11344_v40 = vld [vmem:[%s13396_s26 + $0x308] ss:$16 sps:$4 sm:$0xff]  }
 0x2ac   : > { %7979 = vmatprep.subr.bf16.mxu0 %v11263_v42  ;;  %8635 = vmatprep.subr.bf16.mxu1 %v11265_v43  ;;  %v11349_v42 = vld [vmem:[%s13396_s26 + $0x324] ss:$16 sps:$4 sm:$0xff]   ;;  %v11352_v43 = vld [vmem:[%s13396_s26 + $0x32c] ss:$16 sps:$4 sm:$0xff]  }
 0x2af   : > { %7980 = vmatpush1.bf16.msra.mxu0 %v11267_v45  ;;  %8636 = vmatpush1.bf16.msra.mxu1 %v11268_v47  ;;  %v11347_v45 = vld [vmem:[%s13396_s26 + $0x320] ss:$16 sps:$4 sm:$0xff]   ;;  %v11355_v47 = vld [vmem:[%s13396_s26 + $0x344] ss:$16 sps:$4 sm:$0xff]  }
 0x2b0   : > { %7981 = vmatprep.subr.bf16.mxu0 %v11269_v48  ;;  %8637 = vmatprep.subr.bf16.mxu1 %v11271_v49  ;;  %v11358_v48 = vld [vmem:[%s13396_s26 + $0x34c] ss:$16 sps:$4 sm:$0xff]   ;;  %v11353_v49 = vld [vmem:[%s13396_s26 + $0x340] ss:$16 sps:$4 sm:$0xff]  }
 0x2b3   : > { %7982 = vmatpush1.bf16.msra.mxu0 %v11273_v51  ;;  %8638 = vmatpush1.bf16.msra.mxu1 %v11274_v53  ;;  %v11361_v51 = vld [vmem:[%s13396_s26 + $0x364] ss:$16 sps:$4 sm:$0xff]   ;;  %v11359_v53 = vld [vmem:[%s13396_s26 + $0x360] ss:$16 sps:$4 sm:$0xff]  }
 0x2b4   : > { %7983 = vmatprep.subr.bf16.mxu0 %v11275_v54  ;;  %8639 = vmatprep.subr.bf16.mxu1 %v11277_v55  ;;  %v11362_v54 = vld [vmem:[%s13396_s26 + $0x368] ss:$16 sps:$4 sm:$0xff]   ;;  %v11367_v55 = vld [vmem:[%s13396_s26 + $0x384] ss:$16 sps:$4 sm:$0xff]  }
 0x2b7   : > { %7984 = vmatpush1.bf16.msra.mxu0 %v11279_v56  ;;  %8640 = vmatpush1.bf16.msra.mxu1 %v11280_v57  ;;  %v11370_v56 = vld [vmem:[%s13396_s26 + $0x38c] ss:$16 sps:$4 sm:$0xff]   ;;  %v11365_v57 = vld [vmem:[%s13396_s26 + $0x380] ss:$16 sps:$4 sm:$0xff]  }
 0x2b8   : > { %7985 = vmatprep.subr.bf16.mxu0 %v11281_v6  ;;  %8641 = vmatprep.subr.bf16.mxu1 %v11283_v58  ;;  %v11368_v6 = vld [vmem:[%s13396_s26 + $0x388] ss:$16 sps:$4 sm:$0xff]   ;;  %v11373_v58 = vld [vmem:[%s13396_s26 + $0x3a4] ss:$16 sps:$4 sm:$0xff]  }
 0x2bb   : > { %7986 = vmatpush1.bf16.msra.mxu0 %v11285_v59  ;;  %8642 = vmatpush1.bf16.msra.mxu1 %v11286_v60  ;;  %v11376_v59 = vld [vmem:[%s13396_s26 + $0x3ac] ss:$16 sps:$4 sm:$0xff]   ;;  %v11371_v60 = vld [vmem:[%s13396_s26 + $0x3a0] ss:$16 sps:$4 sm:$0xff]  }
 0x2bc   : > { %7987 = vmatprep.subr.bf16.mxu0 %v11287_v61  ;;  %8643 = vmatprep.subr.bf16.mxu1 %v11289_v62  ;;  %v11374_v61 = vld [vmem:[%s13396_s26 + $0x3a8] ss:$16 sps:$4 sm:$0xff]   ;;  %v11379_v62 = vld [vmem:[%s13396_s26 + $0x3c4] ss:$16 sps:$4 sm:$0xff]  }
 0x2bf   : > { %7988 = vmatpush1.bf16.msra.mxu0 %v11291_v63  ;;  %8644 = vmatpush1.bf16.msra.mxu1 %v11292_v0  ;;  %v11382_v63 = vld [vmem:[%s13396_s26 + $0x3cc] ss:$16 sps:$4 sm:$0xff]   ;;  %v2609_v0 = vcombine.high %v13528_v44, %v13528_v44  ;;  %v11386_v44 = vld [vmem:[%s13396_s26 + $0x3e8] ss:$16 sps:$4 sm:$0xff]  }
 0x2c0   : > { %7998 = vmatprep.subr.bf16.mxu0 %v11295_v3  ;;  %8654 = vmatprep.subr.bf16.mxu1 %v11298_v4  ;;  %v11377_v3 = vld [vmem:[%s13396_s26 + $0x3c0] ss:$16 sps:$4 sm:$0xff]   ;;  %v11380_v4 = vld [vmem:[%s13396_s26 + $0x3c8] ss:$16 sps:$4 sm:$0xff]  }
 0x2c2   : > { %7990 = vmatmul.mubr.bf16.vlgmr.msra.gmra.mrb[0].mxu0 %v13555_v7  ;;  %8646 = vmatmul.mubr.bf16.vlgmr.msra.gmra.mrb[0].mxu1 %v13555_v7 }
 0x2c3   : > { %7999 = vmatpush1.bf16.msra.mxu0 %v11293_v1  ;;  %8655 = vmatpush1.bf16.msra.mxu1 %v11296_v8  ;;  %v11385_v1 = vld [vmem:[%s13396_s26 + $0x3e4] ss:$16 sps:$4 sm:$0xff]   ;;  %v11388_v8 = vld [vmem:[%s13396_s26 + $0x3ec] ss:$16 sps:$4 sm:$0xff]  }
 0x2c4   : > { %8000 = vmatprep.subr.bf16.mxu0 %v11301_v9  ;;  %8656 = vmatprep.subr.bf16.mxu1 %v11304_v10  ;;  %v13621_v9 = vrot.slane %v2609_v0, %v13524_v41  ;;  %v11383_v10 = vld [vmem:[%s13396_s26 + $0x3e0] ss:$16 sps:$4 sm:$0xff]   ;;  %v11464_v0 = vld [vmem:[%s13396_s26 + $0x588] ss:$16 sps:$4 sm:$0xff]  }
 0x2c5   : > { %8030 = vmatprep.mubr.bf16.mxu0 %v2656_v11  ;;  %8686 = vmatprep.mubr.bf16.mxu1 %v2656_v11  ;;  %v11391_v11 = vld [vmem:[%s13396_s26 + $0x404] ss:$16 sps:$4 sm:$0xff]  }
 0x2c7   : > { %8001 = vmatpush1.bf16.msra.mxu0 %v11299_v12  ;;  %8657 = vmatpush1.bf16.msra.mxu1 %v11302_v13  ;;  %v11394_v12 = vld [vmem:[%s13396_s26 + $0x40c] ss:$16 sps:$4 sm:$0xff]   ;;  %v2625_v13 = vcombine.high %v13621_v9, %v13621_v9 }
 0x2c8   : > { %8002 = vmatprep.subr.bf16.mxu0 %v11307_v2  ;;  %8658 = vmatprep.subr.bf16.mxu1 %v11310_v5  ;;  %v11389_v2 = vld [vmem:[%s13396_s26 + $0x400] ss:$16 sps:$4 sm:$0xff]   ;;  %v2654_v5 = vcombine.high %v13555_v7, %v13555_v7  ;;  %v11398_v7 = vld [vmem:[%s13396_s26 + $0x428] ss:$16 sps:$4 sm:$0xff]  }
 0x2cb   : > { %8003 = vmatpush1.bf16.msra.mxu0 %v11305_v14  ;;  %8659 = vmatpush1.bf16.msra.mxu1 %v11308_v15  ;;  %v11392_v14 = vld [vmem:[%s13396_s26 + $0x408] ss:$16 sps:$4 sm:$0xff]   ;;  %v11397_v15 = vld [vmem:[%s13396_s26 + $0x424] ss:$16 sps:$4 sm:$0xff]  }
 0x2cc   : > { %8004 = vmatprep.subr.bf16.mxu0 %v11313_v16  ;;  %8660 = vmatprep.subr.bf16.mxu1 %v11316_v17  ;;  %v11400_v16 = vld [vmem:[%s13396_s26 + $0x42c] ss:$16 sps:$4 sm:$0xff]   ;;  %v13636_v17 = vrot.slane %v2625_v13, %v13524_v41  ;;  %v11481_v13 = vld [vmem:[%s13396_s26 + $0x5e4] ss:$16 sps:$4 sm:$0xff]  }
 0x2cf   : > { %8005 = vmatpush1.bf16.msra.mxu0 %v11311_v18  ;;  %8661 = vmatpush1.bf16.msra.mxu1 %v11314_v19  ;;  %v11395_v18 = vld [vmem:[%s13396_s26 + $0x420] ss:$16 sps:$4 sm:$0xff]   ;;  %v11403_v19 = vld [vmem:[%s13396_s26 + $0x444] ss:$16 sps:$4 sm:$0xff]  }
 0x2d0   : > { %8006 = vmatprep.subr.bf16.mxu0 %v11319_v20  ;;  %8662 = vmatprep.subr.bf16.mxu1 %v11322_v21  ;;  %v11406_v20 = vld [vmem:[%s13396_s26 + $0x44c] ss:$16 sps:$4 sm:$0xff]   ;;  %v11401_v21 = vld [vmem:[%s13396_s26 + $0x440] ss:$16 sps:$4 sm:$0xff]  }
 0x2d3   : > { %8007 = vmatpush1.bf16.msra.mxu0 %v11317_v22  ;;  %8663 = vmatpush1.bf16.msra.mxu1 %v11320_v23  ;;  %v11404_v22 = vld [vmem:[%s13396_s26 + $0x448] ss:$16 sps:$4 sm:$0xff]   ;;  %v11409_v23 = vld [vmem:[%s13396_s26 + $0x464] ss:$16 sps:$4 sm:$0xff]  }
 0x2d4   : > { %8008 = vmatprep.subr.bf16.mxu0 %v11325_v25  ;;  %8664 = vmatprep.subr.bf16.mxu1 %v11328_v26  ;;  %v11412_v25 = vld [vmem:[%s13396_s26 + $0x46c] ss:$16 sps:$4 sm:$0xff]   ;;  %v11407_v26 = vld [vmem:[%s13396_s26 + $0x460] ss:$16 sps:$4 sm:$0xff]  }
 0x2d7   : > { %8009 = vmatpush1.bf16.msra.mxu0 %v11323_v27  ;;  %8665 = vmatpush1.bf16.msra.mxu1 %v11326_v24  ;;  %v11410_v27 = vld [vmem:[%s13396_s26 + $0x468] ss:$16 sps:$4 sm:$0xff]   ;;  %v11415_v24 = vld [vmem:[%s13396_s26 + $0x484] ss:$16 sps:$4 sm:$0xff]  }
 0x2d8   : > { %8010 = vmatprep.subr.bf16.mxu0 %v11331_v28  ;;  %8666 = vmatprep.subr.bf16.mxu1 %v11334_v29  ;;  %v11418_v28 = vld [vmem:[%s13396_s26 + $0x48c] ss:$16 sps:$4 sm:$0xff]   ;;  %v11413_v29 = vld [vmem:[%s13396_s26 + $0x480] ss:$16 sps:$4 sm:$0xff]  }
 0x2db   : > { %8011 = vmatpush1.bf16.msra.mxu0 %v11329_v30  ;;  %8667 = vmatpush1.bf16.msra.mxu1 %v11332_v31  ;;  %v11416_v30 = vld [vmem:[%s13396_s26 + $0x488] ss:$16 sps:$4 sm:$0xff]   ;;  %v11421_v31 = vld [vmem:[%s13396_s26 + $0x4a4] ss:$16 sps:$4 sm:$0xff]  }
 0x2dc   : > { %8012 = vmatprep.subr.bf16.mxu0 %v11337_v32  ;;  %8668 = vmatprep.subr.bf16.mxu1 %v11340_v33  ;;  %v11424_v32 = vld [vmem:[%s13396_s26 + $0x4ac] ss:$16 sps:$4 sm:$0xff]   ;;  %v11419_v33 = vld [vmem:[%s13396_s26 + $0x4a0] ss:$16 sps:$4 sm:$0xff]  }
 0x2df   : > { %8013 = vmatpush1.bf16.msra.mxu0 %v11335_v35  ;;  %8669 = vmatpush1.bf16.msra.mxu1 %v11338_v36  ;;  %v11422_v35 = vld [vmem:[%s13396_s26 + $0x4a8] ss:$16 sps:$4 sm:$0xff]   ;;  %v11427_v36 = vld [vmem:[%s13396_s26 + $0x4c4] ss:$16 sps:$4 sm:$0xff]  }
 0x2e0   : > { %8014 = vmatprep.subr.bf16.mxu0 %v11343_v37  ;;  %8670 = vmatprep.subr.bf16.mxu1 %v11346_v38  ;;  %v11430_v37 = vld [vmem:[%s13396_s26 + $0x4cc] ss:$16 sps:$4 sm:$0xff]   ;;  %v11425_v38 = vld [vmem:[%s13396_s26 + $0x4c0] ss:$16 sps:$4 sm:$0xff]  }
 0x2e3   : > { %8015 = vmatpush1.bf16.msra.mxu0 %v11341_v39  ;;  %8671 = vmatpush1.bf16.msra.mxu1 %v11344_v40  ;;  %v11428_v39 = vld [vmem:[%s13396_s26 + $0x4c8] ss:$16 sps:$4 sm:$0xff]   ;;  %v11433_v40 = vld [vmem:[%s13396_s26 + $0x4e4] ss:$16 sps:$4 sm:$0xff]  }
 0x2e4   : > { %8016 = vmatprep.subr.bf16.mxu0 %v11349_v42  ;;  %8672 = vmatprep.subr.bf16.mxu1 %v11352_v43  ;;  %v11436_v42 = vld [vmem:[%s13396_s26 + $0x4ec] ss:$16 sps:$4 sm:$0xff]   ;;  %v11431_v43 = vld [vmem:[%s13396_s26 + $0x4e0] ss:$16 sps:$4 sm:$0xff]  }
 0x2e7   : > { %8017 = vmatpush1.bf16.msra.mxu0 %v11347_v45  ;;  %8673 = vmatpush1.bf16.msra.mxu1 %v11350_v46  ;;  %v11434_v45 = vld [vmem:[%s13396_s26 + $0x4e8] ss:$16 sps:$4 sm:$0xff]   ;;  %v11439_v46 = vld [vmem:[%s13396_s26 + $0x504] ss:$16 sps:$4 sm:$0xff]  }
 0x2e8   : > { %8018 = vmatprep.subr.bf16.mxu0 %v11355_v47  ;;  %8674 = vmatprep.subr.bf16.mxu1 %v11358_v48  ;;  %v11442_v47 = vld [vmem:[%s13396_s26 + $0x50c] ss:$16 sps:$4 sm:$0xff]   ;;  %v11437_v48 = vld [vmem:[%s13396_s26 + $0x500] ss:$16 sps:$4 sm:$0xff]  }
 0x2eb   : > { %8019 = vmatpush1.bf16.msra.mxu0 %v11353_v49  ;;  %8675 = vmatpush1.bf16.msra.mxu1 %v11356_v50  ;;  %v11440_v49 = vld [vmem:[%s13396_s26 + $0x508] ss:$16 sps:$4 sm:$0xff]   ;;  %v11445_v50 = vld [vmem:[%s13396_s26 + $0x524] ss:$16 sps:$4 sm:$0xff]  }
 0x2ec   : > { %8020 = vmatprep.subr.bf16.mxu0 %v11361_v51  ;;  %8676 = vmatprep.subr.bf16.mxu1 %v11364_v52  ;;  %v11448_v51 = vld [vmem:[%s13396_s26 + $0x52c] ss:$16 sps:$4 sm:$0xff]   ;;  %v11443_v52 = vld [vmem:[%s13396_s26 + $0x520] ss:$16 sps:$4 sm:$0xff]  }
 0x2ef   : > { %8021 = vmatpush1.bf16.msra.mxu0 %v11359_v53  ;;  %8677 = vmatpush1.bf16.msra.mxu1 %v11362_v54  ;;  %v11446_v53 = vld [vmem:[%s13396_s26 + $0x528] ss:$16 sps:$4 sm:$0xff]   ;;  %v11451_v54 = vld [vmem:[%s13396_s26 + $0x544] ss:$16 sps:$4 sm:$0xff]  }
 0x2f0   : > { %8022 = vmatprep.subr.bf16.mxu0 %v11367_v55  ;;  %8678 = vmatprep.subr.bf16.mxu1 %v11370_v56  ;;  %v11454_v55 = vld [vmem:[%s13396_s26 + $0x54c] ss:$16 sps:$4 sm:$0xff]   ;;  %v11449_v56 = vld [vmem:[%s13396_s26 + $0x540] ss:$16 sps:$4 sm:$0xff]  }
 0x2f3   : > { %8023 = vmatpush1.bf16.msra.mxu0 %v11365_v57  ;;  %8679 = vmatpush1.bf16.msra.mxu1 %v11368_v6  ;;  %v11452_v57 = vld [vmem:[%s13396_s26 + $0x548] ss:$16 sps:$4 sm:$0xff]   ;;  %v11457_v6 = vld [vmem:[%s13396_s26 + $0x564] ss:$16 sps:$4 sm:$0xff]  }
 0x2f4   : > { %8024 = vmatprep.subr.bf16.mxu0 %v11373_v58  ;;  %8680 = vmatprep.subr.bf16.mxu1 %v11376_v59  ;;  %v11460_v58 = vld [vmem:[%s13396_s26 + $0x56c] ss:$16 sps:$4 sm:$0xff]   ;;  %v11455_v59 = vld [vmem:[%s13396_s26 + $0x560] ss:$16 sps:$4 sm:$0xff]  }
 0x2f7   : > { %8025 = vmatpush1.bf16.msra.mxu0 %v11371_v60  ;;  %8681 = vmatpush1.bf16.msra.mxu1 %v11374_v61  ;;  %v11458_v60 = vld [vmem:[%s13396_s26 + $0x568] ss:$16 sps:$4 sm:$0xff]   ;;  %v11463_v61 = vld [vmem:[%s13396_s26 + $0x584] ss:$16 sps:$4 sm:$0xff]  }
 0x2f8   : > { %8026 = vmatprep.subr.bf16.mxu0 %v11379_v62  ;;  %8682 = vmatprep.subr.bf16.mxu1 %v11382_v63  ;;  %v11466_v62 = vld [vmem:[%s13396_s26 + $0x58c] ss:$16 sps:$4 sm:$0xff]   ;;  %v11461_v63 = vld [vmem:[%s13396_s26 + $0x580] ss:$16 sps:$4 sm:$0xff]  }
 0x2fb   : > { %8027 = vmatpush1.bf16.msra.mxu0 %v11377_v3  ;;  %8683 = vmatpush1.bf16.msra.mxu1 %v11380_v4  ;;  %v11469_v3 = vld [vmem:[%s13396_s26 + $0x5a4] ss:$16 sps:$4 sm:$0xff]   ;;  %v11472_v4 = vld [vmem:[%s13396_s26 + $0x5ac] ss:$16 sps:$4 sm:$0xff]  }
 0x2fc   : > { %8028 = vmatprep.subr.bf16.mxu0 %v11385_v1  ;;  %8684 = vmatprep.subr.bf16.mxu1 %v11388_v8  ;;  %v11467_v1 = vld [vmem:[%s13396_s26 + $0x5a0] ss:$16 sps:$4 sm:$0xff]   ;;  %v11470_v8 = vld [vmem:[%s13396_s26 + $0x5a8] ss:$16 sps:$4 sm:$0xff]  }
 0x2ff   : > { %8029 = vmatpush1.bf16.msra.mxu0 %v11383_v10  ;;  %8685 = vmatpush1.bf16.msra.mxu1 %v11386_v44  ;;  %v11475_v10 = vld [vmem:[%s13396_s26 + $0x5c4] ss:$16 sps:$4 sm:$0xff]   ;;  %v11478_v44 = vld [vmem:[%s13396_s26 + $0x5cc] ss:$16 sps:$4 sm:$0xff]  }
 0x300   : > { %8039 = vmatprep.subr.bf16.mxu0 %v11391_v11  ;;  %8695 = vmatprep.subr.bf16.mxu1 %v11394_v12  ;;  %v11473_v11 = vld [vmem:[%s13396_s26 + $0x5c0] ss:$16 sps:$4 sm:$0xff]   ;;  %v11476_v12 = vld [vmem:[%s13396_s26 + $0x5c8] ss:$16 sps:$4 sm:$0xff]  }
 0x302   : > { %8031 = vmatmul.mubr.bf16.vlgmr.msra.gmra.mrb[0].mxu0 %v2654_v5  ;;  %8687 = vmatmul.mubr.bf16.vlgmr.msra.gmra.mrb[0].mxu1 %v2654_v5  ;;  %v11479_v5 = vld [vmem:[%s13396_s26 + $0x5e0] ss:$16 sps:$4 sm:$0xff]  }
 0x303   : > { %8040 = vmatpush1.bf16.msra.mxu0 %v11389_v2  ;;  %8696 = vmatpush1.bf16.msra.mxu1 %v11392_v14  ;;  %v11484_v2 = vld [vmem:[%s13396_s26 + $0x5ec] ss:$16 sps:$4 sm:$0xff]   ;;  %v11482_v14 = vld [vmem:[%s13396_s26 + $0x5e8] ss:$16 sps:$4 sm:$0xff]  }
 0x304   : > { %8041 = vmatprep.subr.bf16.mxu0 %v11397_v15  ;;  %8697 = vmatprep.subr.bf16.mxu1 %v11400_v16  ;;  %v11488_v15 = vld [vmem:[%s13396_s26 + $0x604] ss:$16 sps:$4 sm:$0xff]   ;;  %v11491_v16 = vld [vmem:[%s13396_s26 + $0x60c] ss:$16 sps:$4 sm:$0xff]  }
 0x305   : > { %8071 = vmatprep.mubr.bf16.mxu0 %v13636_v17  ;;  %8727 = vmatprep.mubr.bf16.mxu1 %v13636_v17 }
 0x307   : > { %8042 = vmatpush1.bf16.msra.mxu0 %v11395_v18  ;;  %8698 = vmatpush1.bf16.msra.mxu1 %v11398_v7  ;;  %v11486_v18 = vld [vmem:[%s13396_s26 + $0x600] ss:$16 sps:$4 sm:$0xff]   ;;  %v13703_v7 = vrot.slane %v13621_v9, %v13524_v41 }
 0x308   : > { %8043 = vmatprep.subr.bf16.mxu0 %v11403_v19  ;;  %8699 = vmatprep.subr.bf16.mxu1 %v11406_v20  ;;  %v11489_v19 = vld [vmem:[%s13396_s26 + $0x608] ss:$16 sps:$4 sm:$0xff]   ;;  %v11494_v20 = vld [vmem:[%s13396_s26 + $0x624] ss:$16 sps:$4 sm:$0xff]   ;;  %v11492_v9 = vld [vmem:[%s13396_s26 + $0x620] ss:$16 sps:$4 sm:$0xff]  }
 0x30b   : > { %8044 = vmatpush1.bf16.msra.mxu0 %v11401_v21  ;;  %8700 = vmatpush1.bf16.msra.mxu1 %v11404_v22  ;;  %v11497_v21 = vld [vmem:[%s13396_s26 + $0x62c] ss:$16 sps:$4 sm:$0xff]   ;;  %v2657_v22 = vcombine.high %v13636_v17, %v13636_v17  ;;  %v11498_v17 = vld [vmem:[%s13396_s26 + $0x640] ss:$16 sps:$4 sm:$0xff]  }
 0x30c   : > { %8045 = vmatprep.subr.bf16.mxu0 %v11409_v23  ;;  %8701 = vmatprep.subr.bf16.mxu1 %v11412_v25  ;;  %v11495_v23 = vld [vmem:[%s13396_s26 + $0x628] ss:$16 sps:$4 sm:$0xff]   ;;  %v11500_v25 = vld [vmem:[%s13396_s26 + $0x644] ss:$16 sps:$4 sm:$0xff]  }
 0x30f   : > { %8046 = vmatpush1.bf16.msra.mxu0 %v11407_v26  ;;  %8702 = vmatpush1.bf16.msra.mxu1 %v11410_v27  ;;  %v11503_v26 = vld [vmem:[%s13396_s26 + $0x64c] ss:$16 sps:$4 sm:$0xff]   ;;  %v11501_v27 = vld [vmem:[%s13396_s26 + $0x648] ss:$16 sps:$4 sm:$0xff]  }
 0x310   : > { %8047 = vmatprep.subr.bf16.mxu0 %v11415_v24  ;;  %8703 = vmatprep.subr.bf16.mxu1 %v11418_v28  ;;  %v11506_v24 = vld [vmem:[%s13396_s26 + $0x664] ss:$16 sps:$4 sm:$0xff]   ;;  %v11509_v28 = vld [vmem:[%s13396_s26 + $0x66c] ss:$16 sps:$4 sm:$0xff]  }
 0x313   : > { %8048 = vmatpush1.bf16.msra.mxu0 %v11413_v29  ;;  %8704 = vmatpush1.bf16.msra.mxu1 %v11416_v30  ;;  %v11504_v29 = vld [vmem:[%s13396_s26 + $0x660] ss:$16 sps:$4 sm:$0xff]   ;;  %v11507_v30 = vld [vmem:[%s13396_s26 + $0x668] ss:$16 sps:$4 sm:$0xff]  }
 0x314   : > { %8049 = vmatprep.subr.bf16.mxu0 %v11421_v31  ;;  %8705 = vmatprep.subr.bf16.mxu1 %v11424_v32  ;;  %v11512_v31 = vld [vmem:[%s13396_s26 + $0x684] ss:$16 sps:$4 sm:$0xff]   ;;  %v11515_v32 = vld [vmem:[%s13396_s26 + $0x68c] ss:$16 sps:$4 sm:$0xff]  }
 0x317   : > { %8050 = vmatpush1.bf16.msra.mxu0 %v11419_v33  ;;  %8706 = vmatpush1.bf16.msra.mxu1 %v11422_v35  ;;  %v11510_v33 = vld [vmem:[%s13396_s26 + $0x680] ss:$16 sps:$4 sm:$0xff]   ;;  %v11513_v35 = vld [vmem:[%s13396_s26 + $0x688] ss:$16 sps:$4 sm:$0xff]  }
 0x318   : > { %8051 = vmatprep.subr.bf16.mxu0 %v11427_v36  ;;  %8707 = vmatprep.subr.bf16.mxu1 %v11430_v37  ;;  %v11518_v36 = vld [vmem:[%s13396_s26 + $0x6a4] ss:$16 sps:$4 sm:$0xff]   ;;  %v11521_v37 = vld [vmem:[%s13396_s26 + $0x6ac] ss:$16 sps:$4 sm:$0xff]  }
 0x31b   : > { %8052 = vmatpush1.bf16.msra.mxu0 %v11425_v38  ;;  %8708 = vmatpush1.bf16.msra.mxu1 %v11428_v39  ;;  %v11516_v38 = vld [vmem:[%s13396_s26 + $0x6a0] ss:$16 sps:$4 sm:$0xff]   ;;  %v11519_v39 = vld [vmem:[%s13396_s26 + $0x6a8] ss:$16 sps:$4 sm:$0xff]  }
 0x31c   : > { %8053 = vmatprep.subr.bf16.mxu0 %v11433_v40  ;;  %8709 = vmatprep.subr.bf16.mxu1 %v11436_v42  ;;  %v11524_v40 = vld [vmem:[%s13396_s26 + $0x6c4] ss:$16 sps:$4 sm:$0xff]   ;;  %v11527_v42 = vld [vmem:[%s13396_s26 + $0x6cc] ss:$16 sps:$4 sm:$0xff]  }
 0x31f   : > { %8054 = vmatpush1.bf16.msra.mxu0 %v11431_v43  ;;  %8710 = vmatpush1.bf16.msra.mxu1 %v11434_v45  ;;  %v11522_v43 = vld [vmem:[%s13396_s26 + $0x6c0] ss:$16 sps:$4 sm:$0xff]   ;;  %v11525_v45 = vld [vmem:[%s13396_s26 + $0x6c8] ss:$16 sps:$4 sm:$0xff]  }
 0x320   : > { %8055 = vmatprep.subr.bf16.mxu0 %v11439_v46  ;;  %8711 = vmatprep.subr.bf16.mxu1 %v11442_v47  ;;  %v11530_v46 = vld [vmem:[%s13396_s26 + $0x6e4] ss:$16 sps:$4 sm:$0xff]   ;;  %v11533_v47 = vld [vmem:[%s13396_s26 + $0x6ec] ss:$16 sps:$4 sm:$0xff]  }
 0x323   : > { %8056 = vmatpush1.bf16.msra.mxu0 %v11437_v48  ;;  %8712 = vmatpush1.bf16.msra.mxu1 %v11440_v49  ;;  %v11528_v48 = vld [vmem:[%s13396_s26 + $0x6e0] ss:$16 sps:$4 sm:$0xff]   ;;  %v11531_v49 = vld [vmem:[%s13396_s26 + $0x6e8] ss:$16 sps:$4 sm:$0xff]  }
 0x324   : > { %8057 = vmatprep.subr.bf16.mxu0 %v11445_v50  ;;  %8713 = vmatprep.subr.bf16.mxu1 %v11448_v51  ;;  %v11536_v50 = vld [vmem:[%s13396_s26 + $0x704] ss:$16 sps:$4 sm:$0xff]   ;;  %v11539_v51 = vld [vmem:[%s13396_s26 + $0x70c] ss:$16 sps:$4 sm:$0xff]  }
 0x327   : > { %8058 = vmatpush1.bf16.msra.mxu0 %v11443_v52  ;;  %8714 = vmatpush1.bf16.msra.mxu1 %v11446_v53  ;;  %v11534_v52 = vld [vmem:[%s13396_s26 + $0x700] ss:$16 sps:$4 sm:$0xff]   ;;  %v11537_v53 = vld [vmem:[%s13396_s26 + $0x708] ss:$16 sps:$4 sm:$0xff]  }
 0x328   : > { %8059 = vmatprep.subr.bf16.mxu0 %v11451_v54  ;;  %8715 = vmatprep.subr.bf16.mxu1 %v11454_v55  ;;  %v11542_v54 = vld [vmem:[%s13396_s26 + $0x724] ss:$16 sps:$4 sm:$0xff]   ;;  %v11545_v55 = vld [vmem:[%s13396_s26 + $0x72c] ss:$16 sps:$4 sm:$0xff]  }
 0x32b   : > { %8060 = vmatpush1.bf16.msra.mxu0 %v11449_v56  ;;  %8716 = vmatpush1.bf16.msra.mxu1 %v11452_v57  ;;  %v11540_v56 = vld [vmem:[%s13396_s26 + $0x720] ss:$16 sps:$4 sm:$0xff]   ;;  %v11543_v57 = vld [vmem:[%s13396_s26 + $0x728] ss:$16 sps:$4 sm:$0xff]  }
 0x32c   : > { %8061 = vmatprep.subr.bf16.mxu0 %v11457_v6  ;;  %8717 = vmatprep.subr.bf16.mxu1 %v11460_v58  ;;  %v11548_v6 = vld [vmem:[%s13396_s26 + $0x744] ss:$16 sps:$4 sm:$0xff]   ;;  %v11551_v58 = vld [vmem:[%s13396_s26 + $0x74c] ss:$16 sps:$4 sm:$0xff]  }
 0x32f   : > { %8062 = vmatpush1.bf16.msra.mxu0 %v11455_v59  ;;  %8718 = vmatpush1.bf16.msra.mxu1 %v11458_v60  ;;  %v11546_v59 = vld [vmem:[%s13396_s26 + $0x740] ss:$16 sps:$4 sm:$0xff]   ;;  %v11549_v60 = vld [vmem:[%s13396_s26 + $0x748] ss:$16 sps:$4 sm:$0xff]  }
 0x330   : > { %8063 = vmatprep.subr.bf16.mxu0 %v11463_v61  ;;  %8719 = vmatprep.subr.bf16.mxu1 %v11466_v62  ;;  %v11554_v61 = vld [vmem:[%s13396_s26 + $0x764] ss:$16 sps:$4 sm:$0xff]   ;;  %v11557_v62 = vld [vmem:[%s13396_s26 + $0x76c] ss:$16 sps:$4 sm:$0xff]  }
 0x333   : > { %8064 = vmatpush1.bf16.msra.mxu0 %v11461_v63  ;;  %8720 = vmatpush1.bf16.msra.mxu1 %v11464_v0  ;;  %v11552_v63 = vld [vmem:[%s13396_s26 + $0x760] ss:$16 sps:$4 sm:$0xff]   ;;  %v11555_v0 = vld [vmem:[%s13396_s26 + $0x768] ss:$16 sps:$4 sm:$0xff]  }
 0x334   : > { %8065 = vmatprep.subr.bf16.mxu0 %v11469_v3  ;;  %8721 = vmatprep.subr.bf16.mxu1 %v11472_v4  ;;  %v11560_v3 = vld [vmem:[%s13396_s26 + $0x784] ss:$16 sps:$4 sm:$0xff]   ;;  %v11563_v4 = vld [vmem:[%s13396_s26 + $0x78c] ss:$16 sps:$4 sm:$0xff]  }
 0x337   : > { %8066 = vmatpush1.bf16.msra.mxu0 %v11467_v1  ;;  %8722 = vmatpush1.bf16.msra.mxu1 %v11470_v8  ;;  %v11558_v1 = vld [vmem:[%s13396_s26 + $0x780] ss:$16 sps:$4 sm:$0xff]   ;;  %v11561_v8 = vld [vmem:[%s13396_s26 + $0x788] ss:$16 sps:$4 sm:$0xff]  }
 0x338   : > { %8067 = vmatprep.subr.bf16.mxu0 %v11475_v10  ;;  %8723 = vmatprep.subr.bf16.mxu1 %v11478_v44  ;;  %v11566_v10 = vld [vmem:[%s13396_s26 + $0x7a4] ss:$16 sps:$4 sm:$0xff]   ;;  %v11569_v44 = vld [vmem:[%s13396_s26 + $0x7ac] ss:$16 sps:$4 sm:$0xff]  }
 0x33b   : > { %8068 = vmatpush1.bf16.msra.mxu0 %v11473_v11  ;;  %8724 = vmatpush1.bf16.msra.mxu1 %v11476_v12  ;;  %v11564_v11 = vld [vmem:[%s13396_s26 + $0x7a0] ss:$16 sps:$4 sm:$0xff]   ;;  %v11567_v12 = vld [vmem:[%s13396_s26 + $0x7a8] ss:$16 sps:$4 sm:$0xff]  }
 0x33c   : > { %8069 = vmatprep.subr.bf16.mxu0 %v11481_v13  ;;  %8725 = vmatprep.subr.bf16.mxu1 %v11484_v2  ;;  %v11572_v13 = vld [vmem:[%s13396_s26 + $0x7c4] ss:$16 sps:$4 sm:$0xff]   ;;  %v11575_v2 = vld [vmem:[%s13396_s26 + $0x7cc] ss:$16 sps:$4 sm:$0xff]  }
 0x33f   : > { %8070 = vmatpush1.bf16.msra.mxu0 %v11479_v5  ;;  %8726 = vmatpush1.bf16.msra.mxu1 %v11482_v14  ;;  %v13764_v5 = vld.sshfl [vmem:[#allocation2 + $0x8] sm:$0xff pattern:$0x75316420]  ;;  %v11570_v14 = vld [vmem:[%s13396_s26 + $0x7c0] ss:$16 sps:$4 sm:$0xff]  }
 0x340   : > { %8080 = vmatprep.subr.bf16.mxu0 %v11488_v15  ;;  %8736 = vmatprep.subr.bf16.mxu1 %v11491_v16  ;;  %v11573_v15 = vld [vmem:[%s13396_s26 + $0x7c8] ss:$16 sps:$4 sm:$0xff]   ;;  %v11578_v16 = vld [vmem:[%s13396_s26 + $0x7e4] ss:$16 sps:$4 sm:$0xff]  }
 0x342   : > { %8072 = vmatmul.mubr.bf16.vlgmr.msra.gmra.mrb[0].mxu0 %v13703_v7  ;;  %8728 = vmatmul.mubr.bf16.vlgmr.msra.gmra.mrb[0].mxu1 %v13703_v7 }
 0x343   : > { %8081 = vmatpush1.bf16.msra.mxu0 %v11486_v18  ;;  %8737 = vmatpush1.bf16.msra.mxu1 %v11489_v19  ;;  %v11581_v18 = vld [vmem:[%s13396_s26 + $0x7ec] ss:$16 sps:$4 sm:$0xff]   ;;  %v11576_v19 = vld [vmem:[%s13396_s26 + $0x7e0] ss:$16 sps:$4 sm:$0xff]  }
 0x344   : > { %8082 = vmatprep.subr.bf16.mxu0 %v11494_v20  ;;  %8738 = vmatprep.subr.bf16.mxu1 %v11497_v21  ;;  %v11579_v20 = vld [vmem:[%s13396_s26 + $0x7e8] ss:$16 sps:$4 sm:$0xff]   ;;  %v11584_v21 = vld [vmem:[%s13396_s26 + $0x804] ss:$16 sps:$4 sm:$0xff]  }
 0x345   : > { %8112 = vmatprep.mubr.bf16.mxu0 %v2657_v22  ;;  %8768 = vmatprep.mubr.bf16.mxu1 %v2657_v22  ;;  %v11587_v22 = vld [vmem:[%s13396_s26 + $0x80c] ss:$16 sps:$4 sm:$0xff]  }
 0x347   : > { %8083 = vmatpush1.bf16.msra.mxu0 %v11492_v9  ;;  %8739 = vmatpush1.bf16.msra.mxu1 %v11495_v23  ;;  %v2673_v9 = vcombine.high %v13764_v5, %v13764_v5  ;;  %v2655_v23 = vcombine.high %v13703_v7, %v13703_v7  ;;  %v11588_v7 = vld [vmem:[%s13396_s26 + $0x820] ss:$16 sps:$4 sm:$0xff]  }
 0x348   : > { %8084 = vmatprep.subr.bf16.mxu0 %v11500_v25  ;;  %8740 = vmatprep.subr.bf16.mxu1 %v11503_v26  ;;  %v11582_v25 = vld [vmem:[%s13396_s26 + $0x800] ss:$16 sps:$4 sm:$0xff]   ;;  %v11585_v26 = vld [vmem:[%s13396_s26 + $0x808] ss:$16 sps:$4 sm:$0xff]  }
 0x34b   : > { %8085 = vmatpush1.bf16.msra.mxu0 %v11498_v17  ;;  %8741 = vmatpush1.bf16.msra.mxu1 %v11501_v27  ;;  %v11590_v17 = vld [vmem:[%s13396_s26 + $0x824] ss:$16 sps:$4 sm:$0xff]   ;;  %v11593_v27 = vld [vmem:[%s13396_s26 + $0x82c] ss:$16 sps:$4 sm:$0xff]  }
 0x34c   : > { %8086 = vmatprep.subr.bf16.mxu0 %v11506_v24  ;;  %8742 = vmatprep.subr.bf16.mxu1 %v11509_v28  ;;  %v13783_v24 = vrot.slane %v2673_v9, %v13524_v41  ;;  %v11591_v28 = vld [vmem:[%s13396_s26 + $0x828] ss:$16 sps:$4 sm:$0xff]   ;;  %v11674_v9 = vld [vmem:[%s13396_s26 + $0x9e4] ss:$16 sps:$4 sm:$0xff]  }
 0x34f   : > { %8087 = vmatpush1.bf16.msra.mxu0 %v11504_v29  ;;  %8743 = vmatpush1.bf16.msra.mxu1 %v11507_v30  ;;  %v11596_v29 = vld [vmem:[%s13396_s26 + $0x844] ss:$16 sps:$4 sm:$0xff]   ;;  %v11599_v30 = vld [vmem:[%s13396_s26 + $0x84c] ss:$16 sps:$4 sm:$0xff]  }
 0x350   : > { %8088 = vmatprep.subr.bf16.mxu0 %v11512_v31  ;;  %8744 = vmatprep.subr.bf16.mxu1 %v11515_v32  ;;  %v11594_v31 = vld [vmem:[%s13396_s26 + $0x840] ss:$16 sps:$4 sm:$0xff]   ;;  %v11597_v32 = vld [vmem:[%s13396_s26 + $0x848] ss:$16 sps:$4 sm:$0xff]  }
 0x353   : > { %8089 = vmatpush1.bf16.msra.mxu0 %v11510_v33  ;;  %8745 = vmatpush1.bf16.msra.mxu1 %v11513_v35  ;;  %v11602_v33 = vld [vmem:[%s13396_s26 + $0x864] ss:$16 sps:$4 sm:$0xff]   ;;  %v11605_v35 = vld [vmem:[%s13396_s26 + $0x86c] ss:$16 sps:$4 sm:$0xff]  }
 0x354   : > { %8090 = vmatprep.subr.bf16.mxu0 %v11518_v36  ;;  %8746 = vmatprep.subr.bf16.mxu1 %v11521_v37  ;;  %v11600_v36 = vld [vmem:[%s13396_s26 + $0x860] ss:$16 sps:$4 sm:$0xff]   ;;  %v11603_v37 = vld [vmem:[%s13396_s26 + $0x868] ss:$16 sps:$4 sm:$0xff]  }
 0x357   : > { %8091 = vmatpush1.bf16.msra.mxu0 %v11516_v38  ;;  %8747 = vmatpush1.bf16.msra.mxu1 %v11519_v39  ;;  %v11608_v38 = vld [vmem:[%s13396_s26 + $0x884] ss:$16 sps:$4 sm:$0xff]   ;;  %v11611_v39 = vld [vmem:[%s13396_s26 + $0x88c] ss:$16 sps:$4 sm:$0xff]  }
 0x358   : > { %8092 = vmatprep.subr.bf16.mxu0 %v11524_v40  ;;  %8748 = vmatprep.subr.bf16.mxu1 %v11527_v42  ;;  %v11606_v40 = vld [vmem:[%s13396_s26 + $0x880] ss:$16 sps:$4 sm:$0xff]   ;;  %v11609_v42 = vld [vmem:[%s13396_s26 + $0x888] ss:$16 sps:$4 sm:$0xff]  }
 0x35b   : > { %8093 = vmatpush1.bf16.msra.mxu0 %v11522_v43  ;;  %8749 = vmatpush1.bf16.msra.mxu1 %v11525_v45  ;;  %v11614_v43 = vld [vmem:[%s13396_s26 + $0x8a4] ss:$16 sps:$4 sm:$0xff]   ;;  %v11617_v45 = vld [vmem:[%s13396_s26 + $0x8ac] ss:$16 sps:$4 sm:$0xff]  }
 0x35c   : > { %8094 = vmatprep.subr.bf16.mxu0 %v11530_v46  ;;  %8750 = vmatprep.subr.bf16.mxu1 %v11533_v47  ;;  %v11612_v46 = vld [vmem:[%s13396_s26 + $0x8a0] ss:$16 sps:$4 sm:$0xff]   ;;  %v11615_v47 = vld [vmem:[%s13396_s26 + $0x8a8] ss:$16 sps:$4 sm:$0xff]  }
 0x35f   : > { %8095 = vmatpush1.bf16.msra.mxu0 %v11528_v48  ;;  %8751 = vmatpush1.bf16.msra.mxu1 %v11531_v49  ;;  %v11620_v48 = vld [vmem:[%s13396_s26 + $0x8c4] ss:$16 sps:$4 sm:$0xff]   ;;  %v11623_v49 = vld [vmem:[%s13396_s26 + $0x8cc] ss:$16 sps:$4 sm:$0xff]  }
 0x360   : > { %8096 = vmatprep.subr.bf16.mxu0 %v11536_v50  ;;  %8752 = vmatprep.subr.bf16.mxu1 %v11539_v51  ;;  %v11618_v50 = vld [vmem:[%s13396_s26 + $0x8c0] ss:$16 sps:$4 sm:$0xff]   ;;  %v11621_v51 = vld [vmem:[%s13396_s26 + $0x8c8] ss:$16 sps:$4 sm:$0xff]  }
 0x363   : > { %8097 = vmatpush1.bf16.msra.mxu0 %v11534_v52  ;;  %8753 = vmatpush1.bf16.msra.mxu1 %v11537_v53  ;;  %v11626_v52 = vld [vmem:[%s13396_s26 + $0x8e4] ss:$16 sps:$4 sm:$0xff]   ;;  %v11629_v53 = vld [vmem:[%s13396_s26 + $0x8ec] ss:$16 sps:$4 sm:$0xff]  }
 0x364   : > { %8098 = vmatprep.subr.bf16.mxu0 %v11542_v54  ;;  %8754 = vmatprep.subr.bf16.mxu1 %v11545_v55  ;;  %v11624_v54 = vld [vmem:[%s13396_s26 + $0x8e0] ss:$16 sps:$4 sm:$0xff]   ;;  %v11627_v55 = vld [vmem:[%s13396_s26 + $0x8e8] ss:$16 sps:$4 sm:$0xff]  }
 0x367   : > { %8099 = vmatpush1.bf16.msra.mxu0 %v11540_v56  ;;  %8755 = vmatpush1.bf16.msra.mxu1 %v11543_v57  ;;  %v11632_v56 = vld [vmem:[%s13396_s26 + $0x904] ss:$16 sps:$4 sm:$0xff]   ;;  %v11635_v57 = vld [vmem:[%s13396_s26 + $0x90c] ss:$16 sps:$4 sm:$0xff]  }
 0x368   : > { %8100 = vmatprep.subr.bf16.mxu0 %v11548_v6  ;;  %8756 = vmatprep.subr.bf16.mxu1 %v11551_v58  ;;  %v11630_v6 = vld [vmem:[%s13396_s26 + $0x900] ss:$16 sps:$4 sm:$0xff]   ;;  %v11633_v58 = vld [vmem:[%s13396_s26 + $0x908] ss:$16 sps:$4 sm:$0xff]  }
 0x36b   : > { %8101 = vmatpush1.bf16.msra.mxu0 %v11546_v59  ;;  %8757 = vmatpush1.bf16.msra.mxu1 %v11549_v60  ;;  %v11638_v59 = vld [vmem:[%s13396_s26 + $0x924] ss:$16 sps:$4 sm:$0xff]   ;;  %v11641_v60 = vld [vmem:[%s13396_s26 + $0x92c] ss:$16 sps:$4 sm:$0xff]  }
 0x36c   : > { %8102 = vmatprep.subr.bf16.mxu0 %v11554_v61  ;;  %8758 = vmatprep.subr.bf16.mxu1 %v11557_v62  ;;  %v11636_v61 = vld [vmem:[%s13396_s26 + $0x920] ss:$16 sps:$4 sm:$0xff]   ;;  %v11639_v62 = vld [vmem:[%s13396_s26 + $0x928] ss:$16 sps:$4 sm:$0xff]  }
 0x36f   : > { %8103 = vmatpush1.bf16.msra.mxu0 %v11552_v63  ;;  %8759 = vmatpush1.bf16.msra.mxu1 %v11555_v0  ;;  %v11644_v63 = vld [vmem:[%s13396_s26 + $0x944] ss:$16 sps:$4 sm:$0xff]   ;;  %v11647_v0 = vld [vmem:[%s13396_s26 + $0x94c] ss:$16 sps:$4 sm:$0xff]  }
 0x370   : > { %8104 = vmatprep.subr.bf16.mxu0 %v11560_v3  ;;  %8760 = vmatprep.subr.bf16.mxu1 %v11563_v4  ;;  %v11642_v3 = vld [vmem:[%s13396_s26 + $0x940] ss:$16 sps:$4 sm:$0xff]   ;;  %v11645_v4 = vld [vmem:[%s13396_s26 + $0x948] ss:$16 sps:$4 sm:$0xff]  }
 0x373   : > { %8105 = vmatpush1.bf16.msra.mxu0 %v11558_v1  ;;  %8761 = vmatpush1.bf16.msra.mxu1 %v11561_v8  ;;  %v11650_v1 = vld [vmem:[%s13396_s26 + $0x964] ss:$16 sps:$4 sm:$0xff]   ;;  %v11653_v8 = vld [vmem:[%s13396_s26 + $0x96c] ss:$16 sps:$4 sm:$0xff]  }
 0x374   : > { %8106 = vmatprep.subr.bf16.mxu0 %v11566_v10  ;;  %8762 = vmatprep.subr.bf16.mxu1 %v11569_v44  ;;  %v11648_v10 = vld [vmem:[%s13396_s26 + $0x960] ss:$16 sps:$4 sm:$0xff]   ;;  %v11651_v44 = vld [vmem:[%s13396_s26 + $0x968] ss:$16 sps:$4 sm:$0xff]  }
 0x377   : > { %8107 = vmatpush1.bf16.msra.mxu0 %v11564_v11  ;;  %8763 = vmatpush1.bf16.msra.mxu1 %v11567_v12  ;;  %v11656_v11 = vld [vmem:[%s13396_s26 + $0x984] ss:$16 sps:$4 sm:$0xff]   ;;  %v11659_v12 = vld [vmem:[%s13396_s26 + $0x98c] ss:$16 sps:$4 sm:$0xff]  }
 0x378   : > { %8108 = vmatprep.subr.bf16.mxu0 %v11572_v13  ;;  %8764 = vmatprep.subr.bf16.mxu1 %v11575_v2  ;;  %v11654_v13 = vld [vmem:[%s13396_s26 + $0x980] ss:$16 sps:$4 sm:$0xff]   ;;  %v11657_v2 = vld [vmem:[%s13396_s26 + $0x988] ss:$16 sps:$4 sm:$0xff]  }
 0x37b   : > { %8109 = vmatpush1.bf16.msra.mxu0 %v11570_v14  ;;  %8765 = vmatpush1.bf16.msra.mxu1 %v11573_v15  ;;  %v11662_v14 = vld [vmem:[%s13396_s26 + $0x9a4] ss:$16 sps:$4 sm:$0xff]   ;;  %v11665_v15 = vld [vmem:[%s13396_s26 + $0x9ac] ss:$16 sps:$4 sm:$0xff]  }
 0x37c   : > { %8110 = vmatprep.subr.bf16.mxu0 %v11578_v16  ;;  %8766 = vmatprep.subr.bf16.mxu1 %v11581_v18  ;;  %v11660_v16 = vld [vmem:[%s13396_s26 + $0x9a0] ss:$16 sps:$4 sm:$0xff]   ;;  %v11663_v18 = vld [vmem:[%s13396_s26 + $0x9a8] ss:$16 sps:$4 sm:$0xff]  }
 0x37f   : > { %8111 = vmatpush1.bf16.msra.mxu0 %v11576_v19  ;;  %8767 = vmatpush1.bf16.msra.mxu1 %v11579_v20  ;;  %v11668_v19 = vld [vmem:[%s13396_s26 + $0x9c4] ss:$16 sps:$4 sm:$0xff]   ;;  %v11671_v20 = vld [vmem:[%s13396_s26 + $0x9cc] ss:$16 sps:$4 sm:$0xff]  }
 0x380   : > { %8121 = vmatprep.subr.bf16.mxu0 %v11584_v21  ;;  %8777 = vmatprep.subr.bf16.mxu1 %v11587_v22  ;;  %v11666_v21 = vld [vmem:[%s13396_s26 + $0x9c0] ss:$16 sps:$4 sm:$0xff]   ;;  %v11669_v22 = vld [vmem:[%s13396_s26 + $0x9c8] ss:$16 sps:$4 sm:$0xff]  }
 0x382   : > { %8113 = vmatmul.mubr.bf16.vlgmr.msra.gmra.mrb[0].mxu0 %v2655_v23  ;;  %8769 = vmatmul.mubr.bf16.vlgmr.msra.gmra.mrb[0].mxu1 %v2655_v23  ;;  %v11677_v23 = vld [vmem:[%s13396_s26 + $0x9ec] ss:$16 sps:$4 sm:$0xff]  }
 0x383   : > { %8122 = vmatpush1.bf16.msra.mxu0 %v11582_v25  ;;  %8778 = vmatpush1.bf16.msra.mxu1 %v11585_v26  ;;  %v11672_v25 = vld [vmem:[%s13396_s26 + $0x9e0] ss:$16 sps:$4 sm:$0xff]   ;;  %v11675_v26 = vld [vmem:[%s13396_s26 + $0x9e8] ss:$16 sps:$4 sm:$0xff]  }
 0x384   : > { %8123 = vmatprep.subr.bf16.mxu0 %v11590_v17  ;;  %8779 = vmatprep.subr.bf16.mxu1 %v11593_v27  ;;  %v11680_v17 = vld [vmem:[%s13396_s26 + $0xa04] ss:$16 sps:$4 sm:$0xff]   ;;  %v11683_v27 = vld [vmem:[%s13396_s26 + $0xa0c] ss:$16 sps:$4 sm:$0xff]  }
 0x385   : > { %8153 = vmatprep.mubr.bf16.mxu0 %v13783_v24  ;;  %8809 = vmatprep.mubr.bf16.mxu1 %v13783_v24 }
 0x387   : > { %8124 = vmatpush1.bf16.msra.mxu0 %v11588_v7  ;;  %8780 = vmatpush1.bf16.msra.mxu1 %v11591_v28  ;;  %v13849_v7 = vrot.slane %v13764_v5, %v13524_v41  ;;  %v11678_v28 = vld [vmem:[%s13396_s26 + $0xa00] ss:$16 sps:$4 sm:$0xff]  }
 0x388   : > { %8125 = vmatprep.subr.bf16.mxu0 %v11596_v29  ;;  %8781 = vmatprep.subr.bf16.mxu1 %v11599_v30  ;;  %v11681_v29 = vld [vmem:[%s13396_s26 + $0xa08] ss:$16 sps:$4 sm:$0xff]   ;;  %v11686_v30 = vld [vmem:[%s13396_s26 + $0xa24] ss:$16 sps:$4 sm:$0xff]   ;;  %v11684_v5 = vld [vmem:[%s13396_s26 + $0xa20] ss:$16 sps:$4 sm:$0xff]  }
 0x38b   : > { %8126 = vmatpush1.bf16.msra.mxu0 %v11594_v31  ;;  %8782 = vmatpush1.bf16.msra.mxu1 %v11597_v32  ;;  %v11689_v31 = vld [vmem:[%s13396_s26 + $0xa2c] ss:$16 sps:$4 sm:$0xff]   ;;  %v2705_v32 = vcombine.high %v13783_v24, %v13783_v24  ;;  %v11690_v24 = vld [vmem:[%s13396_s26 + $0xa40] ss:$16 sps:$4 sm:$0xff]  }
 0x38c   : > { %8127 = vmatprep.subr.bf16.mxu0 %v11602_v33  ;;  %8783 = vmatprep.subr.bf16.mxu1 %v11605_v35  ;;  %v11687_v33 = vld [vmem:[%s13396_s26 + $0xa28] ss:$16 sps:$4 sm:$0xff]   ;;  %v11692_v35 = vld [vmem:[%s13396_s26 + $0xa44] ss:$16 sps:$4 sm:$0xff]  }
 0x38f   : > { %8128 = vmatpush1.bf16.msra.mxu0 %v11600_v36  ;;  %8784 = vmatpush1.bf16.msra.mxu1 %v11603_v37  ;;  %v11695_v36 = vld [vmem:[%s13396_s26 + $0xa4c] ss:$16 sps:$4 sm:$0xff]   ;;  %v11693_v37 = vld [vmem:[%s13396_s26 + $0xa48] ss:$16 sps:$4 sm:$0xff]  }
 0x390   : > { %8129 = vmatprep.subr.bf16.mxu0 %v11608_v38  ;;  %8785 = vmatprep.subr.bf16.mxu1 %v11611_v39  ;;  %v11698_v38 = vld [vmem:[%s13396_s26 + $0xa64] ss:$16 sps:$4 sm:$0xff]   ;;  %v11701_v39 = vld [vmem:[%s13396_s26 + $0xa6c] ss:$16 sps:$4 sm:$0xff]  }
 0x393   : > { %8130 = vmatpush1.bf16.msra.mxu0 %v11606_v40  ;;  %8786 = vmatpush1.bf16.msra.mxu1 %v11609_v42  ;;  %v11696_v40 = vld [vmem:[%s13396_s26 + $0xa60] ss:$16 sps:$4 sm:$0xff]   ;;  %v11699_v42 = vld [vmem:[%s13396_s26 + $0xa68] ss:$16 sps:$4 sm:$0xff]  }
 0x394   : > { %8131 = vmatprep.subr.bf16.mxu0 %v11614_v43  ;;  %8787 = vmatprep.subr.bf16.mxu1 %v11617_v45  ;;  %v11704_v43 = vld [vmem:[%s13396_s26 + $0xa84] ss:$16 sps:$4 sm:$0xff]   ;;  %v11707_v45 = vld [vmem:[%s13396_s26 + $0xa8c] ss:$16 sps:$4 sm:$0xff]  }
 0x397   : > { %8132 = vmatpush1.bf16.msra.mxu0 %v11612_v46  ;;  %8788 = vmatpush1.bf16.msra.mxu1 %v11615_v47  ;;  %v11702_v46 = vld [vmem:[%s13396_s26 + $0xa80] ss:$16 sps:$4 sm:$0xff]   ;;  %v11705_v47 = vld [vmem:[%s13396_s26 + $0xa88] ss:$16 sps:$4 sm:$0xff]  }
 0x398   : > { %8133 = vmatprep.subr.bf16.mxu0 %v11620_v48  ;;  %8789 = vmatprep.subr.bf16.mxu1 %v11623_v49  ;;  %v11710_v48 = vld [vmem:[%s13396_s26 + $0xaa4] ss:$16 sps:$4 sm:$0xff]   ;;  %v11713_v49 = vld [vmem:[%s13396_s26 + $0xaac] ss:$16 sps:$4 sm:$0xff]  }
 0x39b   : > { %8134 = vmatpush1.bf16.msra.mxu0 %v11618_v50  ;;  %8790 = vmatpush1.bf16.msra.mxu1 %v11621_v51  ;;  %v11708_v50 = vld [vmem:[%s13396_s26 + $0xaa0] ss:$16 sps:$4 sm:$0xff]   ;;  %v11711_v51 = vld [vmem:[%s13396_s26 + $0xaa8] ss:$16 sps:$4 sm:$0xff]  }
 0x39c   : > { %8135 = vmatprep.subr.bf16.mxu0 %v11626_v52  ;;  %8791 = vmatprep.subr.bf16.mxu1 %v11629_v53  ;;  %v11716_v52 = vld [vmem:[%s13396_s26 + $0xac4] ss:$16 sps:$4 sm:$0xff]   ;;  %v11719_v53 = vld [vmem:[%s13396_s26 + $0xacc] ss:$16 sps:$4 sm:$0xff]  }
 0x39f   : > { %8136 = vmatpush1.bf16.msra.mxu0 %v11624_v54  ;;  %8792 = vmatpush1.bf16.msra.mxu1 %v11627_v55  ;;  %v11714_v54 = vld [vmem:[%s13396_s26 + $0xac0] ss:$16 sps:$4 sm:$0xff]   ;;  %v11717_v55 = vld [vmem:[%s13396_s26 + $0xac8] ss:$16 sps:$4 sm:$0xff]  }
 0x3a0   : > { %8137 = vmatprep.subr.bf16.mxu0 %v11632_v56  ;;  %8793 = vmatprep.subr.bf16.mxu1 %v11635_v57  ;;  %v11722_v56 = vld [vmem:[%s13396_s26 + $0xae4] ss:$16 sps:$4 sm:$0xff]   ;;  %v11725_v57 = vld [vmem:[%s13396_s26 + $0xaec] ss:$16 sps:$4 sm:$0xff]  }
 0x3a3   : > { %8138 = vmatpush1.bf16.msra.mxu0 %v11630_v6  ;;  %8794 = vmatpush1.bf16.msra.mxu1 %v11633_v58  ;;  %v11720_v6 = vld [vmem:[%s13396_s26 + $0xae0] ss:$16 sps:$4 sm:$0xff]   ;;  %v11723_v58 = vld [vmem:[%s13396_s26 + $0xae8] ss:$16 sps:$4 sm:$0xff]  }
 0x3a4   : > { %8139 = vmatprep.subr.bf16.mxu0 %v11638_v59  ;;  %8795 = vmatprep.subr.bf16.mxu1 %v11641_v60  ;;  %v11728_v59 = vld [vmem:[%s13396_s26 + $0xb04] ss:$16 sps:$4 sm:$0xff]   ;;  %v11731_v60 = vld [vmem:[%s13396_s26 + $0xb0c] ss:$16 sps:$4 sm:$0xff]  }
 0x3a7   : > { %8140 = vmatpush1.bf16.msra.mxu0 %v11636_v61  ;;  %8796 = vmatpush1.bf16.msra.mxu1 %v11639_v62  ;;  %v11726_v61 = vld [vmem:[%s13396_s26 + $0xb00] ss:$16 sps:$4 sm:$0xff]   ;;  %v11729_v62 = vld [vmem:[%s13396_s26 + $0xb08] ss:$16 sps:$4 sm:$0xff]  }
 0x3a8   : > { %8141 = vmatprep.subr.bf16.mxu0 %v11644_v63  ;;  %8797 = vmatprep.subr.bf16.mxu1 %v11647_v0  ;;  %v11734_v63 = vld [vmem:[%s13396_s26 + $0xb24] ss:$16 sps:$4 sm:$0xff]   ;;  %v11737_v0 = vld [vmem:[%s13396_s26 + $0xb2c] ss:$16 sps:$4 sm:$0xff]  }
 0x3ab   : > { %8142 = vmatpush1.bf16.msra.mxu0 %v11642_v3  ;;  %8798 = vmatpush1.bf16.msra.mxu1 %v11645_v4  ;;  %v11732_v3 = vld [vmem:[%s13396_s26 + $0xb20] ss:$16 sps:$4 sm:$0xff]   ;;  %v11735_v4 = vld [vmem:[%s13396_s26 + $0xb28] ss:$16 sps:$4 sm:$0xff]  }
 0x3ac   : > { %8143 = vmatprep.subr.bf16.mxu0 %v11650_v1  ;;  %8799 = vmatprep.subr.bf16.mxu1 %v11653_v8  ;;  %v11740_v1 = vld [vmem:[%s13396_s26 + $0xb44] ss:$16 sps:$4 sm:$0xff]   ;;  %v11743_v8 = vld [vmem:[%s13396_s26 + $0xb4c] ss:$16 sps:$4 sm:$0xff]  }
 0x3af   : > { %8144 = vmatpush1.bf16.msra.mxu0 %v11648_v10  ;;  %8800 = vmatpush1.bf16.msra.mxu1 %v11651_v44  ;;  %v11738_v10 = vld [vmem:[%s13396_s26 + $0xb40] ss:$16 sps:$4 sm:$0xff]   ;;  %v11741_v44 = vld [vmem:[%s13396_s26 + $0xb48] ss:$16 sps:$4 sm:$0xff]  }
 0x3b0   : > { %8145 = vmatprep.subr.bf16.mxu0 %v11656_v11  ;;  %8801 = vmatprep.subr.bf16.mxu1 %v11659_v12  ;;  %v11746_v11 = vld [vmem:[%s13396_s26 + $0xb64] ss:$16 sps:$4 sm:$0xff]   ;;  %v11749_v12 = vld [vmem:[%s13396_s26 + $0xb6c] ss:$16 sps:$4 sm:$0xff]  }
 0x3b3   : > { %8146 = vmatpush1.bf16.msra.mxu0 %v11654_v13  ;;  %8802 = vmatpush1.bf16.msra.mxu1 %v11657_v2  ;;  %v11744_v13 = vld [vmem:[%s13396_s26 + $0xb60] ss:$16 sps:$4 sm:$0xff]   ;;  %v11747_v2 = vld [vmem:[%s13396_s26 + $0xb68] ss:$16 sps:$4 sm:$0xff]  }
 0x3b4   : > { %8147 = vmatprep.subr.bf16.mxu0 %v11662_v14  ;;  %8803 = vmatprep.subr.bf16.mxu1 %v11665_v15  ;;  %v11752_v14 = vld [vmem:[%s13396_s26 + $0xb84] ss:$16 sps:$4 sm:$0xff]   ;;  %v11755_v15 = vld [vmem:[%s13396_s26 + $0xb8c] ss:$16 sps:$4 sm:$0xff]  }
 0x3b7   : > { %8148 = vmatpush1.bf16.msra.mxu0 %v11660_v16  ;;  %8804 = vmatpush1.bf16.msra.mxu1 %v11663_v18  ;;  %v11750_v16 = vld [vmem:[%s13396_s26 + $0xb80] ss:$16 sps:$4 sm:$0xff]   ;;  %v11753_v18 = vld [vmem:[%s13396_s26 + $0xb88] ss:$16 sps:$4 sm:$0xff]  }
 0x3b8   : > { %8149 = vmatprep.subr.bf16.mxu0 %v11668_v19  ;;  %8805 = vmatprep.subr.bf16.mxu1 %v11671_v20  ;;  %v11758_v19 = vld [vmem:[%s13396_s26 + $0xba4] ss:$16 sps:$4 sm:$0xff]   ;;  %v11761_v20 = vld [vmem:[%s13396_s26 + $0xbac] ss:$16 sps:$4 sm:$0xff]  }
 0x3bb   : > { %8150 = vmatpush1.bf16.msra.mxu0 %v11666_v21  ;;  %8806 = vmatpush1.bf16.msra.mxu1 %v11669_v22  ;;  %v11756_v21 = vld [vmem:[%s13396_s26 + $0xba0] ss:$16 sps:$4 sm:$0xff]   ;;  %v11759_v22 = vld [vmem:[%s13396_s26 + $0xba8] ss:$16 sps:$4 sm:$0xff]  }
 0x3bc   : > { %8151 = vmatprep.subr.bf16.mxu0 %v11674_v9  ;;  %8807 = vmatprep.subr.bf16.mxu1 %v11677_v23  ;;  %v11764_v9 = vld [vmem:[%s13396_s26 + $0xbc4] ss:$16 sps:$4 sm:$0xff]   ;;  %v11767_v23 = vld [vmem:[%s13396_s26 + $0xbcc] ss:$16 sps:$4 sm:$0xff]  }
 0x3bf   : > { %8152 = vmatpush1.bf16.msra.mxu0 %v11672_v25  ;;  %8808 = vmatpush1.bf16.msra.mxu1 %v11675_v26  ;;  %v12769_v25 = vld [vmem:[#allocation2 + $0x8] sm:$0xff] }
 0x3c0   : > { %8162 = vmatprep.subr.bf16.mxu0 %v11680_v17  ;;  %8818 = vmatprep.subr.bf16.mxu1 %v11683_v27  ;;  %v2658_v26 = vcombine.high %v12769_v25, %v12769_v25  ;;  %v11762_v17 = vld [vmem:[%s13396_s26 + $0xbc0] ss:$16 sps:$4 sm:$0xff]   ;;  %v11765_v27 = vld [vmem:[%s13396_s26 + $0xbc8] ss:$16 sps:$4 sm:$0xff]  }
 0x3c1   : > { %v11846_v25 = vld [vmem:[%s13396_s26 + $0xd80] ss:$16 sps:$4 sm:$0xff]  }
 0x3c2   : > { %8154 = vmatmul.mubr.bf16.vlgmr.msra.gmra.mrb[0].mxu0 %v13849_v7  ;;  %8810 = vmatmul.mubr.bf16.vlgmr.msra.gmra.mrb[0].mxu1 %v13849_v7 }
 0x3c3   : > { %8163 = vmatpush1.bf16.msra.mxu0 %v11678_v28  ;;  %8819 = vmatpush1.bf16.msra.mxu1 %v11681_v29  ;;  %v11770_v28 = vld [vmem:[%s13396_s26 + $0xbe4] ss:$16 sps:$4 sm:$0xff]   ;;  %v11773_v29 = vld [vmem:[%s13396_s26 + $0xbec] ss:$16 sps:$4 sm:$0xff]  }
 0x3c4   : > { %8164 = vmatprep.subr.bf16.mxu0 %v11686_v30  ;;  %8820 = vmatprep.subr.bf16.mxu1 %v11689_v31  ;;  %v13916_v30 = vrot.slane %v2658_v26, %v13524_v41  ;;  %v11768_v31 = vld [vmem:[%s13396_s26 + $0xbe0] ss:$16 sps:$4 sm:$0xff]   ;;  %v11849_v26 = vld [vmem:[%s13396_s26 + $0xd88] ss:$16 sps:$4 sm:$0xff]  }
 0x3c5   : > { %8194 = vmatprep.mubr.bf16.mxu0 %v2705_v32  ;;  %8850 = vmatprep.mubr.bf16.mxu1 %v2705_v32  ;;  %v11771_v32 = vld [vmem:[%s13396_s26 + $0xbe8] ss:$16 sps:$4 sm:$0xff]  }
 0x3c7   : > { %8165 = vmatpush1.bf16.msra.mxu0 %v11684_v5  ;;  %8821 = vmatpush1.bf16.msra.mxu1 %v11687_v33  ;;  %v11776_v5 = vld [vmem:[%s13396_s26 + $0xc04] ss:$16 sps:$4 sm:$0xff]   ;;  %v11779_v33 = vld [vmem:[%s13396_s26 + $0xc0c] ss:$16 sps:$4 sm:$0xff]  }
 0x3c8   : > { %8166 = vmatprep.subr.bf16.mxu0 %v11692_v35  ;;  %8822 = vmatprep.subr.bf16.mxu1 %v11695_v36  ;;  %v2674_v35 = vcombine.high %v13916_v30, %v13916_v30  ;;  %v2703_v36 = vcombine.high %v13849_v7, %v13849_v7  ;;  %v11780_v7 = vld [vmem:[%s13396_s26 + $0xc20] ss:$16 sps:$4 sm:$0xff]  }
 0x3cb   : > { %8167 = vmatpush1.bf16.msra.mxu0 %v11690_v24  ;;  %8823 = vmatpush1.bf16.msra.mxu1 %v11693_v37  ;;  %v11774_v24 = vld [vmem:[%s13396_s26 + $0xc00] ss:$16 sps:$4 sm:$0xff]   ;;  %v11777_v37 = vld [vmem:[%s13396_s26 + $0xc08] ss:$16 sps:$4 sm:$0xff]  }
 0x3cc   : > { %8168 = vmatprep.subr.bf16.mxu0 %v11698_v38  ;;  %8824 = vmatprep.subr.bf16.mxu1 %v11701_v39  ;;  %v11782_v38 = vld [vmem:[%s13396_s26 + $0xc24] ss:$16 sps:$4 sm:$0xff]   ;;  %v11785_v39 = vld [vmem:[%s13396_s26 + $0xc2c] ss:$16 sps:$4 sm:$0xff]  }
 0x3cf   : > { %8169 = vmatpush1.bf16.msra.mxu0 %v11696_v40  ;;  %8825 = vmatpush1.bf16.msra.mxu1 %v11699_v42  ;;  %v13931_v40 = vrot.slane %v2674_v35, %v13524_v41  ;;  %v11783_v42 = vld [vmem:[%s13396_s26 + $0xc28] ss:$16 sps:$4 sm:$0xff]   ;;  %v11866_v35 = vld [vmem:[%s13396_s26 + $0xde4] ss:$16 sps:$4 sm:$0xff]  }
 0x3d0   : > { %8170 = vmatprep.subr.bf16.mxu0 %v11704_v43  ;;  %8826 = vmatprep.subr.bf16.mxu1 %v11707_v45  ;;  %v11788_v43 = vld [vmem:[%s13396_s26 + $0xc44] ss:$16 sps:$4 sm:$0xff]   ;;  %v11791_v45 = vld [vmem:[%s13396_s26 + $0xc4c] ss:$16 sps:$4 sm:$0xff]  }
 0x3d3   : > { %8171 = vmatpush1.bf16.msra.mxu0 %v11702_v46  ;;  %8827 = vmatpush1.bf16.msra.mxu1 %v11705_v47  ;;  %v11786_v46 = vld [vmem:[%s13396_s26 + $0xc40] ss:$16 sps:$4 sm:$0xff]   ;;  %v11789_v47 = vld [vmem:[%s13396_s26 + $0xc48] ss:$16 sps:$4 sm:$0xff]  }
 0x3d4   : > { %8172 = vmatprep.subr.bf16.mxu0 %v11710_v48  ;;  %8828 = vmatprep.subr.bf16.mxu1 %v11713_v49  ;;  %v11794_v48 = vld [vmem:[%s13396_s26 + $0xc64] ss:$16 sps:$4 sm:$0xff]   ;;  %v11797_v49 = vld [vmem:[%s13396_s26 + $0xc6c] ss:$16 sps:$4 sm:$0xff]  }
 0x3d7   : > { %8173 = vmatpush1.bf16.msra.mxu0 %v11708_v50  ;;  %8829 = vmatpush1.bf16.msra.mxu1 %v11711_v51  ;;  %v11792_v50 = vld [vmem:[%s13396_s26 + $0xc60] ss:$16 sps:$4 sm:$0xff]   ;;  %v11795_v51 = vld [vmem:[%s13396_s26 + $0xc68] ss:$16 sps:$4 sm:$0xff]  }
 0x3d8   : > { %8174 = vmatprep.subr.bf16.mxu0 %v11716_v52  ;;  %8830 = vmatprep.subr.bf16.mxu1 %v11719_v53  ;;  %v11800_v52 = vld [vmem:[%s13396_s26 + $0xc84] ss:$16 sps:$4 sm:$0xff]   ;;  %v11803_v53 = vld [vmem:[%s13396_s26 + $0xc8c] ss:$16 sps:$4 sm:$0xff]  }
 0x3db   : > { %8175 = vmatpush1.bf16.msra.mxu0 %v11714_v54  ;;  %8831 = vmatpush1.bf16.msra.mxu1 %v11717_v55  ;;  %v11798_v54 = vld [vmem:[%s13396_s26 + $0xc80] ss:$16 sps:$4 sm:$0xff]   ;;  %v11801_v55 = vld [vmem:[%s13396_s26 + $0xc88] ss:$16 sps:$4 sm:$0xff]  }
 0x3dc   : > { %8176 = vmatprep.subr.bf16.mxu0 %v11722_v56  ;;  %8832 = vmatprep.subr.bf16.mxu1 %v11725_v57  ;;  %v11806_v56 = vld [vmem:[%s13396_s26 + $0xca4] ss:$16 sps:$4 sm:$0xff]   ;;  %v11809_v57 = vld [vmem:[%s13396_s26 + $0xcac] ss:$16 sps:$4 sm:$0xff]  }
 0x3df   : > { %8177 = vmatpush1.bf16.msra.mxu0 %v11720_v6  ;;  %8833 = vmatpush1.bf16.msra.mxu1 %v11723_v58  ;;  %v11804_v6 = vld [vmem:[%s13396_s26 + $0xca0] ss:$16 sps:$4 sm:$0xff]   ;;  %v11807_v58 = vld [vmem:[%s13396_s26 + $0xca8] ss:$16 sps:$4 sm:$0xff]  }
 0x3e0   : > { %8178 = vmatprep.subr.bf16.mxu0 %v11728_v59  ;;  %8834 = vmatprep.subr.bf16.mxu1 %v11731_v60  ;;  %v11812_v59 = vld [vmem:[%s13396_s26 + $0xcc4] ss:$16 sps:$4 sm:$0xff]   ;;  %v11815_v60 = vld [vmem:[%s13396_s26 + $0xccc] ss:$16 sps:$4 sm:$0xff]  }
 0x3e3   : > { %8179 = vmatpush1.bf16.msra.mxu0 %v11726_v61  ;;  %8835 = vmatpush1.bf16.msra.mxu1 %v11729_v62  ;;  %v11810_v61 = vld [vmem:[%s13396_s26 + $0xcc0] ss:$16 sps:$4 sm:$0xff]   ;;  %v11813_v62 = vld [vmem:[%s13396_s26 + $0xcc8] ss:$16 sps:$4 sm:$0xff]  }
 0x3e4   : > { %8180 = vmatprep.subr.bf16.mxu0 %v11734_v63  ;;  %8836 = vmatprep.subr.bf16.mxu1 %v11737_v0  ;;  %v11818_v63 = vld [vmem:[%s13396_s26 + $0xce4] ss:$16 sps:$4 sm:$0xff]   ;;  %v11821_v0 = vld [vmem:[%s13396_s26 + $0xcec] ss:$16 sps:$4 sm:$0xff]  }
 0x3e7   : > { %8181 = vmatpush1.bf16.msra.mxu0 %v11732_v3  ;;  %8837 = vmatpush1.bf16.msra.mxu1 %v11735_v4  ;;  %v11816_v3 = vld [vmem:[%s13396_s26 + $0xce0] ss:$16 sps:$4 sm:$0xff]   ;;  %v11819_v4 = vld [vmem:[%s13396_s26 + $0xce8] ss:$16 sps:$4 sm:$0xff]  }
 0x3e8   : > { %8182 = vmatprep.subr.bf16.mxu0 %v11740_v1  ;;  %8838 = vmatprep.subr.bf16.mxu1 %v11743_v8  ;;  %v11824_v1 = vld [vmem:[%s13396_s26 + $0xd04] ss:$16 sps:$4 sm:$0xff]   ;;  %v11827_v8 = vld [vmem:[%s13396_s26 + $0xd0c] ss:$16 sps:$4 sm:$0xff]  }
 0x3eb   : > { %8183 = vmatpush1.bf16.msra.mxu0 %v11738_v10  ;;  %8839 = vmatpush1.bf16.msra.mxu1 %v11741_v44  ;;  %v11822_v10 = vld [vmem:[%s13396_s26 + $0xd00] ss:$16 sps:$4 sm:$0xff]   ;;  %v11825_v44 = vld [vmem:[%s13396_s26 + $0xd08] ss:$16 sps:$4 sm:$0xff]  }
 0x3ec   : > { %8184 = vmatprep.subr.bf16.mxu0 %v11746_v11  ;;  %8840 = vmatprep.subr.bf16.mxu1 %v11749_v12  ;;  %v11830_v11 = vld [vmem:[%s13396_s26 + $0xd24] ss:$16 sps:$4 sm:$0xff]   ;;  %v11833_v12 = vld [vmem:[%s13396_s26 + $0xd2c] ss:$16 sps:$4 sm:$0xff]  }
 0x3ef   : > { %8185 = vmatpush1.bf16.msra.mxu0 %v11744_v13  ;;  %8841 = vmatpush1.bf16.msra.mxu1 %v11747_v2  ;;  %v11828_v13 = vld [vmem:[%s13396_s26 + $0xd20] ss:$16 sps:$4 sm:$0xff]   ;;  %v11831_v2 = vld [vmem:[%s13396_s26 + $0xd28] ss:$16 sps:$4 sm:$0xff]  }
 0x3f0   : > { %8186 = vmatprep.subr.bf16.mxu0 %v11752_v14  ;;  %8842 = vmatprep.subr.bf16.mxu1 %v11755_v15  ;;  %v11836_v14 = vld [vmem:[%s13396_s26 + $0xd44] ss:$16 sps:$4 sm:$0xff]   ;;  %v11839_v15 = vld [vmem:[%s13396_s26 + $0xd4c] ss:$16 sps:$4 sm:$0xff]  }
 0x3f3   : > { %8187 = vmatpush1.bf16.msra.mxu0 %v11750_v16  ;;  %8843 = vmatpush1.bf16.msra.mxu1 %v11753_v18  ;;  %v11834_v16 = vld [vmem:[%s13396_s26 + $0xd40] ss:$16 sps:$4 sm:$0xff]   ;;  %v11837_v18 = vld [vmem:[%s13396_s26 + $0xd48] ss:$16 sps:$4 sm:$0xff]  }
 0x3f4   : > { %8188 = vmatprep.subr.bf16.mxu0 %v11758_v19  ;;  %8844 = vmatprep.subr.bf16.mxu1 %v11761_v20  ;;  %v11842_v19 = vld [vmem:[%s13396_s26 + $0xd64] ss:$16 sps:$4 sm:$0xff]   ;;  %v11845_v20 = vld [vmem:[%s13396_s26 + $0xd6c] ss:$16 sps:$4 sm:$0xff]  }
 0x3f7   : > { %8189 = vmatpush1.bf16.msra.mxu0 %v11756_v21  ;;  %8845 = vmatpush1.bf16.msra.mxu1 %v11759_v22  ;;  %v11840_v21 = vld [vmem:[%s13396_s26 + $0xd60] ss:$16 sps:$4 sm:$0xff]   ;;  %v11843_v22 = vld [vmem:[%s13396_s26 + $0xd68] ss:$16 sps:$4 sm:$0xff]  }
 0x3f8   : > { %8190 = vmatprep.subr.bf16.mxu0 %v11764_v9  ;;  %8846 = vmatprep.subr.bf16.mxu1 %v11767_v23  ;;  %v11848_v9 = vld [vmem:[%s13396_s26 + $0xd84] ss:$16 sps:$4 sm:$0xff]   ;;  %v11851_v23 = vld [vmem:[%s13396_s26 + $0xd8c] ss:$16 sps:$4 sm:$0xff]  }
 0x3fb   : > { %8191 = vmatpush1.bf16.msra.mxu0 %v11762_v17  ;;  %8847 = vmatpush1.bf16.msra.mxu1 %v11765_v27  ;;  %v11854_v17 = vld [vmem:[%s13396_s26 + $0xda4] ss:$16 sps:$4 sm:$0xff]   ;;  %v11857_v27 = vld [vmem:[%s13396_s26 + $0xdac] ss:$16 sps:$4 sm:$0xff]  }
 0x3fc   : > { %8192 = vmatprep.subr.bf16.mxu0 %v11770_v28  ;;  %8848 = vmatprep.subr.bf16.mxu1 %v11773_v29  ;;  %v11852_v28 = vld [vmem:[%s13396_s26 + $0xda0] ss:$16 sps:$4 sm:$0xff]   ;;  %v11855_v29 = vld [vmem:[%s13396_s26 + $0xda8] ss:$16 sps:$4 sm:$0xff]  }
 0x3ff   : > { %8193 = vmatpush1.bf16.msra.mxu0 %v11768_v31  ;;  %8849 = vmatpush1.bf16.msra.mxu1 %v11771_v32  ;;  %v11860_v31 = vld [vmem:[%s13396_s26 + $0xdc4] ss:$16 sps:$4 sm:$0xff]   ;;  %v11863_v32 = vld [vmem:[%s13396_s26 + $0xdcc] ss:$16 sps:$4 sm:$0xff]  }
 0x400   : > { %8203 = vmatprep.subr.bf16.mxu0 %v11776_v5  ;;  %8859 = vmatprep.subr.bf16.mxu1 %v11779_v33  ;;  %v11858_v5 = vld [vmem:[%s13396_s26 + $0xdc0] ss:$16 sps:$4 sm:$0xff]   ;;  %v11861_v33 = vld [vmem:[%s13396_s26 + $0xdc8] ss:$16 sps:$4 sm:$0xff]  }
 0x402   : > { %8195 = vmatmul.mubr.bf16.vlgmr.msra.gmra.mrb[0].mxu0 %v2703_v36  ;;  %8851 = vmatmul.mubr.bf16.vlgmr.msra.gmra.mrb[0].mxu1 %v2703_v36  ;;  %v11869_v36 = vld [vmem:[%s13396_s26 + $0xdec] ss:$16 sps:$4 sm:$0xff]  }
 0x403   : > { %8204 = vmatpush1.bf16.msra.mxu0 %v11774_v24  ;;  %8860 = vmatpush1.bf16.msra.mxu1 %v11777_v37  ;;  %v11864_v24 = vld [vmem:[%s13396_s26 + $0xde0] ss:$16 sps:$4 sm:$0xff]   ;;  %v11867_v37 = vld [vmem:[%s13396_s26 + $0xde8] ss:$16 sps:$4 sm:$0xff]  }
 0x404   : > { %8205 = vmatprep.subr.bf16.mxu0 %v11782_v38  ;;  %8861 = vmatprep.subr.bf16.mxu1 %v11785_v39  ;;  %v11873_v38 = vld [vmem:[%s13396_s26 + $0xe04] ss:$16 sps:$4 sm:$0xff]   ;;  %v11876_v39 = vld [vmem:[%s13396_s26 + $0xe0c] ss:$16 sps:$4 sm:$0xff]  }
 0x405   : > { %8235 = vmatprep.mubr.bf16.mxu0 %v13931_v40  ;;  %8891 = vmatprep.mubr.bf16.mxu1 %v13931_v40 }
 0x407   : > { %8206 = vmatpush1.bf16.msra.mxu0 %v11780_v7  ;;  %8862 = vmatpush1.bf16.msra.mxu1 %v11783_v42  ;;  %v13997_v7 = vrot.slane %v13916_v30, %v13524_v41  ;;  %v11871_v42 = vld [vmem:[%s13396_s26 + $0xe00] ss:$16 sps:$4 sm:$0xff]  }
 0x408   : > { %8207 = vmatprep.subr.bf16.mxu0 %v11788_v43  ;;  %8863 = vmatprep.subr.bf16.mxu1 %v11791_v45  ;;  %v11874_v43 = vld [vmem:[%s13396_s26 + $0xe08] ss:$16 sps:$4 sm:$0xff]   ;;  %v11879_v45 = vld [vmem:[%s13396_s26 + $0xe24] ss:$16 sps:$4 sm:$0xff]   ;;  %v11877_v30 = vld [vmem:[%s13396_s26 + $0xe20] ss:$16 sps:$4 sm:$0xff]  }
 0x40b   : > { %8208 = vmatpush1.bf16.msra.mxu0 %v11786_v46  ;;  %8864 = vmatpush1.bf16.msra.mxu1 %v11789_v47  ;;  %v11882_v46 = vld [vmem:[%s13396_s26 + $0xe2c] ss:$16 sps:$4 sm:$0xff]   ;;  %v2706_v47 = vcombine.high %v13931_v40, %v13931_v40  ;;  %v11883_v40 = vld [vmem:[%s13396_s26 + $0xe40] ss:$16 sps:$4 sm:$0xff]  }
 0x40c   : > { %8209 = vmatprep.subr.bf16.mxu0 %v11794_v48  ;;  %8865 = vmatprep.subr.bf16.mxu1 %v11797_v49  ;;  %v11880_v48 = vld [vmem:[%s13396_s26 + $0xe28] ss:$16 sps:$4 sm:$0xff]   ;;  %v11885_v49 = vld [vmem:[%s13396_s26 + $0xe44] ss:$16 sps:$4 sm:$0xff]  }
 0x40f   : > { %8210 = vmatpush1.bf16.msra.mxu0 %v11792_v50  ;;  %8866 = vmatpush1.bf16.msra.mxu1 %v11795_v51  ;;  %v11888_v50 = vld [vmem:[%s13396_s26 + $0xe4c] ss:$16 sps:$4 sm:$0xff]   ;;  %v11886_v51 = vld [vmem:[%s13396_s26 + $0xe48] ss:$16 sps:$4 sm:$0xff]  }
 0x410   : > { %8211 = vmatprep.subr.bf16.mxu0 %v11800_v52  ;;  %8867 = vmatprep.subr.bf16.mxu1 %v11803_v53  ;;  %v11891_v52 = vld [vmem:[%s13396_s26 + $0xe64] ss:$16 sps:$4 sm:$0xff]   ;;  %v11894_v53 = vld [vmem:[%s13396_s26 + $0xe6c] ss:$16 sps:$4 sm:$0xff]  }
 0x413   : > { %8212 = vmatpush1.bf16.msra.mxu0 %v11798_v54  ;;  %8868 = vmatpush1.bf16.msra.mxu1 %v11801_v55  ;;  %v11889_v54 = vld [vmem:[%s13396_s26 + $0xe60] ss:$16 sps:$4 sm:$0xff]   ;;  %v11892_v55 = vld [vmem:[%s13396_s26 + $0xe68] ss:$16 sps:$4 sm:$0xff]  }
 0x414   : > { %8213 = vmatprep.subr.bf16.mxu0 %v11806_v56  ;;  %8869 = vmatprep.subr.bf16.mxu1 %v11809_v57  ;;  %v11897_v56 = vld [vmem:[%s13396_s26 + $0xe84] ss:$16 sps:$4 sm:$0xff]   ;;  %v11900_v57 = vld [vmem:[%s13396_s26 + $0xe8c] ss:$16 sps:$4 sm:$0xff]  }
 0x417   : > { %8214 = vmatpush1.bf16.msra.mxu0 %v11804_v6  ;;  %8870 = vmatpush1.bf16.msra.mxu1 %v11807_v58  ;;  %v11895_v6 = vld [vmem:[%s13396_s26 + $0xe80] ss:$16 sps:$4 sm:$0xff]   ;;  %v11898_v58 = vld [vmem:[%s13396_s26 + $0xe88] ss:$16 sps:$4 sm:$0xff]  }
 0x418   : > { %8215 = vmatprep.subr.bf16.mxu0 %v11812_v59  ;;  %8871 = vmatprep.subr.bf16.mxu1 %v11815_v60  ;;  %v11903_v59 = vld [vmem:[%s13396_s26 + $0xea4] ss:$16 sps:$4 sm:$0xff]   ;;  %v11906_v60 = vld [vmem:[%s13396_s26 + $0xeac] ss:$16 sps:$4 sm:$0xff]  }
 0x41b   : > { %8216 = vmatpush1.bf16.msra.mxu0 %v11810_v61  ;;  %8872 = vmatpush1.bf16.msra.mxu1 %v11813_v62  ;;  %v11901_v61 = vld [vmem:[%s13396_s26 + $0xea0] ss:$16 sps:$4 sm:$0xff]   ;;  %v11904_v62 = vld [vmem:[%s13396_s26 + $0xea8] ss:$16 sps:$4 sm:$0xff]  }
 0x41c   : > { %8217 = vmatprep.subr.bf16.mxu0 %v11818_v63  ;;  %8873 = vmatprep.subr.bf16.mxu1 %v11821_v0  ;;  %v11909_v63 = vld [vmem:[%s13396_s26 + $0xec4] ss:$16 sps:$4 sm:$0xff]   ;;  %v11912_v0 = vld [vmem:[%s13396_s26 + $0xecc] ss:$16 sps:$4 sm:$0xff]  }
 0x41f   : > { %8218 = vmatpush1.bf16.msra.mxu0 %v11816_v3  ;;  %8874 = vmatpush1.bf16.msra.mxu1 %v11819_v4  ;;  %v11907_v3 = vld [vmem:[%s13396_s26 + $0xec0] ss:$16 sps:$4 sm:$0xff]   ;;  %v11910_v4 = vld [vmem:[%s13396_s26 + $0xec8] ss:$16 sps:$4 sm:$0xff]  }
 0x420   : > { %8219 = vmatprep.subr.bf16.mxu0 %v11824_v1  ;;  %8875 = vmatprep.subr.bf16.mxu1 %v11827_v8  ;;  %v11915_v1 = vld [vmem:[%s13396_s26 + $0xee4] ss:$16 sps:$4 sm:$0xff]   ;;  %v11918_v8 = vld [vmem:[%s13396_s26 + $0xeec] ss:$16 sps:$4 sm:$0xff]  }
 0x423   : > { %8220 = vmatpush1.bf16.msra.mxu0 %v11822_v10  ;;  %8876 = vmatpush1.bf16.msra.mxu1 %v11825_v44  ;;  %v11913_v10 = vld [vmem:[%s13396_s26 + $0xee0] ss:$16 sps:$4 sm:$0xff]   ;;  %v11916_v44 = vld [vmem:[%s13396_s26 + $0xee8] ss:$16 sps:$4 sm:$0xff]  }
 0x424   : > { %8221 = vmatprep.subr.bf16.mxu0 %v11830_v11  ;;  %8877 = vmatprep.subr.bf16.mxu1 %v11833_v12  ;;  %v11921_v11 = vld [vmem:[%s13396_s26 + $0xf04] ss:$16 sps:$4 sm:$0xff]   ;;  %v11924_v12 = vld [vmem:[%s13396_s26 + $0xf0c] ss:$16 sps:$4 sm:$0xff]  }
 0x427   : > { %8222 = vmatpush1.bf16.msra.mxu0 %v11828_v13  ;;  %8878 = vmatpush1.bf16.msra.mxu1 %v11831_v2  ;;  %v11919_v13 = vld [vmem:[%s13396_s26 + $0xf00] ss:$16 sps:$4 sm:$0xff]   ;;  %v11922_v2 = vld [vmem:[%s13396_s26 + $0xf08] ss:$16 sps:$4 sm:$0xff]  }
 0x428   : > { %8223 = vmatprep.subr.bf16.mxu0 %v11836_v14  ;;  %8879 = vmatprep.subr.bf16.mxu1 %v11839_v15  ;;  %v11927_v14 = vld [vmem:[%s13396_s26 + $0xf24] ss:$16 sps:$4 sm:$0xff]   ;;  %v11930_v15 = vld [vmem:[%s13396_s26 + $0xf2c] ss:$16 sps:$4 sm:$0xff]  }
 0x42b   : > { %8224 = vmatpush1.bf16.msra.mxu0 %v11834_v16  ;;  %8880 = vmatpush1.bf16.msra.mxu1 %v11837_v18  ;;  %v11925_v16 = vld [vmem:[%s13396_s26 + $0xf20] ss:$16 sps:$4 sm:$0xff]   ;;  %v11928_v18 = vld [vmem:[%s13396_s26 + $0xf28] ss:$16 sps:$4 sm:$0xff]  }
 0x42c   : > { %8225 = vmatprep.subr.bf16.mxu0 %v11842_v19  ;;  %8881 = vmatprep.subr.bf16.mxu1 %v11845_v20  ;;  %v11933_v19 = vld [vmem:[%s13396_s26 + $0xf44] ss:$16 sps:$4 sm:$0xff]   ;;  %v11936_v20 = vld [vmem:[%s13396_s26 + $0xf4c] ss:$16 sps:$4 sm:$0xff]  }
 0x42f   : > { %8226 = vmatpush1.bf16.msra.mxu0 %v11840_v21  ;;  %8882 = vmatpush1.bf16.msra.mxu1 %v11843_v22  ;;  %v11931_v21 = vld [vmem:[%s13396_s26 + $0xf40] ss:$16 sps:$4 sm:$0xff]   ;;  %v11934_v22 = vld [vmem:[%s13396_s26 + $0xf48] ss:$16 sps:$4 sm:$0xff]  }
 0x430   : > { %8227 = vmatprep.subr.bf16.mxu0 %v11848_v9  ;;  %8883 = vmatprep.subr.bf16.mxu1 %v11851_v23  ;;  %v11939_v9 = vld [vmem:[%s13396_s26 + $0xf64] ss:$16 sps:$4 sm:$0xff]   ;;  %v11942_v23 = vld [vmem:[%s13396_s26 + $0xf6c] ss:$16 sps:$4 sm:$0xff]  }
 0x433   : > { %8228 = vmatpush1.bf16.msra.mxu0 %v11846_v25  ;;  %8884 = vmatpush1.bf16.msra.mxu1 %v11849_v26  ;;  %v11937_v25 = vld [vmem:[%s13396_s26 + $0xf60] ss:$16 sps:$4 sm:$0xff]   ;;  %v11940_v26 = vld [vmem:[%s13396_s26 + $0xf68] ss:$16 sps:$4 sm:$0xff]  }
 0x434   : > { %8229 = vmatprep.subr.bf16.mxu0 %v11854_v17  ;;  %8885 = vmatprep.subr.bf16.mxu1 %v11857_v27  ;;  %v11945_v17 = vld [vmem:[%s13396_s26 + $0xf84] ss:$16 sps:$4 sm:$0xff]   ;;  %v11948_v27 = vld [vmem:[%s13396_s26 + $0xf8c] ss:$16 sps:$4 sm:$0xff]  }
 0x437   : > { %8230 = vmatpush1.bf16.msra.mxu0 %v11852_v28  ;;  %8886 = vmatpush1.bf16.msra.mxu1 %v11855_v29  ;;  %v11943_v28 = vld [vmem:[%s13396_s26 + $0xf80] ss:$16 sps:$4 sm:$0xff]   ;;  %v11946_v29 = vld [vmem:[%s13396_s26 + $0xf88] ss:$16 sps:$4 sm:$0xff]  }
 0x438   : > { %8231 = vmatprep.subr.bf16.mxu0 %v11860_v31  ;;  %8887 = vmatprep.subr.bf16.mxu1 %v11863_v32  ;;  %v11951_v31 = vld [vmem:[%s13396_s26 + $0xfa4] ss:$16 sps:$4 sm:$0xff]   ;;  %v11954_v32 = vld [vmem:[%s13396_s26 + $0xfac] ss:$16 sps:$4 sm:$0xff]  }
 0x43b   : > { %8232 = vmatpush1.bf16.msra.mxu0 %v11858_v5  ;;  %8888 = vmatpush1.bf16.msra.mxu1 %v11861_v33  ;;  %v11949_v5 = vld [vmem:[%s13396_s26 + $0xfa0] ss:$16 sps:$4 sm:$0xff]   ;;  %v11952_v33 = vld [vmem:[%s13396_s26 + $0xfa8] ss:$16 sps:$4 sm:$0xff]  }
 0x43c   : > { %8233 = vmatprep.subr.bf16.mxu0 %v11866_v35  ;;  %8889 = vmatprep.subr.bf16.mxu1 %v11869_v36  ;;  %v11957_v35 = vld [vmem:[%s13396_s26 + $0xfc4] ss:$16 sps:$4 sm:$0xff]   ;;  %v11960_v36 = vld [vmem:[%s13396_s26 + $0xfcc] ss:$16 sps:$4 sm:$0xff]  }
 0x43f   : > { %8234 = vmatpush1.bf16.msra.mxu0 %v11864_v24  ;;  %8890 = vmatpush1.bf16.msra.mxu1 %v11867_v37  ;;  %v14059_v24 = vld [vmem:[#allocation2 + $0x10] sm:$0xff] }
 0x440   : > { %8244 = vmatprep.subr.bf16.mxu0 %v11873_v38  ;;  %8900 = vmatprep.subr.bf16.mxu1 %v11876_v39  ;;  %v11955_v37 = vld [vmem:[%s13396_s26 + $0xfc0] ss:$16 sps:$4 sm:$0xff]   ;;  %v11958_v38 = vld [vmem:[%s13396_s26 + $0xfc8] ss:$16 sps:$4 sm:$0xff]   ;;  %v11963_v39 = vld [vmem:[%s13396_s26 + $0xfe4] ss:$16 sps:$4 sm:$0xff]  }
 0x442   : > { %8236 = vmatmul.mubr.bf16.vlgmr.msra.gmra.mrb[0].mxu0 %v13997_v7  ;;  %8892 = vmatmul.mubr.bf16.vlgmr.msra.gmra.mrb[0].mxu1 %v13997_v7 }
 0x443   : > { %8245 = vmatpush1.bf16.msra.mxu0 %v11871_v42  ;;  %8901 = vmatpush1.bf16.msra.mxu1 %v11874_v43  ;;  %v11966_v42 = vld [vmem:[%s13396_s26 + $0xfec] ss:$16 sps:$4 sm:$0xff]   ;;  %v14067_v43 = vrot.slane %v14059_v24, %v13524_v41 }
 0x444   : > { %8246 = vmatprep.subr.bf16.mxu0 %v11879_v45  ;;  %8902 = vmatprep.subr.bf16.mxu1 %v11882_v46  ;;  %v11961_v45 = vld [vmem:[%s13396_s26 + $0xfe0] ss:$16 sps:$4 sm:$0xff]   ;;  %v11964_v46 = vld [vmem:[%s13396_s26 + $0xfe8] ss:$16 sps:$4 sm:$0xff]  }
 0x445   : > { %8276 = vmatprep.mubr.bf16.mxu0 %v2706_v47  ;;  %8932 = vmatprep.mubr.bf16.mxu1 %v2706_v47  ;;  %v11969_v47 = vld [vmem:[%s13396_s26 + $0x1004] ss:$16 sps:$4 sm:$0xff]  }
 0x447   : > { %8247 = vmatpush1.bf16.msra.mxu0 %v11877_v30  ;;  %8903 = vmatpush1.bf16.msra.mxu1 %v11880_v48  ;;  %v11972_v30 = vld [vmem:[%s13396_s26 + $0x100c] ss:$16 sps:$4 sm:$0xff]   ;;  %v2722_v48 = vcombine.high %v14067_v43, %v14067_v43 }
 0x448   : > { %8248 = vmatprep.subr.bf16.mxu0 %v11885_v49  ;;  %8904 = vmatprep.subr.bf16.mxu1 %v11888_v50  ;;  %v2704_v49 = vcombine.high %v13997_v7, %v13997_v7  ;;  %v11967_v50 = vld [vmem:[%s13396_s26 + $0x1000] ss:$16 sps:$4 sm:$0xff]  }
 0x449   : > { %v11973_v7 = vld [vmem:[%s13396_s26 + $0x1020] ss:$16 sps:$4 sm:$0xff]  }
 0x44b   : > { %8249 = vmatpush1.bf16.msra.mxu0 %v11883_v40  ;;  %8905 = vmatpush1.bf16.msra.mxu1 %v11886_v51  ;;  %v11970_v40 = vld [vmem:[%s13396_s26 + $0x1008] ss:$16 sps:$4 sm:$0xff]   ;;  %v11975_v51 = vld [vmem:[%s13396_s26 + $0x1024] ss:$16 sps:$4 sm:$0xff]  }
 0x44c   : > { %8250 = vmatprep.subr.bf16.mxu0 %v11891_v52  ;;  %8906 = vmatprep.subr.bf16.mxu1 %v11894_v53  ;;  %v11978_v52 = vld [vmem:[%s13396_s26 + $0x102c] ss:$16 sps:$4 sm:$0xff]   ;;  %v14082_v53 = vrot.slane %v2722_v48, %v13524_v41  ;;  %v12054_v48 = vld [vmem:[%s13396_s26 + $0x11c8] ss:$16 sps:$4 sm:$0xff]  }
 0x44f   : > { %8251 = vmatpush1.bf16.msra.mxu0 %v11889_v54  ;;  %8907 = vmatpush1.bf16.msra.mxu1 %v11892_v55  ;;  %v11976_v54 = vld [vmem:[%s13396_s26 + $0x1028] ss:$16 sps:$4 sm:$0xff]   ;;  %v11981_v55 = vld [vmem:[%s13396_s26 + $0x1044] ss:$16 sps:$4 sm:$0xff]  }
 0x450   : > { %8252 = vmatprep.subr.bf16.mxu0 %v11897_v56  ;;  %8908 = vmatprep.subr.bf16.mxu1 %v11900_v57  ;;  %v11984_v56 = vld [vmem:[%s13396_s26 + $0x104c] ss:$16 sps:$4 sm:$0xff]   ;;  %v11979_v57 = vld [vmem:[%s13396_s26 + $0x1040] ss:$16 sps:$4 sm:$0xff]  }
 0x453   : > { %8253 = vmatpush1.bf16.msra.mxu0 %v11895_v6  ;;  %8909 = vmatpush1.bf16.msra.mxu1 %v11898_v58  ;;  %v11982_v6 = vld [vmem:[%s13396_s26 + $0x1048] ss:$16 sps:$4 sm:$0xff]   ;;  %v11987_v58 = vld [vmem:[%s13396_s26 + $0x1064] ss:$16 sps:$4 sm:$0xff]  }
 0x454   : > { %8254 = vmatprep.subr.bf16.mxu0 %v11903_v59  ;;  %8910 = vmatprep.subr.bf16.mxu1 %v11906_v60  ;;  %v11990_v59 = vld [vmem:[%s13396_s26 + $0x106c] ss:$16 sps:$4 sm:$0xff]   ;;  %v11985_v60 = vld [vmem:[%s13396_s26 + $0x1060] ss:$16 sps:$4 sm:$0xff]  }
 0x457   : > { %8255 = vmatpush1.bf16.msra.mxu0 %v11901_v61  ;;  %8911 = vmatpush1.bf16.msra.mxu1 %v11904_v62  ;;  %v11988_v61 = vld [vmem:[%s13396_s26 + $0x1068] ss:$16 sps:$4 sm:$0xff]   ;;  %v11993_v62 = vld [vmem:[%s13396_s26 + $0x1084] ss:$16 sps:$4 sm:$0xff]  }
 0x458   : > { %8256 = vmatprep.subr.bf16.mxu0 %v11909_v63  ;;  %8912 = vmatprep.subr.bf16.mxu1 %v11912_v0  ;;  %v11996_v63 = vld [vmem:[%s13396_s26 + $0x108c] ss:$16 sps:$4 sm:$0xff]   ;;  %v11991_v0 = vld [vmem:[%s13396_s26 + $0x1080] ss:$16 sps:$4 sm:$0xff]  }
 0x45b   : > { %8257 = vmatpush1.bf16.msra.mxu0 %v11907_v3  ;;  %8913 = vmatpush1.bf16.msra.mxu1 %v11910_v4  ;;  %v11994_v3 = vld [vmem:[%s13396_s26 + $0x1088] ss:$16 sps:$4 sm:$0xff]   ;;  %v11999_v4 = vld [vmem:[%s13396_s26 + $0x10a4] ss:$16 sps:$4 sm:$0xff]  }
 0x45c   : > { %8258 = vmatprep.subr.bf16.mxu0 %v11915_v1  ;;  %8914 = vmatprep.subr.bf16.mxu1 %v11918_v8  ;;  %v12002_v1 = vld [vmem:[%s13396_s26 + $0x10ac] ss:$16 sps:$4 sm:$0xff]   ;;  %v11997_v8 = vld [vmem:[%s13396_s26 + $0x10a0] ss:$16 sps:$4 sm:$0xff]  }
 0x45f   : > { %8259 = vmatpush1.bf16.msra.mxu0 %v11913_v10  ;;  %8915 = vmatpush1.bf16.msra.mxu1 %v11916_v44  ;;  %v12000_v10 = vld [vmem:[%s13396_s26 + $0x10a8] ss:$16 sps:$4 sm:$0xff]   ;;  %v12005_v44 = vld [vmem:[%s13396_s26 + $0x10c4] ss:$16 sps:$4 sm:$0xff]  }
 0x460   : > { %8260 = vmatprep.subr.bf16.mxu0 %v11921_v11  ;;  %8916 = vmatprep.subr.bf16.mxu1 %v11924_v12  ;;  %v12008_v11 = vld [vmem:[%s13396_s26 + $0x10cc] ss:$16 sps:$4 sm:$0xff]   ;;  %v12003_v12 = vld [vmem:[%s13396_s26 + $0x10c0] ss:$16 sps:$4 sm:$0xff]  }
 0x463   : > { %8261 = vmatpush1.bf16.msra.mxu0 %v11919_v13  ;;  %8917 = vmatpush1.bf16.msra.mxu1 %v11922_v2  ;;  %v12006_v13 = vld [vmem:[%s13396_s26 + $0x10c8] ss:$16 sps:$4 sm:$0xff]   ;;  %v12011_v2 = vld [vmem:[%s13396_s26 + $0x10e4] ss:$16 sps:$4 sm:$0xff]  }
 0x464   : > { %8262 = vmatprep.subr.bf16.mxu0 %v11927_v14  ;;  %8918 = vmatprep.subr.bf16.mxu1 %v11930_v15  ;;  %v12014_v14 = vld [vmem:[%s13396_s26 + $0x10ec] ss:$16 sps:$4 sm:$0xff]   ;;  %v12009_v15 = vld [vmem:[%s13396_s26 + $0x10e0] ss:$16 sps:$4 sm:$0xff]  }
 0x467   : > { %8263 = vmatpush1.bf16.msra.mxu0 %v11925_v16  ;;  %8919 = vmatpush1.bf16.msra.mxu1 %v11928_v18  ;;  %v12012_v16 = vld [vmem:[%s13396_s26 + $0x10e8] ss:$16 sps:$4 sm:$0xff]   ;;  %v12017_v18 = vld [vmem:[%s13396_s26 + $0x1104] ss:$16 sps:$4 sm:$0xff]  }
 0x468   : > { %8264 = vmatprep.subr.bf16.mxu0 %v11933_v19  ;;  %8920 = vmatprep.subr.bf16.mxu1 %v11936_v20  ;;  %v12020_v19 = vld [vmem:[%s13396_s26 + $0x110c] ss:$16 sps:$4 sm:$0xff]   ;;  %v12015_v20 = vld [vmem:[%s13396_s26 + $0x1100] ss:$16 sps:$4 sm:$0xff]  }
 0x46b   : > { %8265 = vmatpush1.bf16.msra.mxu0 %v11931_v21  ;;  %8921 = vmatpush1.bf16.msra.mxu1 %v11934_v22  ;;  %v12018_v21 = vld [vmem:[%s13396_s26 + $0x1108] ss:$16 sps:$4 sm:$0xff]   ;;  %v12023_v22 = vld [vmem:[%s13396_s26 + $0x1124] ss:$16 sps:$4 sm:$0xff]  }
 0x46c   : > { %8266 = vmatprep.subr.bf16.mxu0 %v11939_v9  ;;  %8922 = vmatprep.subr.bf16.mxu1 %v11942_v23  ;;  %v12026_v9 = vld [vmem:[%s13396_s26 + $0x112c] ss:$16 sps:$4 sm:$0xff]   ;;  %v12021_v23 = vld [vmem:[%s13396_s26 + $0x1120] ss:$16 sps:$4 sm:$0xff]  }
 0x46f   : > { %8267 = vmatpush1.bf16.msra.mxu0 %v11937_v25  ;;  %8923 = vmatpush1.bf16.msra.mxu1 %v11940_v26  ;;  %v12024_v25 = vld [vmem:[%s13396_s26 + $0x1128] ss:$16 sps:$4 sm:$0xff]   ;;  %v12029_v26 = vld [vmem:[%s13396_s26 + $0x1144] ss:$16 sps:$4 sm:$0xff]  }
 0x470   : > { %8268 = vmatprep.subr.bf16.mxu0 %v11945_v17  ;;  %8924 = vmatprep.subr.bf16.mxu1 %v11948_v27  ;;  %v12032_v17 = vld [vmem:[%s13396_s26 + $0x114c] ss:$16 sps:$4 sm:$0xff]   ;;  %v12027_v27 = vld [vmem:[%s13396_s26 + $0x1140] ss:$16 sps:$4 sm:$0xff]  }
 0x473   : > { %8269 = vmatpush1.bf16.msra.mxu0 %v11943_v28  ;;  %8925 = vmatpush1.bf16.msra.mxu1 %v11946_v29  ;;  %v12030_v28 = vld [vmem:[%s13396_s26 + $0x1148] ss:$16 sps:$4 sm:$0xff]   ;;  %v12035_v29 = vld [vmem:[%s13396_s26 + $0x1164] ss:$16 sps:$4 sm:$0xff]  }
 0x474   : > { %8270 = vmatprep.subr.bf16.mxu0 %v11951_v31  ;;  %8926 = vmatprep.subr.bf16.mxu1 %v11954_v32  ;;  %v12038_v31 = vld [vmem:[%s13396_s26 + $0x116c] ss:$16 sps:$4 sm:$0xff]   ;;  %v12033_v32 = vld [vmem:[%s13396_s26 + $0x1160] ss:$16 sps:$4 sm:$0xff]  }
 0x477   : > { %8271 = vmatpush1.bf16.msra.mxu0 %v11949_v5  ;;  %8927 = vmatpush1.bf16.msra.mxu1 %v11952_v33  ;;  %v12036_v5 = vld [vmem:[%s13396_s26 + $0x1168] ss:$16 sps:$4 sm:$0xff]   ;;  %v12041_v33 = vld [vmem:[%s13396_s26 + $0x1184] ss:$16 sps:$4 sm:$0xff]  }
 0x478   : > { %8272 = vmatprep.subr.bf16.mxu0 %v11957_v35  ;;  %8928 = vmatprep.subr.bf16.mxu1 %v11960_v36  ;;  %v12044_v35 = vld [vmem:[%s13396_s26 + $0x118c] ss:$16 sps:$4 sm:$0xff]   ;;  %v12039_v36 = vld [vmem:[%s13396_s26 + $0x1180] ss:$16 sps:$4 sm:$0xff]  }
 0x47b   : > { %8273 = vmatpush1.bf16.msra.mxu0 %v11955_v37  ;;  %8929 = vmatpush1.bf16.msra.mxu1 %v11958_v38  ;;  %v12042_v37 = vld [vmem:[%s13396_s26 + $0x1188] ss:$16 sps:$4 sm:$0xff]   ;;  %v12047_v38 = vld [vmem:[%s13396_s26 + $0x11a4] ss:$16 sps:$4 sm:$0xff]  }
 0x47c   : > { %8274 = vmatprep.subr.bf16.mxu0 %v11963_v39  ;;  %8930 = vmatprep.subr.bf16.mxu1 %v11966_v42  ;;  %v12050_v39 = vld [vmem:[%s13396_s26 + $0x11ac] ss:$16 sps:$4 sm:$0xff]   ;;  %v12045_v42 = vld [vmem:[%s13396_s26 + $0x11a0] ss:$16 sps:$4 sm:$0xff]  }
 0x47f   : > { %8275 = vmatpush1.bf16.msra.mxu0 %v11961_v45  ;;  %8931 = vmatpush1.bf16.msra.mxu1 %v11964_v46  ;;  %v12048_v45 = vld [vmem:[%s13396_s26 + $0x11a8] ss:$16 sps:$4 sm:$0xff]   ;;  %v12053_v46 = vld [vmem:[%s13396_s26 + $0x11c4] ss:$16 sps:$4 sm:$0xff]  }
 0x480   : > { %8285 = vmatprep.subr.bf16.mxu0 %v11969_v47  ;;  %8941 = vmatprep.subr.bf16.mxu1 %v11972_v30  ;;  %v12056_v47 = vld [vmem:[%s13396_s26 + $0x11cc] ss:$16 sps:$4 sm:$0xff]   ;;  %v12051_v30 = vld [vmem:[%s13396_s26 + $0x11c0] ss:$16 sps:$4 sm:$0xff]  }
 0x482   : > { %8277 = vmatmul.mubr.bf16.vlgmr.msra.gmra.mrb[0].mxu0 %v2704_v49  ;;  %8933 = vmatmul.mubr.bf16.vlgmr.msra.gmra.mrb[0].mxu1 %v2704_v49  ;;  %v12059_v49 = vld [vmem:[%s13396_s26 + $0x11e4] ss:$16 sps:$4 sm:$0xff]  }
 0x483   : > { %8286 = vmatpush1.bf16.msra.mxu0 %v11967_v50  ;;  %8942 = vmatpush1.bf16.msra.mxu1 %v11970_v40  ;;  %v12062_v50 = vld [vmem:[%s13396_s26 + $0x11ec] ss:$16 sps:$4 sm:$0xff]   ;;  %v12057_v40 = vld [vmem:[%s13396_s26 + $0x11e0] ss:$16 sps:$4 sm:$0xff]  }
 0x484   : > { %8287 = vmatprep.subr.bf16.mxu0 %v11975_v51  ;;  %8943 = vmatprep.subr.bf16.mxu1 %v11978_v52  ;;  %v12060_v51 = vld [vmem:[%s13396_s26 + $0x11e8] ss:$16 sps:$4 sm:$0xff]   ;;  %v12065_v52 = vld [vmem:[%s13396_s26 + $0x1204] ss:$16 sps:$4 sm:$0xff]  }
 0x485   : > { %8317 = vmatprep.mubr.bf16.mxu0 %v14082_v53  ;;  %8973 = vmatprep.mubr.bf16.mxu1 %v14082_v53 }
 0x487   : > { %8288 = vmatpush1.bf16.msra.mxu0 %v11973_v7  ;;  %8944 = vmatpush1.bf16.msra.mxu1 %v11976_v54  ;;  %v12068_v7 = vld [vmem:[%s13396_s26 + $0x120c] ss:$16 sps:$4 sm:$0xff]   ;;  %v14148_v54 = vrot.slane %v14067_v43, %v13524_v41  ;;  %v12069_v43 = vld [vmem:[%s13396_s26 + $0x1220] ss:$16 sps:$4 sm:$0xff]  }
 0x488   : > { %8289 = vmatprep.subr.bf16.mxu0 %v11981_v55  ;;  %8945 = vmatprep.subr.bf16.mxu1 %v11984_v56  ;;  %v12063_v55 = vld [vmem:[%s13396_s26 + $0x1200] ss:$16 sps:$4 sm:$0xff]   ;;  %v12066_v56 = vld [vmem:[%s13396_s26 + $0x1208] ss:$16 sps:$4 sm:$0xff]  }
 0x48b   : > { %8290 = vmatpush1.bf16.msra.mxu0 %v11979_v57  ;;  %8946 = vmatpush1.bf16.msra.mxu1 %v11982_v6  ;;  %v12071_v57 = vld [vmem:[%s13396_s26 + $0x1224] ss:$16 sps:$4 sm:$0xff]   ;;  %v12074_v6 = vld [vmem:[%s13396_s26 + $0x122c] ss:$16 sps:$4 sm:$0xff]  }
 0x48c   : > { %8291 = vmatprep.subr.bf16.mxu0 %v11987_v58  ;;  %8947 = vmatprep.subr.bf16.mxu1 %v11990_v59  ;;  %v2754_v58 = vcombine.high %v14082_v53, %v14082_v53  ;;  %v12072_v59 = vld [vmem:[%s13396_s26 + $0x1228] ss:$16 sps:$4 sm:$0xff]   ;;  %v12075_v53 = vld [vmem:[%s13396_s26 + $0x1240] ss:$16 sps:$4 sm:$0xff]  }
 0x48f   : > { %8292 = vmatpush1.bf16.msra.mxu0 %v11985_v60  ;;  %8948 = vmatpush1.bf16.msra.mxu1 %v11988_v61  ;;  %v12077_v60 = vld [vmem:[%s13396_s26 + $0x1244] ss:$16 sps:$4 sm:$0xff]   ;;  %v12080_v61 = vld [vmem:[%s13396_s26 + $0x124c] ss:$16 sps:$4 sm:$0xff]  }
 0x490   : > { %8293 = vmatprep.subr.bf16.mxu0 %v11993_v62  ;;  %8949 = vmatprep.subr.bf16.mxu1 %v11996_v63  ;;  %v12078_v62 = vld [vmem:[%s13396_s26 + $0x1248] ss:$16 sps:$4 sm:$0xff]   ;;  %v12083_v63 = vld [vmem:[%s13396_s26 + $0x1264] ss:$16 sps:$4 sm:$0xff]  }
 0x493   : > { %8294 = vmatpush1.bf16.msra.mxu0 %v11991_v0  ;;  %8950 = vmatpush1.bf16.msra.mxu1 %v11994_v3  ;;  %v12086_v0 = vld [vmem:[%s13396_s26 + $0x126c] ss:$16 sps:$4 sm:$0xff]   ;;  %v12081_v3 = vld [vmem:[%s13396_s26 + $0x1260] ss:$16 sps:$4 sm:$0xff]  }
 0x494   : > { %8295 = vmatprep.subr.bf16.mxu0 %v11999_v4  ;;  %8951 = vmatprep.subr.bf16.mxu1 %v12002_v1  ;;  %v12084_v4 = vld [vmem:[%s13396_s26 + $0x1268] ss:$16 sps:$4 sm:$0xff]   ;;  %v12089_v1 = vld [vmem:[%s13396_s26 + $0x1284] ss:$16 sps:$4 sm:$0xff]  }
 0x497   : > { %8296 = vmatpush1.bf16.msra.mxu0 %v11997_v8  ;;  %8952 = vmatpush1.bf16.msra.mxu1 %v12000_v10  ;;  %v12092_v8 = vld [vmem:[%s13396_s26 + $0x128c] ss:$16 sps:$4 sm:$0xff]   ;;  %v12087_v10 = vld [vmem:[%s13396_s26 + $0x1280] ss:$16 sps:$4 sm:$0xff]  }
 0x498   : > { %8297 = vmatprep.subr.bf16.mxu0 %v12005_v44  ;;  %8953 = vmatprep.subr.bf16.mxu1 %v12008_v11  ;;  %v12090_v44 = vld [vmem:[%s13396_s26 + $0x1288] ss:$16 sps:$4 sm:$0xff]   ;;  %v12095_v11 = vld [vmem:[%s13396_s26 + $0x12a4] ss:$16 sps:$4 sm:$0xff]  }
 0x49b   : > { %8298 = vmatpush1.bf16.msra.mxu0 %v12003_v12  ;;  %8954 = vmatpush1.bf16.msra.mxu1 %v12006_v13  ;;  %v12098_v12 = vld [vmem:[%s13396_s26 + $0x12ac] ss:$16 sps:$4 sm:$0xff]   ;;  %v12093_v13 = vld [vmem:[%s13396_s26 + $0x12a0] ss:$16 sps:$4 sm:$0xff]  }
 0x49c   : > { %8299 = vmatprep.subr.bf16.mxu0 %v12011_v2  ;;  %8955 = vmatprep.subr.bf16.mxu1 %v12014_v14  ;;  %v12096_v2 = vld [vmem:[%s13396_s26 + $0x12a8] ss:$16 sps:$4 sm:$0xff]   ;;  %v12101_v14 = vld [vmem:[%s13396_s26 + $0x12c4] ss:$16 sps:$4 sm:$0xff]  }
 0x49f   : > { %8300 = vmatpush1.bf16.msra.mxu0 %v12009_v15  ;;  %8956 = vmatpush1.bf16.msra.mxu1 %v12012_v16  ;;  %v12104_v15 = vld [vmem:[%s13396_s26 + $0x12cc] ss:$16 sps:$4 sm:$0xff]   ;;  %v12099_v16 = vld [vmem:[%s13396_s26 + $0x12c0] ss:$16 sps:$4 sm:$0xff]  }
 0x4a0   : > { %8301 = vmatprep.subr.bf16.mxu0 %v12017_v18  ;;  %8957 = vmatprep.subr.bf16.mxu1 %v12020_v19  ;;  %v12102_v18 = vld [vmem:[%s13396_s26 + $0x12c8] ss:$16 sps:$4 sm:$0xff]   ;;  %v12107_v19 = vld [vmem:[%s13396_s26 + $0x12e4] ss:$16 sps:$4 sm:$0xff]  }
 0x4a3   : > { %8302 = vmatpush1.bf16.msra.mxu0 %v12015_v20  ;;  %8958 = vmatpush1.bf16.msra.mxu1 %v12018_v21  ;;  %v12110_v20 = vld [vmem:[%s13396_s26 + $0x12ec] ss:$16 sps:$4 sm:$0xff]   ;;  %v12105_v21 = vld [vmem:[%s13396_s26 + $0x12e0] ss:$16 sps:$4 sm:$0xff]  }
 0x4a4   : > { %8303 = vmatprep.subr.bf16.mxu0 %v12023_v22  ;;  %8959 = vmatprep.subr.bf16.mxu1 %v12026_v9  ;;  %v12108_v22 = vld [vmem:[%s13396_s26 + $0x12e8] ss:$16 sps:$4 sm:$0xff]   ;;  %v12113_v9 = vld [vmem:[%s13396_s26 + $0x1304] ss:$16 sps:$4 sm:$0xff]  }
 0x4a7   : > { %8304 = vmatpush1.bf16.msra.mxu0 %v12021_v23  ;;  %8960 = vmatpush1.bf16.msra.mxu1 %v12024_v25  ;;  %v12116_v23 = vld [vmem:[%s13396_s26 + $0x130c] ss:$16 sps:$4 sm:$0xff]   ;;  %v12111_v25 = vld [vmem:[%s13396_s26 + $0x1300] ss:$16 sps:$4 sm:$0xff]  }
 0x4a8   : > { %8305 = vmatprep.subr.bf16.mxu0 %v12029_v26  ;;  %8961 = vmatprep.subr.bf16.mxu1 %v12032_v17  ;;  %v12114_v26 = vld [vmem:[%s13396_s26 + $0x1308] ss:$16 sps:$4 sm:$0xff]   ;;  %v12119_v17 = vld [vmem:[%s13396_s26 + $0x1324] ss:$16 sps:$4 sm:$0xff]  }
 0x4ab   : > { %8306 = vmatpush1.bf16.msra.mxu0 %v12027_v27  ;;  %8962 = vmatpush1.bf16.msra.mxu1 %v12030_v28  ;;  %v12122_v27 = vld [vmem:[%s13396_s26 + $0x132c] ss:$16 sps:$4 sm:$0xff]   ;;  %v12117_v28 = vld [vmem:[%s13396_s26 + $0x1320] ss:$16 sps:$4 sm:$0xff]  }
 0x4ac   : > { %8307 = vmatprep.subr.bf16.mxu0 %v12035_v29  ;;  %8963 = vmatprep.subr.bf16.mxu1 %v12038_v31  ;;  %v12120_v29 = vld [vmem:[%s13396_s26 + $0x1328] ss:$16 sps:$4 sm:$0xff]   ;;  %v12125_v31 = vld [vmem:[%s13396_s26 + $0x1344] ss:$16 sps:$4 sm:$0xff]  }
 0x4af   : > { %8308 = vmatpush1.bf16.msra.mxu0 %v12033_v32  ;;  %8964 = vmatpush1.bf16.msra.mxu1 %v12036_v5  ;;  %v12128_v32 = vld [vmem:[%s13396_s26 + $0x134c] ss:$16 sps:$4 sm:$0xff]   ;;  %v12123_v5 = vld [vmem:[%s13396_s26 + $0x1340] ss:$16 sps:$4 sm:$0xff]  }
 0x4b0   : > { %8309 = vmatprep.subr.bf16.mxu0 %v12041_v33  ;;  %8965 = vmatprep.subr.bf16.mxu1 %v12044_v35  ;;  %v12126_v33 = vld [vmem:[%s13396_s26 + $0x1348] ss:$16 sps:$4 sm:$0xff]   ;;  %v12131_v35 = vld [vmem:[%s13396_s26 + $0x1364] ss:$16 sps:$4 sm:$0xff]  }
 0x4b3   : > { %8310 = vmatpush1.bf16.msra.mxu0 %v12039_v36  ;;  %8966 = vmatpush1.bf16.msra.mxu1 %v12042_v37  ;;  %v12134_v36 = vld [vmem:[%s13396_s26 + $0x136c] ss:$16 sps:$4 sm:$0xff]   ;;  %v12129_v37 = vld [vmem:[%s13396_s26 + $0x1360] ss:$16 sps:$4 sm:$0xff]  }
 0x4b4   : > { %8311 = vmatprep.subr.bf16.mxu0 %v12047_v38  ;;  %8967 = vmatprep.subr.bf16.mxu1 %v12050_v39  ;;  %v12132_v38 = vld [vmem:[%s13396_s26 + $0x1368] ss:$16 sps:$4 sm:$0xff]   ;;  %v12137_v39 = vld [vmem:[%s13396_s26 + $0x1384] ss:$16 sps:$4 sm:$0xff]  }
 0x4b7   : > { %8312 = vmatpush1.bf16.msra.mxu0 %v12045_v42  ;;  %8968 = vmatpush1.bf16.msra.mxu1 %v12048_v45  ;;  %v12140_v42 = vld [vmem:[%s13396_s26 + $0x138c] ss:$16 sps:$4 sm:$0xff]   ;;  %v12135_v45 = vld [vmem:[%s13396_s26 + $0x1380] ss:$16 sps:$4 sm:$0xff]  }
 0x4b8   : > { %8313 = vmatprep.subr.bf16.mxu0 %v12053_v46  ;;  %8969 = vmatprep.subr.bf16.mxu1 %v12056_v47  ;;  %v12138_v46 = vld [vmem:[%s13396_s26 + $0x1388] ss:$16 sps:$4 sm:$0xff]   ;;  %v12143_v47 = vld [vmem:[%s13396_s26 + $0x13a4] ss:$16 sps:$4 sm:$0xff]  }
 0x4bb   : > { %8314 = vmatpush1.bf16.msra.mxu0 %v12051_v30  ;;  %8970 = vmatpush1.bf16.msra.mxu1 %v12054_v48  ;;  %v12146_v30 = vld [vmem:[%s13396_s26 + $0x13ac] ss:$16 sps:$4 sm:$0xff]   ;;  %v12141_v48 = vld [vmem:[%s13396_s26 + $0x13a0] ss:$16 sps:$4 sm:$0xff]  }
 0x4bc   : > { %8315 = vmatprep.subr.bf16.mxu0 %v12059_v49  ;;  %8971 = vmatprep.subr.bf16.mxu1 %v12062_v50  ;;  %v12144_v49 = vld [vmem:[%s13396_s26 + $0x13a8] ss:$16 sps:$4 sm:$0xff]   ;;  %v12149_v50 = vld [vmem:[%s13396_s26 + $0x13c4] ss:$16 sps:$4 sm:$0xff]  }
 0x4bf   : > { %8316 = vmatpush1.bf16.msra.mxu0 %v12057_v40  ;;  %8972 = vmatpush1.bf16.msra.mxu1 %v12060_v51  ;;  %v12152_v40 = vld [vmem:[%s13396_s26 + $0x13cc] ss:$16 sps:$4 sm:$0xff]   ;;  %v2707_v51 = vcombine.high %v14059_v24, %v14059_v24  ;;  %v12153_v24 = vld [vmem:[%s13396_s26 + $0x13e0] ss:$16 sps:$4 sm:$0xff]  }
 0x4c0   : > { %8326 = vmatprep.subr.bf16.mxu0 %v12065_v52  ;;  %8982 = vmatprep.subr.bf16.mxu1 %v12068_v7  ;;  %v12147_v52 = vld [vmem:[%s13396_s26 + $0x13c0] ss:$16 sps:$4 sm:$0xff]   ;;  %v12150_v7 = vld [vmem:[%s13396_s26 + $0x13c8] ss:$16 sps:$4 sm:$0xff]  }
 0x4c2   : > { %8318 = vmatmul.mubr.bf16.vlgmr.msra.gmra.mrb[0].mxu0 %v14148_v54  ;;  %8974 = vmatmul.mubr.bf16.vlgmr.msra.gmra.mrb[0].mxu1 %v14148_v54 }
 0x4c3   : > { %8327 = vmatpush1.bf16.msra.mxu0 %v12063_v55  ;;  %8983 = vmatpush1.bf16.msra.mxu1 %v12066_v56  ;;  %v12155_v55 = vld [vmem:[%s13396_s26 + $0x13e4] ss:$16 sps:$4 sm:$0xff]   ;;  %v12158_v56 = vld [vmem:[%s13396_s26 + $0x13ec] ss:$16 sps:$4 sm:$0xff]  }
 0x4c4   : > { %8328 = vmatprep.subr.bf16.mxu0 %v12071_v57  ;;  %8984 = vmatprep.subr.bf16.mxu1 %v12074_v6  ;;  %v14217_v57 = vrot.slane %v2707_v51, %v13524_v41  ;;  %v12156_v6 = vld [vmem:[%s13396_s26 + $0x13e8] ss:$16 sps:$4 sm:$0xff]  }
 0x4c5   : > { %8358 = vmatprep.mubr.bf16.mxu0 %v2754_v58  ;;  %9014 = vmatprep.mubr.bf16.mxu1 %v2754_v58  ;;  %v12161_v58 = vld [vmem:[%s13396_s26 + $0x1404] ss:$16 sps:$4 sm:$0xff]   ;;  %v12234_v51 = vld [vmem:[%s13396_s26 + $0x1588] ss:$16 sps:$4 sm:$0xff]  }
 0x4c7   : > { %8329 = vmatpush1.bf16.msra.mxu0 %v12069_v43  ;;  %8985 = vmatpush1.bf16.msra.mxu1 %v12072_v59  ;;  %v12164_v43 = vld [vmem:[%s13396_s26 + $0x140c] ss:$16 sps:$4 sm:$0xff]   ;;  %v2723_v59 = vcombine.high %v14217_v57, %v14217_v57 }
 0x4c8   : > { %8330 = vmatprep.subr.bf16.mxu0 %v12077_v60  ;;  %8986 = vmatprep.subr.bf16.mxu1 %v12080_v61  ;;  %v2752_v60 = vcombine.high %v14148_v54, %v14148_v54  ;;  %v12159_v61 = vld [vmem:[%s13396_s26 + $0x1400] ss:$16 sps:$4 sm:$0xff]  }
 0x4c9   : > { %v12165_v54 = vld [vmem:[%s13396_s26 + $0x1420] ss:$16 sps:$4 sm:$0xff]  }
 0x4cb   : > { %8331 = vmatpush1.bf16.msra.mxu0 %v12075_v53  ;;  %8987 = vmatpush1.bf16.msra.mxu1 %v12078_v62  ;;  %v12162_v53 = vld [vmem:[%s13396_s26 + $0x1408] ss:$16 sps:$4 sm:$0xff]   ;;  %v12167_v62 = vld [vmem:[%s13396_s26 + $0x1424] ss:$16 sps:$4 sm:$0xff]  }
 0x4cc   : > { %8332 = vmatprep.subr.bf16.mxu0 %v12083_v63  ;;  %8988 = vmatprep.subr.bf16.mxu1 %v12086_v0  ;;  %v12170_v63 = vld [vmem:[%s13396_s26 + $0x142c] ss:$16 sps:$4 sm:$0xff]   ;;  %v14232_v0 = vrot.slane %v2723_v59, %v13524_v41  ;;  %v12251_v59 = vld [vmem:[%s13396_s26 + $0x15e4] ss:$16 sps:$4 sm:$0xff]  }
 0x4cf   : > { %8333 = vmatpush1.bf16.msra.mxu0 %v12081_v3  ;;  %8989 = vmatpush1.bf16.msra.mxu1 %v12084_v4  ;;  %v12168_v3 = vld [vmem:[%s13396_s26 + $0x1428] ss:$16 sps:$4 sm:$0xff]   ;;  %v12173_v4 = vld [vmem:[%s13396_s26 + $0x1444] ss:$16 sps:$4 sm:$0xff]  }
 0x4d0   : > { %8334 = vmatprep.subr.bf16.mxu0 %v12089_v1  ;;  %8990 = vmatprep.subr.bf16.mxu1 %v12092_v8  ;;  %v12176_v1 = vld [vmem:[%s13396_s26 + $0x144c] ss:$16 sps:$4 sm:$0xff]   ;;  %v12171_v8 = vld [vmem:[%s13396_s26 + $0x1440] ss:$16 sps:$4 sm:$0xff]  }
 0x4d3   : > { %8335 = vmatpush1.bf16.msra.mxu0 %v12087_v10  ;;  %8991 = vmatpush1.bf16.msra.mxu1 %v12090_v44  ;;  %v12174_v10 = vld [vmem:[%s13396_s26 + $0x1448] ss:$16 sps:$4 sm:$0xff]   ;;  %v12179_v44 = vld [vmem:[%s13396_s26 + $0x1464] ss:$16 sps:$4 sm:$0xff]  }
 0x4d4   : > { %8336 = vmatprep.subr.bf16.mxu0 %v12095_v11  ;;  %8992 = vmatprep.subr.bf16.mxu1 %v12098_v12  ;;  %v12182_v11 = vld [vmem:[%s13396_s26 + $0x146c] ss:$16 sps:$4 sm:$0xff]   ;;  %v12177_v12 = vld [vmem:[%s13396_s26 + $0x1460] ss:$16 sps:$4 sm:$0xff]  }
 0x4d7   : > { %8337 = vmatpush1.bf16.msra.mxu0 %v12093_v13  ;;  %8993 = vmatpush1.bf16.msra.mxu1 %v12096_v2  ;;  %v12180_v13 = vld [vmem:[%s13396_s26 + $0x1468] ss:$16 sps:$4 sm:$0xff]   ;;  %v12185_v2 = vld [vmem:[%s13396_s26 + $0x1484] ss:$16 sps:$4 sm:$0xff]  }
 0x4d8   : > { %8338 = vmatprep.subr.bf16.mxu0 %v12101_v14  ;;  %8994 = vmatprep.subr.bf16.mxu1 %v12104_v15  ;;  %v12188_v14 = vld [vmem:[%s13396_s26 + $0x148c] ss:$16 sps:$4 sm:$0xff]   ;;  %v12183_v15 = vld [vmem:[%s13396_s26 + $0x1480] ss:$16 sps:$4 sm:$0xff]  }
 0x4db   : > { %8339 = vmatpush1.bf16.msra.mxu0 %v12099_v16  ;;  %8995 = vmatpush1.bf16.msra.mxu1 %v12102_v18  ;;  %v12186_v16 = vld [vmem:[%s13396_s26 + $0x1488] ss:$16 sps:$4 sm:$0xff]   ;;  %v12191_v18 = vld [vmem:[%s13396_s26 + $0x14a4] ss:$16 sps:$4 sm:$0xff]  }
 0x4dc   : > { %8340 = vmatprep.subr.bf16.mxu0 %v12107_v19  ;;  %8996 = vmatprep.subr.bf16.mxu1 %v12110_v20  ;;  %v12194_v19 = vld [vmem:[%s13396_s26 + $0x14ac] ss:$16 sps:$4 sm:$0xff]   ;;  %v12189_v20 = vld [vmem:[%s13396_s26 + $0x14a0] ss:$16 sps:$4 sm:$0xff]  }
 0x4df   : > { %8341 = vmatpush1.bf16.msra.mxu0 %v12105_v21  ;;  %8997 = vmatpush1.bf16.msra.mxu1 %v12108_v22  ;;  %v12192_v21 = vld [vmem:[%s13396_s26 + $0x14a8] ss:$16 sps:$4 sm:$0xff]   ;;  %v12197_v22 = vld [vmem:[%s13396_s26 + $0x14c4] ss:$16 sps:$4 sm:$0xff]  }
 0x4e0   : > { %8342 = vmatprep.subr.bf16.mxu0 %v12113_v9  ;;  %8998 = vmatprep.subr.bf16.mxu1 %v12116_v23  ;;  %v12200_v9 = vld [vmem:[%s13396_s26 + $0x14cc] ss:$16 sps:$4 sm:$0xff]   ;;  %v12195_v23 = vld [vmem:[%s13396_s26 + $0x14c0] ss:$16 sps:$4 sm:$0xff]  }
 0x4e3   : > { %8343 = vmatpush1.bf16.msra.mxu0 %v12111_v25  ;;  %8999 = vmatpush1.bf16.msra.mxu1 %v12114_v26  ;;  %v12198_v25 = vld [vmem:[%s13396_s26 + $0x14c8] ss:$16 sps:$4 sm:$0xff]   ;;  %v12203_v26 = vld [vmem:[%s13396_s26 + $0x14e4] ss:$16 sps:$4 sm:$0xff]  }
 0x4e4   : > { %8344 = vmatprep.subr.bf16.mxu0 %v12119_v17  ;;  %9000 = vmatprep.subr.bf16.mxu1 %v12122_v27  ;;  %v12206_v17 = vld [vmem:[%s13396_s26 + $0x14ec] ss:$16 sps:$4 sm:$0xff]   ;;  %v12201_v27 = vld [vmem:[%s13396_s26 + $0x14e0] ss:$16 sps:$4 sm:$0xff]  }
 0x4e7   : > { %8345 = vmatpush1.bf16.msra.mxu0 %v12117_v28  ;;  %9001 = vmatpush1.bf16.msra.mxu1 %v12120_v29  ;;  %v12204_v28 = vld [vmem:[%s13396_s26 + $0x14e8] ss:$16 sps:$4 sm:$0xff]   ;;  %v12209_v29 = vld [vmem:[%s13396_s26 + $0x1504] ss:$16 sps:$4 sm:$0xff]  }
 0x4e8   : > { %8346 = vmatprep.subr.bf16.mxu0 %v12125_v31  ;;  %9002 = vmatprep.subr.bf16.mxu1 %v12128_v32  ;;  %v12212_v31 = vld [vmem:[%s13396_s26 + $0x150c] ss:$16 sps:$4 sm:$0xff]   ;;  %v12207_v32 = vld [vmem:[%s13396_s26 + $0x1500] ss:$16 sps:$4 sm:$0xff]  }
 0x4eb   : > { %8347 = vmatpush1.bf16.msra.mxu0 %v12123_v5  ;;  %9003 = vmatpush1.bf16.msra.mxu1 %v12126_v33  ;;  %v12210_v5 = vld [vmem:[%s13396_s26 + $0x1508] ss:$16 sps:$4 sm:$0xff]   ;;  %v12215_v33 = vld [vmem:[%s13396_s26 + $0x1524] ss:$16 sps:$4 sm:$0xff]  }
 0x4ec   : > { %8348 = vmatprep.subr.bf16.mxu0 %v12131_v35  ;;  %9004 = vmatprep.subr.bf16.mxu1 %v12134_v36  ;;  %v12218_v35 = vld [vmem:[%s13396_s26 + $0x152c] ss:$16 sps:$4 sm:$0xff]   ;;  %v12213_v36 = vld [vmem:[%s13396_s26 + $0x1520] ss:$16 sps:$4 sm:$0xff]  }
 0x4ef   : > { %8349 = vmatpush1.bf16.msra.mxu0 %v12129_v37  ;;  %9005 = vmatpush1.bf16.msra.mxu1 %v12132_v38  ;;  %v12216_v37 = vld [vmem:[%s13396_s26 + $0x1528] ss:$16 sps:$4 sm:$0xff]   ;;  %v12221_v38 = vld [vmem:[%s13396_s26 + $0x1544] ss:$16 sps:$4 sm:$0xff]  }
 0x4f0   : > { %8350 = vmatprep.subr.bf16.mxu0 %v12137_v39  ;;  %9006 = vmatprep.subr.bf16.mxu1 %v12140_v42  ;;  %v12224_v39 = vld [vmem:[%s13396_s26 + $0x154c] ss:$16 sps:$4 sm:$0xff]   ;;  %v12219_v42 = vld [vmem:[%s13396_s26 + $0x1540] ss:$16 sps:$4 sm:$0xff]  }
 0x4f3   : > { %8351 = vmatpush1.bf16.msra.mxu0 %v12135_v45  ;;  %9007 = vmatpush1.bf16.msra.mxu1 %v12138_v46  ;;  %v12222_v45 = vld [vmem:[%s13396_s26 + $0x1548] ss:$16 sps:$4 sm:$0xff]   ;;  %v12227_v46 = vld [vmem:[%s13396_s26 + $0x1564] ss:$16 sps:$4 sm:$0xff]  }
 0x4f4   : > { %8352 = vmatprep.subr.bf16.mxu0 %v12143_v47  ;;  %9008 = vmatprep.subr.bf16.mxu1 %v12146_v30  ;;  %v12230_v47 = vld [vmem:[%s13396_s26 + $0x156c] ss:$16 sps:$4 sm:$0xff]   ;;  %v12225_v30 = vld [vmem:[%s13396_s26 + $0x1560] ss:$16 sps:$4 sm:$0xff]  }
 0x4f7   : > { %8353 = vmatpush1.bf16.msra.mxu0 %v12141_v48  ;;  %9009 = vmatpush1.bf16.msra.mxu1 %v12144_v49  ;;  %v12228_v48 = vld [vmem:[%s13396_s26 + $0x1568] ss:$16 sps:$4 sm:$0xff]   ;;  %v12233_v49 = vld [vmem:[%s13396_s26 + $0x1584] ss:$16 sps:$4 sm:$0xff]  }
 0x4f8   : > { %8354 = vmatprep.subr.bf16.mxu0 %v12149_v50  ;;  %9010 = vmatprep.subr.bf16.mxu1 %v12152_v40  ;;  %v12236_v50 = vld [vmem:[%s13396_s26 + $0x158c] ss:$16 sps:$4 sm:$0xff]   ;;  %v12231_v40 = vld [vmem:[%s13396_s26 + $0x1580] ss:$16 sps:$4 sm:$0xff]  }
 0x4fb   : > { %8355 = vmatpush1.bf16.msra.mxu0 %v12147_v52  ;;  %9011 = vmatpush1.bf16.msra.mxu1 %v12150_v7  ;;  %v12239_v52 = vld [vmem:[%s13396_s26 + $0x15a4] ss:$16 sps:$4 sm:$0xff]   ;;  %v12242_v7 = vld [vmem:[%s13396_s26 + $0x15ac] ss:$16 sps:$4 sm:$0xff]  }
 0x4fc   : > { %8356 = vmatprep.subr.bf16.mxu0 %v12155_v55  ;;  %9012 = vmatprep.subr.bf16.mxu1 %v12158_v56  ;;  %v12237_v55 = vld [vmem:[%s13396_s26 + $0x15a0] ss:$16 sps:$4 sm:$0xff]   ;;  %v12240_v56 = vld [vmem:[%s13396_s26 + $0x15a8] ss:$16 sps:$4 sm:$0xff]  }
 0x4ff   : > { %8357 = vmatpush1.bf16.msra.mxu0 %v12153_v24  ;;  %9013 = vmatpush1.bf16.msra.mxu1 %v12156_v6  ;;  %v12245_v24 = vld [vmem:[%s13396_s26 + $0x15c4] ss:$16 sps:$4 sm:$0xff]   ;;  %v12248_v6 = vld [vmem:[%s13396_s26 + $0x15cc] ss:$16 sps:$4 sm:$0xff]  }
 0x500   : > { %8367 = vmatprep.subr.bf16.mxu0 %v12161_v58  ;;  %9023 = vmatprep.subr.bf16.mxu1 %v12164_v43  ;;  %v12243_v58 = vld [vmem:[%s13396_s26 + $0x15c0] ss:$16 sps:$4 sm:$0xff]   ;;  %v12246_v43 = vld [vmem:[%s13396_s26 + $0x15c8] ss:$16 sps:$4 sm:$0xff]  }
 0x502   : > { %8359 = vmatmul.mubr.bf16.vlgmr.msra.gmra.mrb[0].mxu0 %v2752_v60  ;;  %9015 = vmatmul.mubr.bf16.vlgmr.msra.gmra.mrb[0].mxu1 %v2752_v60  ;;  %v12254_v60 = vld [vmem:[%s13396_s26 + $0x15ec] ss:$16 sps:$4 sm:$0xff]  }
 0x503   : > { %8368 = vmatpush1.bf16.msra.mxu0 %v12159_v61  ;;  %9024 = vmatpush1.bf16.msra.mxu1 %v12162_v53  ;;  %v12249_v61 = vld [vmem:[%s13396_s26 + $0x15e0] ss:$16 sps:$4 sm:$0xff]   ;;  %v12252_v53 = vld [vmem:[%s13396_s26 + $0x15e8] ss:$16 sps:$4 sm:$0xff]  }
 0x504   : > { %8369 = vmatprep.subr.bf16.mxu0 %v12167_v62  ;;  %9025 = vmatprep.subr.bf16.mxu1 %v12170_v63  ;;  %v12258_v62 = vld [vmem:[%s13396_s26 + $0x1604] ss:$16 sps:$4 sm:$0xff]   ;;  %v12261_v63 = vld [vmem:[%s13396_s26 + $0x160c] ss:$16 sps:$4 sm:$0xff]  }
 0x505   : > { %8399 = vmatprep.mubr.bf16.mxu0 %v14232_v0  ;;  %9055 = vmatprep.mubr.bf16.mxu1 %v14232_v0 }
 0x507   : > { %8370 = vmatpush1.bf16.msra.mxu0 %v12165_v54  ;;  %9026 = vmatpush1.bf16.msra.mxu1 %v12168_v3  ;;  %v14298_v54 = vrot.slane %v14217_v57, %v13524_v41  ;;  %v12256_v3 = vld [vmem:[%s13396_s26 + $0x1600] ss:$16 sps:$4 sm:$0xff]  }
 0x508   : > { %8371 = vmatprep.subr.bf16.mxu0 %v12173_v4  ;;  %9027 = vmatprep.subr.bf16.mxu1 %v12176_v1  ;;  %v12259_v4 = vld [vmem:[%s13396_s26 + $0x1608] ss:$16 sps:$4 sm:$0xff]   ;;  %v12264_v1 = vld [vmem:[%s13396_s26 + $0x1624] ss:$16 sps:$4 sm:$0xff]   ;;  %v12262_v57 = vld [vmem:[%s13396_s26 + $0x1620] ss:$16 sps:$4 sm:$0xff]  }
 0x50b   : > { %8372 = vmatpush1.bf16.msra.mxu0 %v12171_v8  ;;  %9028 = vmatpush1.bf16.msra.mxu1 %v12174_v10  ;;  %v12267_v8 = vld [vmem:[%s13396_s26 + $0x162c] ss:$16 sps:$4 sm:$0xff]   ;;  %v2755_v10 = vcombine.high %v14232_v0, %v14232_v0  ;;  %v12268_v0 = vld [vmem:[%s13396_s26 + $0x1640] ss:$16 sps:$4 sm:$0xff]  }
 0x50c   : > { %8373 = vmatprep.subr.bf16.mxu0 %v12179_v44  ;;  %9029 = vmatprep.subr.bf16.mxu1 %v12182_v11  ;;  %v12265_v44 = vld [vmem:[%s13396_s26 + $0x1628] ss:$16 sps:$4 sm:$0xff]   ;;  %v12270_v11 = vld [vmem:[%s13396_s26 + $0x1644] ss:$16 sps:$4 sm:$0xff]  }
 0x50f   : > { %8374 = vmatpush1.bf16.msra.mxu0 %v12177_v12  ;;  %9030 = vmatpush1.bf16.msra.mxu1 %v12180_v13  ;;  %v12273_v12 = vld [vmem:[%s13396_s26 + $0x164c] ss:$16 sps:$4 sm:$0xff]   ;;  %v12271_v13 = vld [vmem:[%s13396_s26 + $0x1648] ss:$16 sps:$4 sm:$0xff]  }
 0x510   : > { %8375 = vmatprep.subr.bf16.mxu0 %v12185_v2  ;;  %9031 = vmatprep.subr.bf16.mxu1 %v12188_v14  ;;  %v12276_v2 = vld [vmem:[%s13396_s26 + $0x1664] ss:$16 sps:$4 sm:$0xff]   ;;  %v12279_v14 = vld [vmem:[%s13396_s26 + $0x166c] ss:$16 sps:$4 sm:$0xff]  }
 0x513   : > { %8376 = vmatpush1.bf16.msra.mxu0 %v12183_v15  ;;  %9032 = vmatpush1.bf16.msra.mxu1 %v12186_v16  ;;  %v12274_v15 = vld [vmem:[%s13396_s26 + $0x1660] ss:$16 sps:$4 sm:$0xff]   ;;  %v12277_v16 = vld [vmem:[%s13396_s26 + $0x1668] ss:$16 sps:$4 sm:$0xff]  }
 0x514   : > { %8377 = vmatprep.subr.bf16.mxu0 %v12191_v18  ;;  %9033 = vmatprep.subr.bf16.mxu1 %v12194_v19  ;;  %v12282_v18 = vld [vmem:[%s13396_s26 + $0x1684] ss:$16 sps:$4 sm:$0xff]   ;;  %v12285_v19 = vld [vmem:[%s13396_s26 + $0x168c] ss:$16 sps:$4 sm:$0xff]  }
 0x517   : > { %8378 = vmatpush1.bf16.msra.mxu0 %v12189_v20  ;;  %9034 = vmatpush1.bf16.msra.mxu1 %v12192_v21  ;;  %v12280_v20 = vld [vmem:[%s13396_s26 + $0x1680] ss:$16 sps:$4 sm:$0xff]   ;;  %v12283_v21 = vld [vmem:[%s13396_s26 + $0x1688] ss:$16 sps:$4 sm:$0xff]  }
 0x518   : > { %8379 = vmatprep.subr.bf16.mxu0 %v12197_v22  ;;  %9035 = vmatprep.subr.bf16.mxu1 %v12200_v9  ;;  %v12288_v22 = vld [vmem:[%s13396_s26 + $0x16a4] ss:$16 sps:$4 sm:$0xff]   ;;  %v12291_v9 = vld [vmem:[%s13396_s26 + $0x16ac] ss:$16 sps:$4 sm:$0xff]  }
 0x51b   : > { %8380 = vmatpush1.bf16.msra.mxu0 %v12195_v23  ;;  %9036 = vmatpush1.bf16.msra.mxu1 %v12198_v25  ;;  %v12286_v23 = vld [vmem:[%s13396_s26 + $0x16a0] ss:$16 sps:$4 sm:$0xff]   ;;  %v12289_v25 = vld [vmem:[%s13396_s26 + $0x16a8] ss:$16 sps:$4 sm:$0xff]  }
 0x51c   : > { %8381 = vmatprep.subr.bf16.mxu0 %v12203_v26  ;;  %9037 = vmatprep.subr.bf16.mxu1 %v12206_v17  ;;  %v12294_v26 = vld [vmem:[%s13396_s26 + $0x16c4] ss:$16 sps:$4 sm:$0xff]   ;;  %v12297_v17 = vld [vmem:[%s13396_s26 + $0x16cc] ss:$16 sps:$4 sm:$0xff]  }
 0x51f   : > { %8382 = vmatpush1.bf16.msra.mxu0 %v12201_v27  ;;  %9038 = vmatpush1.bf16.msra.mxu1 %v12204_v28  ;;  %v12292_v27 = vld [vmem:[%s13396_s26 + $0x16c0] ss:$16 sps:$4 sm:$0xff]   ;;  %v12295_v28 = vld [vmem:[%s13396_s26 + $0x16c8] ss:$16 sps:$4 sm:$0xff]  }
 0x520   : > { %8383 = vmatprep.subr.bf16.mxu0 %v12209_v29  ;;  %9039 = vmatprep.subr.bf16.mxu1 %v12212_v31  ;;  %v12300_v29 = vld [vmem:[%s13396_s26 + $0x16e4] ss:$16 sps:$4 sm:$0xff]   ;;  %v12303_v31 = vld [vmem:[%s13396_s26 + $0x16ec] ss:$16 sps:$4 sm:$0xff]  }
 0x523   : > { %8384 = vmatpush1.bf16.msra.mxu0 %v12207_v32  ;;  %9040 = vmatpush1.bf16.msra.mxu1 %v12210_v5  ;;  %v12298_v32 = vld [vmem:[%s13396_s26 + $0x16e0] ss:$16 sps:$4 sm:$0xff]   ;;  %v12301_v5 = vld [vmem:[%s13396_s26 + $0x16e8] ss:$16 sps:$4 sm:$0xff]  }
 0x524   : > { %8385 = vmatprep.subr.bf16.mxu0 %v12215_v33  ;;  %9041 = vmatprep.subr.bf16.mxu1 %v12218_v35  ;;  %v12306_v33 = vld [vmem:[%s13396_s26 + $0x1704] ss:$16 sps:$4 sm:$0xff]   ;;  %v12309_v35 = vld [vmem:[%s13396_s26 + $0x170c] ss:$16 sps:$4 sm:$0xff]  }
 0x527   : > { %8386 = vmatpush1.bf16.msra.mxu0 %v12213_v36  ;;  %9042 = vmatpush1.bf16.msra.mxu1 %v12216_v37  ;;  %v12304_v36 = vld [vmem:[%s13396_s26 + $0x1700] ss:$16 sps:$4 sm:$0xff]   ;;  %v12307_v37 = vld [vmem:[%s13396_s26 + $0x1708] ss:$16 sps:$4 sm:$0xff]  }
 0x528   : > { %8387 = vmatprep.subr.bf16.mxu0 %v12221_v38  ;;  %9043 = vmatprep.subr.bf16.mxu1 %v12224_v39  ;;  %v12312_v38 = vld [vmem:[%s13396_s26 + $0x1724] ss:$16 sps:$4 sm:$0xff]   ;;  %v12315_v39 = vld [vmem:[%s13396_s26 + $0x172c] ss:$16 sps:$4 sm:$0xff]  }
 0x52b   : > { %8388 = vmatpush1.bf16.msra.mxu0 %v12219_v42  ;;  %9044 = vmatpush1.bf16.msra.mxu1 %v12222_v45  ;;  %v12310_v42 = vld [vmem:[%s13396_s26 + $0x1720] ss:$16 sps:$4 sm:$0xff]   ;;  %v12313_v45 = vld [vmem:[%s13396_s26 + $0x1728] ss:$16 sps:$4 sm:$0xff]  }
 0x52c   : > { %8389 = vmatprep.subr.bf16.mxu0 %v12227_v46  ;;  %9045 = vmatprep.subr.bf16.mxu1 %v12230_v47  ;;  %v12318_v46 = vld [vmem:[%s13396_s26 + $0x1744] ss:$16 sps:$4 sm:$0xff]   ;;  %v12321_v47 = vld [vmem:[%s13396_s26 + $0x174c] ss:$16 sps:$4 sm:$0xff]  }
 0x52f   : > { %8390 = vmatpush1.bf16.msra.mxu0 %v12225_v30  ;;  %9046 = vmatpush1.bf16.msra.mxu1 %v12228_v48  ;;  %v12316_v30 = vld [vmem:[%s13396_s26 + $0x1740] ss:$16 sps:$4 sm:$0xff]   ;;  %v12319_v48 = vld [vmem:[%s13396_s26 + $0x1748] ss:$16 sps:$4 sm:$0xff]  }
 0x530   : > { %8391 = vmatprep.subr.bf16.mxu0 %v12233_v49  ;;  %9047 = vmatprep.subr.bf16.mxu1 %v12236_v50  ;;  %v12324_v49 = vld [vmem:[%s13396_s26 + $0x1764] ss:$16 sps:$4 sm:$0xff]   ;;  %v12327_v50 = vld [vmem:[%s13396_s26 + $0x176c] ss:$16 sps:$4 sm:$0xff]  }
 0x533   : > { %8392 = vmatpush1.bf16.msra.mxu0 %v12231_v40  ;;  %9048 = vmatpush1.bf16.msra.mxu1 %v12234_v51  ;;  %v12322_v40 = vld [vmem:[%s13396_s26 + $0x1760] ss:$16 sps:$4 sm:$0xff]   ;;  %v12325_v51 = vld [vmem:[%s13396_s26 + $0x1768] ss:$16 sps:$4 sm:$0xff]  }
 0x534   : > { %8393 = vmatprep.subr.bf16.mxu0 %v12239_v52  ;;  %9049 = vmatprep.subr.bf16.mxu1 %v12242_v7  ;;  %v12330_v52 = vld [vmem:[%s13396_s26 + $0x1784] ss:$16 sps:$4 sm:$0xff]   ;;  %v12333_v7 = vld [vmem:[%s13396_s26 + $0x178c] ss:$16 sps:$4 sm:$0xff]  }
 0x537   : > { %8394 = vmatpush1.bf16.msra.mxu0 %v12237_v55  ;;  %9050 = vmatpush1.bf16.msra.mxu1 %v12240_v56  ;;  %v12328_v55 = vld [vmem:[%s13396_s26 + $0x1780] ss:$16 sps:$4 sm:$0xff]   ;;  %v12331_v56 = vld [vmem:[%s13396_s26 + $0x1788] ss:$16 sps:$4 sm:$0xff]  }
 0x538   : > { %8395 = vmatprep.subr.bf16.mxu0 %v12245_v24  ;;  %9051 = vmatprep.subr.bf16.mxu1 %v12248_v6  ;;  %v12336_v24 = vld [vmem:[%s13396_s26 + $0x17a4] ss:$16 sps:$4 sm:$0xff]   ;;  %v12339_v6 = vld [vmem:[%s13396_s26 + $0x17ac] ss:$16 sps:$4 sm:$0xff]  }
 0x53b   : > { %8396 = vmatpush1.bf16.msra.mxu0 %v12243_v58  ;;  %9052 = vmatpush1.bf16.msra.mxu1 %v12246_v43  ;;  %v12334_v58 = vld [vmem:[%s13396_s26 + $0x17a0] ss:$16 sps:$4 sm:$0xff]   ;;  %v12337_v43 = vld [vmem:[%s13396_s26 + $0x17a8] ss:$16 sps:$4 sm:$0xff]  }
 0x53c   : > { %8397 = vmatprep.subr.bf16.mxu0 %v12251_v59  ;;  %9053 = vmatprep.subr.bf16.mxu1 %v12254_v60  ;;  %v12342_v59 = vld [vmem:[%s13396_s26 + $0x17c4] ss:$16 sps:$4 sm:$0xff]   ;;  %v12345_v60 = vld [vmem:[%s13396_s26 + $0x17cc] ss:$16 sps:$4 sm:$0xff]  }
 0x53f   : > { %8398 = vmatpush1.bf16.msra.mxu0 %v12249_v61  ;;  %9054 = vmatpush1.bf16.msra.mxu1 %v12252_v53  ;;  %v14360_v61 = vld [vmem:[#allocation2 + $0x18] sm:$0xff]  ;;  %v12340_v53 = vld [vmem:[%s13396_s26 + $0x17c0] ss:$16 sps:$4 sm:$0xff]  }
 0x540   : > { %8408 = vmatprep.subr.bf16.mxu0 %v12258_v62  ;;  %9064 = vmatprep.subr.bf16.mxu1 %v12261_v63  ;;  %v12343_v62 = vld [vmem:[%s13396_s26 + $0x17c8] ss:$16 sps:$4 sm:$0xff]   ;;  %v12348_v63 = vld [vmem:[%s13396_s26 + $0x17e4] ss:$16 sps:$4 sm:$0xff]  }
 0x542   : > { %8400 = vmatmul.mubr.bf16.vlgmr.msra.gmra.mrb[0].mxu0 %v14298_v54  ;;  %9056 = vmatmul.mubr.bf16.vlgmr.msra.gmra.mrb[0].mxu1 %v14298_v54 }
 0x543   : > { %8409 = vmatpush1.bf16.msra.mxu0 %v12256_v3  ;;  %9065 = vmatpush1.bf16.msra.mxu1 %v12259_v4  ;;  %v12351_v3 = vld [vmem:[%s13396_s26 + $0x17ec] ss:$16 sps:$4 sm:$0xff]   ;;  %v14368_v4 = vrot.slane %v14360_v61, %v13524_v41 }
 0x544   : > { %8410 = vmatprep.subr.bf16.mxu0 %v12264_v1  ;;  %9066 = vmatprep.subr.bf16.mxu1 %v12267_v8  ;;  %v12346_v1 = vld [vmem:[%s13396_s26 + $0x17e0] ss:$16 sps:$4 sm:$0xff]   ;;  %v12349_v8 = vld [vmem:[%s13396_s26 + $0x17e8] ss:$16 sps:$4 sm:$0xff]  }
 0x545   : > { %8440 = vmatprep.mubr.bf16.mxu0 %v2755_v10  ;;  %9096 = vmatprep.mubr.bf16.mxu1 %v2755_v10  ;;  %v12354_v10 = vld [vmem:[%s13396_s26 + $0x1804] ss:$16 sps:$4 sm:$0xff]  }
 0x547   : > { %8411 = vmatpush1.bf16.msra.mxu0 %v12262_v57  ;;  %9067 = vmatpush1.bf16.msra.mxu1 %v12265_v44  ;;  %v12357_v57 = vld [vmem:[%s13396_s26 + $0x180c] ss:$16 sps:$4 sm:$0xff]   ;;  %v2771_v44 = vcombine.high %v14368_v4, %v14368_v4 }
 0x548   : > { %8412 = vmatprep.subr.bf16.mxu0 %v12270_v11  ;;  %9068 = vmatprep.subr.bf16.mxu1 %v12273_v12  ;;  %v2753_v11 = vcombine.high %v14298_v54, %v14298_v54  ;;  %v12352_v12 = vld [vmem:[%s13396_s26 + $0x1800] ss:$16 sps:$4 sm:$0xff]  }
 0x549   : > { %v12358_v54 = vld [vmem:[%s13396_s26 + $0x1820] ss:$16 sps:$4 sm:$0xff]  }
 0x54b   : > { %8413 = vmatpush1.bf16.msra.mxu0 %v12268_v0  ;;  %9069 = vmatpush1.bf16.msra.mxu1 %v12271_v13  ;;  %v12355_v0 = vld [vmem:[%s13396_s26 + $0x1808] ss:$16 sps:$4 sm:$0xff]   ;;  %v12360_v13 = vld [vmem:[%s13396_s26 + $0x1824] ss:$16 sps:$4 sm:$0xff]  }
 0x54c   : > { %8414 = vmatprep.subr.bf16.mxu0 %v12276_v2  ;;  %9070 = vmatprep.subr.bf16.mxu1 %v12279_v14  ;;  %v12363_v2 = vld [vmem:[%s13396_s26 + $0x182c] ss:$16 sps:$4 sm:$0xff]   ;;  %v14383_v14 = vrot.slane %v2771_v44, %v13524_v41  ;;  %v12439_v44 = vld [vmem:[%s13396_s26 + $0x19c8] ss:$16 sps:$4 sm:$0xff]  }
 0x54f   : > { %8415 = vmatpush1.bf16.msra.mxu0 %v12274_v15  ;;  %9071 = vmatpush1.bf16.msra.mxu1 %v12277_v16  ;;  %v12361_v15 = vld [vmem:[%s13396_s26 + $0x1828] ss:$16 sps:$4 sm:$0xff]   ;;  %v12366_v16 = vld [vmem:[%s13396_s26 + $0x1844] ss:$16 sps:$4 sm:$0xff]  }
 0x550   : > { %8416 = vmatprep.subr.bf16.mxu0 %v12282_v18  ;;  %9072 = vmatprep.subr.bf16.mxu1 %v12285_v19  ;;  %v12369_v18 = vld [vmem:[%s13396_s26 + $0x184c] ss:$16 sps:$4 sm:$0xff]   ;;  %v12364_v19 = vld [vmem:[%s13396_s26 + $0x1840] ss:$16 sps:$4 sm:$0xff]  }
 0x553   : > { %8417 = vmatpush1.bf16.msra.mxu0 %v12280_v20  ;;  %9073 = vmatpush1.bf16.msra.mxu1 %v12283_v21  ;;  %v12367_v20 = vld [vmem:[%s13396_s26 + $0x1848] ss:$16 sps:$4 sm:$0xff]   ;;  %v12372_v21 = vld [vmem:[%s13396_s26 + $0x1864] ss:$16 sps:$4 sm:$0xff]  }
 0x554   : > { %8418 = vmatprep.subr.bf16.mxu0 %v12288_v22  ;;  %9074 = vmatprep.subr.bf16.mxu1 %v12291_v9  ;;  %v12375_v22 = vld [vmem:[%s13396_s26 + $0x186c] ss:$16 sps:$4 sm:$0xff]   ;;  %v12370_v9 = vld [vmem:[%s13396_s26 + $0x1860] ss:$16 sps:$4 sm:$0xff]  }
 0x557   : > { %8419 = vmatpush1.bf16.msra.mxu0 %v12286_v23  ;;  %9075 = vmatpush1.bf16.msra.mxu1 %v12289_v25  ;;  %v12373_v23 = vld [vmem:[%s13396_s26 + $0x1868] ss:$16 sps:$4 sm:$0xff]   ;;  %v12378_v25 = vld [vmem:[%s13396_s26 + $0x1884] ss:$16 sps:$4 sm:$0xff]  }
 0x558   : > { %8420 = vmatprep.subr.bf16.mxu0 %v12294_v26  ;;  %9076 = vmatprep.subr.bf16.mxu1 %v12297_v17  ;;  %v12381_v26 = vld [vmem:[%s13396_s26 + $0x188c] ss:$16 sps:$4 sm:$0xff]   ;;  %v12376_v17 = vld [vmem:[%s13396_s26 + $0x1880] ss:$16 sps:$4 sm:$0xff]  }
 0x55b   : > { %8421 = vmatpush1.bf16.msra.mxu0 %v12292_v27  ;;  %9077 = vmatpush1.bf16.msra.mxu1 %v12295_v28  ;;  %v12379_v27 = vld [vmem:[%s13396_s26 + $0x1888] ss:$16 sps:$4 sm:$0xff]   ;;  %v12384_v28 = vld [vmem:[%s13396_s26 + $0x18a4] ss:$16 sps:$4 sm:$0xff]  }
 0x55c   : > { %8422 = vmatprep.subr.bf16.mxu0 %v12300_v29  ;;  %9078 = vmatprep.subr.bf16.mxu1 %v12303_v31  ;;  %v12387_v29 = vld [vmem:[%s13396_s26 + $0x18ac] ss:$16 sps:$4 sm:$0xff]   ;;  %v12382_v31 = vld [vmem:[%s13396_s26 + $0x18a0] ss:$16 sps:$4 sm:$0xff]  }
 0x55f   : > { %8423 = vmatpush1.bf16.msra.mxu0 %v12298_v32  ;;  %9079 = vmatpush1.bf16.msra.mxu1 %v12301_v5  ;;  %v12385_v32 = vld [vmem:[%s13396_s26 + $0x18a8] ss:$16 sps:$4 sm:$0xff]   ;;  %v12390_v5 = vld [vmem:[%s13396_s26 + $0x18c4] ss:$16 sps:$4 sm:$0xff]  }
 0x560   : > { %8424 = vmatprep.subr.bf16.mxu0 %v12306_v33  ;;  %9080 = vmatprep.subr.bf16.mxu1 %v12309_v35  ;;  %v12393_v33 = vld [vmem:[%s13396_s26 + $0x18cc] ss:$16 sps:$4 sm:$0xff]   ;;  %v12388_v35 = vld [vmem:[%s13396_s26 + $0x18c0] ss:$16 sps:$4 sm:$0xff]  }
 0x563   : > { %8425 = vmatpush1.bf16.msra.mxu0 %v12304_v36  ;;  %9081 = vmatpush1.bf16.msra.mxu1 %v12307_v37  ;;  %v12391_v36 = vld [vmem:[%s13396_s26 + $0x18c8] ss:$16 sps:$4 sm:$0xff]   ;;  %v12396_v37 = vld [vmem:[%s13396_s26 + $0x18e4] ss:$16 sps:$4 sm:$0xff]  }
 0x564   : > { %8426 = vmatprep.subr.bf16.mxu0 %v12312_v38  ;;  %9082 = vmatprep.subr.bf16.mxu1 %v12315_v39  ;;  %v12399_v38 = vld [vmem:[%s13396_s26 + $0x18ec] ss:$16 sps:$4 sm:$0xff]   ;;  %v12394_v39 = vld [vmem:[%s13396_s26 + $0x18e0] ss:$16 sps:$4 sm:$0xff]  }
 0x567   : > { %8427 = vmatpush1.bf16.msra.mxu0 %v12310_v42  ;;  %9083 = vmatpush1.bf16.msra.mxu1 %v12313_v45  ;;  %v12397_v42 = vld [vmem:[%s13396_s26 + $0x18e8] ss:$16 sps:$4 sm:$0xff]   ;;  %v12402_v45 = vld [vmem:[%s13396_s26 + $0x1904] ss:$16 sps:$4 sm:$0xff]  }
 0x568   : > { %8428 = vmatprep.subr.bf16.mxu0 %v12318_v46  ;;  %9084 = vmatprep.subr.bf16.mxu1 %v12321_v47  ;;  %v12405_v46 = vld [vmem:[%s13396_s26 + $0x190c] ss:$16 sps:$4 sm:$0xff]   ;;  %v12400_v47 = vld [vmem:[%s13396_s26 + $0x1900] ss:$16 sps:$4 sm:$0xff]  }
 0x56b   : > { %8429 = vmatpush1.bf16.msra.mxu0 %v12316_v30  ;;  %9085 = vmatpush1.bf16.msra.mxu1 %v12319_v48  ;;  %v12403_v30 = vld [vmem:[%s13396_s26 + $0x1908] ss:$16 sps:$4 sm:$0xff]   ;;  %v12408_v48 = vld [vmem:[%s13396_s26 + $0x1924] ss:$16 sps:$4 sm:$0xff]  }
 0x56c   : > { %8430 = vmatprep.subr.bf16.mxu0 %v12324_v49  ;;  %9086 = vmatprep.subr.bf16.mxu1 %v12327_v50  ;;  %v12411_v49 = vld [vmem:[%s13396_s26 + $0x192c] ss:$16 sps:$4 sm:$0xff]   ;;  %v12406_v50 = vld [vmem:[%s13396_s26 + $0x1920] ss:$16 sps:$4 sm:$0xff]  }
 0x56f   : > { %8431 = vmatpush1.bf16.msra.mxu0 %v12322_v40  ;;  %9087 = vmatpush1.bf16.msra.mxu1 %v12325_v51  ;;  %v12409_v40 = vld [vmem:[%s13396_s26 + $0x1928] ss:$16 sps:$4 sm:$0xff]   ;;  %v12414_v51 = vld [vmem:[%s13396_s26 + $0x1944] ss:$16 sps:$4 sm:$0xff]  }
 0x570   : > { %8432 = vmatprep.subr.bf16.mxu0 %v12330_v52  ;;  %9088 = vmatprep.subr.bf16.mxu1 %v12333_v7  ;;  %v12417_v52 = vld [vmem:[%s13396_s26 + $0x194c] ss:$16 sps:$4 sm:$0xff]   ;;  %v12412_v7 = vld [vmem:[%s13396_s26 + $0x1940] ss:$16 sps:$4 sm:$0xff]  }
 0x573   : > { %8433 = vmatpush1.bf16.msra.mxu0 %v12328_v55  ;;  %9089 = vmatpush1.bf16.msra.mxu1 %v12331_v56  ;;  %v12415_v55 = vld [vmem:[%s13396_s26 + $0x1948] ss:$16 sps:$4 sm:$0xff]   ;;  %v12420_v56 = vld [vmem:[%s13396_s26 + $0x1964] ss:$16 sps:$4 sm:$0xff]  }
 0x574   : > { %8434 = vmatprep.subr.bf16.mxu0 %v12336_v24  ;;  %9090 = vmatprep.subr.bf16.mxu1 %v12339_v6  ;;  %v12423_v24 = vld [vmem:[%s13396_s26 + $0x196c] ss:$16 sps:$4 sm:$0xff]   ;;  %v12418_v6 = vld [vmem:[%s13396_s26 + $0x1960] ss:$16 sps:$4 sm:$0xff]  }
 0x577   : > { %8435 = vmatpush1.bf16.msra.mxu0 %v12334_v58  ;;  %9091 = vmatpush1.bf16.msra.mxu1 %v12337_v43  ;;  %v12421_v58 = vld [vmem:[%s13396_s26 + $0x1968] ss:$16 sps:$4 sm:$0xff]   ;;  %v12426_v43 = vld [vmem:[%s13396_s26 + $0x1984] ss:$16 sps:$4 sm:$0xff]  }
 0x578   : > { %8436 = vmatprep.subr.bf16.mxu0 %v12342_v59  ;;  %9092 = vmatprep.subr.bf16.mxu1 %v12345_v60  ;;  %v12429_v59 = vld [vmem:[%s13396_s26 + $0x198c] ss:$16 sps:$4 sm:$0xff]   ;;  %v12424_v60 = vld [vmem:[%s13396_s26 + $0x1980] ss:$16 sps:$4 sm:$0xff]  }
 0x57b   : > { %8437 = vmatpush1.bf16.msra.mxu0 %v12340_v53  ;;  %9093 = vmatpush1.bf16.msra.mxu1 %v12343_v62  ;;  %v12427_v53 = vld [vmem:[%s13396_s26 + $0x1988] ss:$16 sps:$4 sm:$0xff]   ;;  %v12432_v62 = vld [vmem:[%s13396_s26 + $0x19a4] ss:$16 sps:$4 sm:$0xff]  }
 0x57c   : > { %8438 = vmatprep.subr.bf16.mxu0 %v12348_v63  ;;  %9094 = vmatprep.subr.bf16.mxu1 %v12351_v3  ;;  %v12435_v63 = vld [vmem:[%s13396_s26 + $0x19ac] ss:$16 sps:$4 sm:$0xff]   ;;  %v12430_v3 = vld [vmem:[%s13396_s26 + $0x19a0] ss:$16 sps:$4 sm:$0xff]  }
 0x57f   : > { %8439 = vmatpush1.bf16.msra.mxu0 %v12346_v1  ;;  %9095 = vmatpush1.bf16.msra.mxu1 %v12349_v8  ;;  %v12433_v1 = vld [vmem:[%s13396_s26 + $0x19a8] ss:$16 sps:$4 sm:$0xff]   ;;  %v12438_v8 = vld [vmem:[%s13396_s26 + $0x19c4] ss:$16 sps:$4 sm:$0xff]  }
 0x580   : > { %8449 = vmatprep.subr.bf16.mxu0 %v12354_v10  ;;  %9105 = vmatprep.subr.bf16.mxu1 %v12357_v57  ;;  %v12441_v10 = vld [vmem:[%s13396_s26 + $0x19cc] ss:$16 sps:$4 sm:$0xff]   ;;  %v12436_v57 = vld [vmem:[%s13396_s26 + $0x19c0] ss:$16 sps:$4 sm:$0xff]  }
 0x582   : > { %8441 = vmatmul.mubr.bf16.vlgmr.msra.gmra.mrb[0].mxu0 %v2753_v11  ;;  %9097 = vmatmul.mubr.bf16.vlgmr.msra.gmra.mrb[0].mxu1 %v2753_v11  ;;  %v12444_v11 = vld [vmem:[%s13396_s26 + $0x19e4] ss:$16 sps:$4 sm:$0xff]  }
 0x583   : > { %8450 = vmatpush1.bf16.msra.mxu0 %v12352_v12  ;;  %9106 = vmatpush1.bf16.msra.mxu1 %v12355_v0  ;;  %v12447_v12 = vld [vmem:[%s13396_s26 + $0x19ec] ss:$16 sps:$4 sm:$0xff]   ;;  %v12442_v0 = vld [vmem:[%s13396_s26 + $0x19e0] ss:$16 sps:$4 sm:$0xff]  }
 0x584   : > { %8451 = vmatprep.subr.bf16.mxu0 %v12360_v13  ;;  %9107 = vmatprep.subr.bf16.mxu1 %v12363_v2  ;;  %v12445_v13 = vld [vmem:[%s13396_s26 + $0x19e8] ss:$16 sps:$4 sm:$0xff]   ;;  %v12450_v2 = vld [vmem:[%s13396_s26 + $0x1a04] ss:$16 sps:$4 sm:$0xff]  }
 0x585   : > { %8481 = vmatprep.mubr.bf16.mxu0 %v14383_v14  ;;  %9137 = vmatprep.mubr.bf16.mxu1 %v14383_v14 }
 0x587   : > { %8452 = vmatpush1.bf16.msra.mxu0 %v12358_v54  ;;  %9108 = vmatpush1.bf16.msra.mxu1 %v12361_v15  ;;  %v12453_v54 = vld [vmem:[%s13396_s26 + $0x1a0c] ss:$16 sps:$4 sm:$0xff]   ;;  %v14449_v15 = vrot.slane %v14368_v4, %v13524_v41  ;;  %v12454_v4 = vld [vmem:[%s13396_s26 + $0x1a20] ss:$16 sps:$4 sm:$0xff]  }
 0x588   : > { %8453 = vmatprep.subr.bf16.mxu0 %v12366_v16  ;;  %9109 = vmatprep.subr.bf16.mxu1 %v12369_v18  ;;  %v12448_v16 = vld [vmem:[%s13396_s26 + $0x1a00] ss:$16 sps:$4 sm:$0xff]   ;;  %v12451_v18 = vld [vmem:[%s13396_s26 + $0x1a08] ss:$16 sps:$4 sm:$0xff]  }
 0x58b   : > { %8454 = vmatpush1.bf16.msra.mxu0 %v12364_v19  ;;  %9110 = vmatpush1.bf16.msra.mxu1 %v12367_v20  ;;  %v12456_v19 = vld [vmem:[%s13396_s26 + $0x1a24] ss:$16 sps:$4 sm:$0xff]   ;;  %v12459_v20 = vld [vmem:[%s13396_s26 + $0x1a2c] ss:$16 sps:$4 sm:$0xff]  }
 0x58c   : > { %8455 = vmatprep.subr.bf16.mxu0 %v12372_v21  ;;  %9111 = vmatprep.subr.bf16.mxu1 %v12375_v22  ;;  %v2803_v21 = vcombine.high %v14383_v14, %v14383_v14  ;;  %v12457_v22 = vld [vmem:[%s13396_s26 + $0x1a28] ss:$16 sps:$4 sm:$0xff]   ;;  %v12460_v14 = vld [vmem:[%s13396_s26 + $0x1a40] ss:$16 sps:$4 sm:$0xff]  }
 0x58f   : > { %8456 = vmatpush1.bf16.msra.mxu0 %v12370_v9  ;;  %9112 = vmatpush1.bf16.msra.mxu1 %v12373_v23  ;;  %v12462_v9 = vld [vmem:[%s13396_s26 + $0x1a44] ss:$16 sps:$4 sm:$0xff]   ;;  %v12465_v23 = vld [vmem:[%s13396_s26 + $0x1a4c] ss:$16 sps:$4 sm:$0xff]  }
 0x590   : > { %8457 = vmatprep.subr.bf16.mxu0 %v12378_v25  ;;  %9113 = vmatprep.subr.bf16.mxu1 %v12381_v26  ;;  %v12463_v25 = vld [vmem:[%s13396_s26 + $0x1a48] ss:$16 sps:$4 sm:$0xff]   ;;  %v12468_v26 = vld [vmem:[%s13396_s26 + $0x1a64] ss:$16 sps:$4 sm:$0xff]  }
 0x593   : > { %8458 = vmatpush1.bf16.msra.mxu0 %v12376_v17  ;;  %9114 = vmatpush1.bf16.msra.mxu1 %v12379_v27  ;;  %v12471_v17 = vld [vmem:[%s13396_s26 + $0x1a6c] ss:$16 sps:$4 sm:$0xff]   ;;  %v12466_v27 = vld [vmem:[%s13396_s26 + $0x1a60] ss:$16 sps:$4 sm:$0xff]  }
 0x594   : > { %8459 = vmatprep.subr.bf16.mxu0 %v12384_v28  ;;  %9115 = vmatprep.subr.bf16.mxu1 %v12387_v29  ;;  %v12469_v28 = vld [vmem:[%s13396_s26 + $0x1a68] ss:$16 sps:$4 sm:$0xff]   ;;  %v12474_v29 = vld [vmem:[%s13396_s26 + $0x1a84] ss:$16 sps:$4 sm:$0xff]  }
 0x597   : > { %8460 = vmatpush1.bf16.msra.mxu0 %v12382_v31  ;;  %9116 = vmatpush1.bf16.msra.mxu1 %v12385_v32  ;;  %v12477_v31 = vld [vmem:[%s13396_s26 + $0x1a8c] ss:$16 sps:$4 sm:$0xff]   ;;  %v12472_v32 = vld [vmem:[%s13396_s26 + $0x1a80] ss:$16 sps:$4 sm:$0xff]  }
 0x598   : > { %8461 = vmatprep.subr.bf16.mxu0 %v12390_v5  ;;  %9117 = vmatprep.subr.bf16.mxu1 %v12393_v33  ;;  %v12475_v5 = vld [vmem:[%s13396_s26 + $0x1a88] ss:$16 sps:$4 sm:$0xff]   ;;  %v12480_v33 = vld [vmem:[%s13396_s26 + $0x1aa4] ss:$16 sps:$4 sm:$0xff]  }
 0x59b   : > { %8462 = vmatpush1.bf16.msra.mxu0 %v12388_v35  ;;  %9118 = vmatpush1.bf16.msra.mxu1 %v12391_v36  ;;  %v12483_v35 = vld [vmem:[%s13396_s26 + $0x1aac] ss:$16 sps:$4 sm:$0xff]   ;;  %v12478_v36 = vld [vmem:[%s13396_s26 + $0x1aa0] ss:$16 sps:$4 sm:$0xff]  }
 0x59c   : > { %8463 = vmatprep.subr.bf16.mxu0 %v12396_v37  ;;  %9119 = vmatprep.subr.bf16.mxu1 %v12399_v38  ;;  %v12481_v37 = vld [vmem:[%s13396_s26 + $0x1aa8] ss:$16 sps:$4 sm:$0xff]   ;;  %v12486_v38 = vld [vmem:[%s13396_s26 + $0x1ac4] ss:$16 sps:$4 sm:$0xff]  }
 0x59f   : > { %8464 = vmatpush1.bf16.msra.mxu0 %v12394_v39  ;;  %9120 = vmatpush1.bf16.msra.mxu1 %v12397_v42  ;;  %v12489_v39 = vld [vmem:[%s13396_s26 + $0x1acc] ss:$16 sps:$4 sm:$0xff]   ;;  %v12484_v42 = vld [vmem:[%s13396_s26 + $0x1ac0] ss:$16 sps:$4 sm:$0xff]  }
 0x5a0   : > { %8465 = vmatprep.subr.bf16.mxu0 %v12402_v45  ;;  %9121 = vmatprep.subr.bf16.mxu1 %v12405_v46  ;;  %v12487_v45 = vld [vmem:[%s13396_s26 + $0x1ac8] ss:$16 sps:$4 sm:$0xff]   ;;  %v12492_v46 = vld [vmem:[%s13396_s26 + $0x1ae4] ss:$16 sps:$4 sm:$0xff]  }
 0x5a3   : > { %8466 = vmatpush1.bf16.msra.mxu0 %v12400_v47  ;;  %9122 = vmatpush1.bf16.msra.mxu1 %v12403_v30  ;;  %v12495_v47 = vld [vmem:[%s13396_s26 + $0x1aec] ss:$16 sps:$4 sm:$0xff]   ;;  %v12490_v30 = vld [vmem:[%s13396_s26 + $0x1ae0] ss:$16 sps:$4 sm:$0xff]  }
 0x5a4   : > { %8467 = vmatprep.subr.bf16.mxu0 %v12408_v48  ;;  %9123 = vmatprep.subr.bf16.mxu1 %v12411_v49  ;;  %v12493_v48 = vld [vmem:[%s13396_s26 + $0x1ae8] ss:$16 sps:$4 sm:$0xff]   ;;  %v12498_v49 = vld [vmem:[%s13396_s26 + $0x1b04] ss:$16 sps:$4 sm:$0xff]  }
 0x5a7   : > { %8468 = vmatpush1.bf16.msra.mxu0 %v12406_v50  ;;  %9124 = vmatpush1.bf16.msra.mxu1 %v12409_v40  ;;  %v12501_v50 = vld [vmem:[%s13396_s26 + $0x1b0c] ss:$16 sps:$4 sm:$0xff]   ;;  %v12496_v40 = vld [vmem:[%s13396_s26 + $0x1b00] ss:$16 sps:$4 sm:$0xff]  }
 0x5a8   : > { %8469 = vmatprep.subr.bf16.mxu0 %v12414_v51  ;;  %9125 = vmatprep.subr.bf16.mxu1 %v12417_v52  ;;  %v12499_v51 = vld [vmem:[%s13396_s26 + $0x1b08] ss:$16 sps:$4 sm:$0xff]   ;;  %v12504_v52 = vld [vmem:[%s13396_s26 + $0x1b24] ss:$16 sps:$4 sm:$0xff]  }
 0x5ab   : > { %8470 = vmatpush1.bf16.msra.mxu0 %v12412_v7  ;;  %9126 = vmatpush1.bf16.msra.mxu1 %v12415_v55  ;;  %v12507_v7 = vld [vmem:[%s13396_s26 + $0x1b2c] ss:$16 sps:$4 sm:$0xff]   ;;  %v12502_v55 = vld [vmem:[%s13396_s26 + $0x1b20] ss:$16 sps:$4 sm:$0xff]  }
 0x5ac   : > { %8471 = vmatprep.subr.bf16.mxu0 %v12420_v56  ;;  %9127 = vmatprep.subr.bf16.mxu1 %v12423_v24  ;;  %v12505_v56 = vld [vmem:[%s13396_s26 + $0x1b28] ss:$16 sps:$4 sm:$0xff]   ;;  %v12510_v24 = vld [vmem:[%s13396_s26 + $0x1b44] ss:$16 sps:$4 sm:$0xff]  }
 0x5af   : > { %8472 = vmatpush1.bf16.msra.mxu0 %v12418_v6  ;;  %9128 = vmatpush1.bf16.msra.mxu1 %v12421_v58  ;;  %v12513_v6 = vld [vmem:[%s13396_s26 + $0x1b4c] ss:$16 sps:$4 sm:$0xff]   ;;  %v12508_v58 = vld [vmem:[%s13396_s26 + $0x1b40] ss:$16 sps:$4 sm:$0xff]  }
 0x5b0   : > { %8473 = vmatprep.subr.bf16.mxu0 %v12426_v43  ;;  %9129 = vmatprep.subr.bf16.mxu1 %v12429_v59  ;;  %v12511_v43 = vld [vmem:[%s13396_s26 + $0x1b48] ss:$16 sps:$4 sm:$0xff]   ;;  %v12516_v59 = vld [vmem:[%s13396_s26 + $0x1b64] ss:$16 sps:$4 sm:$0xff]  }
 0x5b3   : > { %8474 = vmatpush1.bf16.msra.mxu0 %v12424_v60  ;;  %9130 = vmatpush1.bf16.msra.mxu1 %v12427_v53  ;;  %v12519_v60 = vld [vmem:[%s13396_s26 + $0x1b6c] ss:$16 sps:$4 sm:$0xff]   ;;  %v12514_v53 = vld [vmem:[%s13396_s26 + $0x1b60] ss:$16 sps:$4 sm:$0xff]  }
 0x5b4   : > { %8475 = vmatprep.subr.bf16.mxu0 %v12432_v62  ;;  %9131 = vmatprep.subr.bf16.mxu1 %v12435_v63  ;;  %v12517_v62 = vld [vmem:[%s13396_s26 + $0x1b68] ss:$16 sps:$4 sm:$0xff]   ;;  %v12522_v63 = vld [vmem:[%s13396_s26 + $0x1b84] ss:$16 sps:$4 sm:$0xff]  }
 0x5b7   : > { %8476 = vmatpush1.bf16.msra.mxu0 %v12430_v3  ;;  %9132 = vmatpush1.bf16.msra.mxu1 %v12433_v1  ;;  %v12525_v3 = vld [vmem:[%s13396_s26 + $0x1b8c] ss:$16 sps:$4 sm:$0xff]   ;;  %v12520_v1 = vld [vmem:[%s13396_s26 + $0x1b80] ss:$16 sps:$4 sm:$0xff]  }
 0x5b8   : > { %8477 = vmatprep.subr.bf16.mxu0 %v12438_v8  ;;  %9133 = vmatprep.subr.bf16.mxu1 %v12441_v10  ;;  %v12523_v8 = vld [vmem:[%s13396_s26 + $0x1b88] ss:$16 sps:$4 sm:$0xff]   ;;  %v12528_v10 = vld [vmem:[%s13396_s26 + $0x1ba4] ss:$16 sps:$4 sm:$0xff]  }
 0x5bb   : > { %8478 = vmatpush1.bf16.msra.mxu0 %v12436_v57  ;;  %9134 = vmatpush1.bf16.msra.mxu1 %v12439_v44  ;;  %v12531_v57 = vld [vmem:[%s13396_s26 + $0x1bac] ss:$16 sps:$4 sm:$0xff]   ;;  %v12526_v44 = vld [vmem:[%s13396_s26 + $0x1ba0] ss:$16 sps:$4 sm:$0xff]  }
 0x5bc   : > { %8479 = vmatprep.subr.bf16.mxu0 %v12444_v11  ;;  %9135 = vmatprep.subr.bf16.mxu1 %v12447_v12  ;;  %v12529_v11 = vld [vmem:[%s13396_s26 + $0x1ba8] ss:$16 sps:$4 sm:$0xff]   ;;  %v12534_v12 = vld [vmem:[%s13396_s26 + $0x1bc4] ss:$16 sps:$4 sm:$0xff]  }
 0x5bf   : > { %8480 = vmatpush1.bf16.msra.mxu0 %v12442_v0  ;;  %9136 = vmatpush1.bf16.msra.mxu1 %v12445_v13  ;;  %v12537_v0 = vld [vmem:[%s13396_s26 + $0x1bcc] ss:$16 sps:$4 sm:$0xff]   ;;  %v2756_v13 = vcombine.high %v14360_v61, %v14360_v61  ;;  %v12538_v61 = vld [vmem:[%s13396_s26 + $0x1be0] ss:$16 sps:$4 sm:$0xff]  }
 0x5c0   : > { %8490 = vmatprep.subr.bf16.mxu0 %v12450_v2  ;;  %9146 = vmatprep.subr.bf16.mxu1 %v12453_v54  ;;  %v12532_v2 = vld [vmem:[%s13396_s26 + $0x1bc0] ss:$16 sps:$4 sm:$0xff]   ;;  %v12535_v54 = vld [vmem:[%s13396_s26 + $0x1bc8] ss:$16 sps:$4 sm:$0xff]  }
 0x5c2   : > { %8482 = vmatmul.mubr.bf16.vlgmr.msra.gmra.mrb[0].mxu0 %v14449_v15  ;;  %9138 = vmatmul.mubr.bf16.vlgmr.msra.gmra.mrb[0].mxu1 %v14449_v15 }
 0x5c3   : > { %8491 = vmatpush1.bf16.msra.mxu0 %v12448_v16  ;;  %9147 = vmatpush1.bf16.msra.mxu1 %v12451_v18  ;;  %v12540_v16 = vld [vmem:[%s13396_s26 + $0x1be4] ss:$16 sps:$4 sm:$0xff]   ;;  %v12543_v18 = vld [vmem:[%s13396_s26 + $0x1bec] ss:$16 sps:$4 sm:$0xff]  }
 0x5c4   : > { %8492 = vmatprep.subr.bf16.mxu0 %v12456_v19  ;;  %9148 = vmatprep.subr.bf16.mxu1 %v12459_v20  ;;  %v14518_v19 = vrot.slane %v2756_v13, %v13524_v41  ;;  %v12541_v20 = vld [vmem:[%s13396_s26 + $0x1be8] ss:$16 sps:$4 sm:$0xff]  }
 0x5c5   : > { %8522 = vmatprep.mubr.bf16.mxu0 %v2803_v21  ;;  %9178 = vmatprep.mubr.bf16.mxu1 %v2803_v21  ;;  %v12546_v21 = vld [vmem:[%s13396_s26 + $0x1c04] ss:$16 sps:$4 sm:$0xff]   ;;  %v12619_v13 = vld [vmem:[%s13396_s26 + $0x1d88] ss:$16 sps:$4 sm:$0xff]  }
 0x5c7   : > { %8493 = vmatpush1.bf16.msra.mxu0 %v12454_v4  ;;  %9149 = vmatpush1.bf16.msra.mxu1 %v12457_v22  ;;  %v12549_v4 = vld [vmem:[%s13396_s26 + $0x1c0c] ss:$16 sps:$4 sm:$0xff]   ;;  %v2772_v22 = vcombine.high %v14518_v19, %v14518_v19 }
 0x5c8   : > { %8494 = vmatprep.subr.bf16.mxu0 %v12462_v9  ;;  %9150 = vmatprep.subr.bf16.mxu1 %v12465_v23  ;;  %v2801_v9 = vcombine.high %v14449_v15, %v14449_v15  ;;  %v12544_v23 = vld [vmem:[%s13396_s26 + $0x1c00] ss:$16 sps:$4 sm:$0xff]  }
 0x5c9   : > { %v12550_v15 = vld [vmem:[%s13396_s26 + $0x1c20] ss:$16 sps:$4 sm:$0xff]  }
 0x5cb   : > { %8495 = vmatpush1.bf16.msra.mxu0 %v12460_v14  ;;  %9151 = vmatpush1.bf16.msra.mxu1 %v12463_v25  ;;  %v12547_v14 = vld [vmem:[%s13396_s26 + $0x1c08] ss:$16 sps:$4 sm:$0xff]   ;;  %v12552_v25 = vld [vmem:[%s13396_s26 + $0x1c24] ss:$16 sps:$4 sm:$0xff]  }
 0x5cc   : > { %8496 = vmatprep.subr.bf16.mxu0 %v12468_v26  ;;  %9152 = vmatprep.subr.bf16.mxu1 %v12471_v17  ;;  %v12555_v26 = vld [vmem:[%s13396_s26 + $0x1c2c] ss:$16 sps:$4 sm:$0xff]   ;;  %v14533_v17 = vrot.slane %v2772_v22, %v13524_v41  ;;  %v12636_v22 = vld [vmem:[%s13396_s26 + $0x1de4] ss:$16 sps:$4 sm:$0xff]  }
 0x5cf   : > { %8497 = vmatpush1.bf16.msra.mxu0 %v12466_v27  ;;  %9153 = vmatpush1.bf16.msra.mxu1 %v12469_v28  ;;  %v12553_v27 = vld [vmem:[%s13396_s26 + $0x1c28] ss:$16 sps:$4 sm:$0xff]   ;;  %v12558_v28 = vld [vmem:[%s13396_s26 + $0x1c44] ss:$16 sps:$4 sm:$0xff]  }
 0x5d0   : > { %8498 = vmatprep.subr.bf16.mxu0 %v12474_v29  ;;  %9154 = vmatprep.subr.bf16.mxu1 %v12477_v31  ;;  %v12561_v29 = vld [vmem:[%s13396_s26 + $0x1c4c] ss:$16 sps:$4 sm:$0xff]   ;;  %v12556_v31 = vld [vmem:[%s13396_s26 + $0x1c40] ss:$16 sps:$4 sm:$0xff]  }
 0x5d3   : > { %8499 = vmatpush1.bf16.msra.mxu0 %v12472_v32  ;;  %9155 = vmatpush1.bf16.msra.mxu1 %v12475_v5  ;;  %v12559_v32 = vld [vmem:[%s13396_s26 + $0x1c48] ss:$16 sps:$4 sm:$0xff]   ;;  %v12564_v5 = vld [vmem:[%s13396_s26 + $0x1c64] ss:$16 sps:$4 sm:$0xff]  }
 0x5d4   : > { %8500 = vmatprep.subr.bf16.mxu0 %v12480_v33  ;;  %9156 = vmatprep.subr.bf16.mxu1 %v12483_v35  ;;  %v12567_v33 = vld [vmem:[%s13396_s26 + $0x1c6c] ss:$16 sps:$4 sm:$0xff]   ;;  %v12562_v35 = vld [vmem:[%s13396_s26 + $0x1c60] ss:$16 sps:$4 sm:$0xff]  }
 0x5d7   : > { %8501 = vmatpush1.bf16.msra.mxu0 %v12478_v36  ;;  %9157 = vmatpush1.bf16.msra.mxu1 %v12481_v37  ;;  %v12565_v36 = vld [vmem:[%s13396_s26 + $0x1c68] ss:$16 sps:$4 sm:$0xff]   ;;  %v12570_v37 = vld [vmem:[%s13396_s26 + $0x1c84] ss:$16 sps:$4 sm:$0xff]  }
 0x5d8   : > { %8502 = vmatprep.subr.bf16.mxu0 %v12486_v38  ;;  %9158 = vmatprep.subr.bf16.mxu1 %v12489_v39  ;;  %v12573_v38 = vld [vmem:[%s13396_s26 + $0x1c8c] ss:$16 sps:$4 sm:$0xff]   ;;  %v12568_v39 = vld [vmem:[%s13396_s26 + $0x1c80] ss:$16 sps:$4 sm:$0xff]  }
 0x5db   : > { %8503 = vmatpush1.bf16.msra.mxu0 %v12484_v42  ;;  %9159 = vmatpush1.bf16.msra.mxu1 %v12487_v45  ;;  %v12571_v42 = vld [vmem:[%s13396_s26 + $0x1c88] ss:$16 sps:$4 sm:$0xff]   ;;  %v12576_v45 = vld [vmem:[%s13396_s26 + $0x1ca4] ss:$16 sps:$4 sm:$0xff]  }
 0x5dc   : > { %8504 = vmatprep.subr.bf16.mxu0 %v12492_v46  ;;  %9160 = vmatprep.subr.bf16.mxu1 %v12495_v47  ;;  %v12579_v46 = vld [vmem:[%s13396_s26 + $0x1cac] ss:$16 sps:$4 sm:$0xff]   ;;  %v12574_v47 = vld [vmem:[%s13396_s26 + $0x1ca0] ss:$16 sps:$4 sm:$0xff]  }
 0x5df   : > { %8505 = vmatpush1.bf16.msra.mxu0 %v12490_v30  ;;  %9161 = vmatpush1.bf16.msra.mxu1 %v12493_v48  ;;  %v12577_v30 = vld [vmem:[%s13396_s26 + $0x1ca8] ss:$16 sps:$4 sm:$0xff]   ;;  %v12582_v48 = vld [vmem:[%s13396_s26 + $0x1cc4] ss:$16 sps:$4 sm:$0xff]  }
 0x5e0   : > { %8506 = vmatprep.subr.bf16.mxu0 %v12498_v49  ;;  %9162 = vmatprep.subr.bf16.mxu1 %v12501_v50  ;;  %v12585_v49 = vld [vmem:[%s13396_s26 + $0x1ccc] ss:$16 sps:$4 sm:$0xff]   ;;  %v12580_v50 = vld [vmem:[%s13396_s26 + $0x1cc0] ss:$16 sps:$4 sm:$0xff]  }
 0x5e3   : > { %8507 = vmatpush1.bf16.msra.mxu0 %v12496_v40  ;;  %9163 = vmatpush1.bf16.msra.mxu1 %v12499_v51  ;;  %v12583_v40 = vld [vmem:[%s13396_s26 + $0x1cc8] ss:$16 sps:$4 sm:$0xff]   ;;  %v12588_v51 = vld [vmem:[%s13396_s26 + $0x1ce4] ss:$16 sps:$4 sm:$0xff]  }
 0x5e4   : > { %8508 = vmatprep.subr.bf16.mxu0 %v12504_v52  ;;  %9164 = vmatprep.subr.bf16.mxu1 %v12507_v7  ;;  %v12591_v52 = vld [vmem:[%s13396_s26 + $0x1cec] ss:$16 sps:$4 sm:$0xff]   ;;  %v12586_v7 = vld [vmem:[%s13396_s26 + $0x1ce0] ss:$16 sps:$4 sm:$0xff]  }
 0x5e7   : > { %8509 = vmatpush1.bf16.msra.mxu0 %v12502_v55  ;;  %9165 = vmatpush1.bf16.msra.mxu1 %v12505_v56  ;;  %v12589_v55 = vld [vmem:[%s13396_s26 + $0x1ce8] ss:$16 sps:$4 sm:$0xff]   ;;  %v12594_v56 = vld [vmem:[%s13396_s26 + $0x1d04] ss:$16 sps:$4 sm:$0xff]  }
 0x5e8   : > { %8510 = vmatprep.subr.bf16.mxu0 %v12510_v24  ;;  %9166 = vmatprep.subr.bf16.mxu1 %v12513_v6  ;;  %v12597_v24 = vld [vmem:[%s13396_s26 + $0x1d0c] ss:$16 sps:$4 sm:$0xff]   ;;  %v12592_v6 = vld [vmem:[%s13396_s26 + $0x1d00] ss:$16 sps:$4 sm:$0xff]  }
 0x5eb   : > { %8511 = vmatpush1.bf16.msra.mxu0 %v12508_v58  ;;  %9167 = vmatpush1.bf16.msra.mxu1 %v12511_v43  ;;  %v12595_v58 = vld [vmem:[%s13396_s26 + $0x1d08] ss:$16 sps:$4 sm:$0xff]   ;;  %v12600_v43 = vld [vmem:[%s13396_s26 + $0x1d24] ss:$16 sps:$4 sm:$0xff]  }
 0x5ec   : > { %8512 = vmatprep.subr.bf16.mxu0 %v12516_v59  ;;  %9168 = vmatprep.subr.bf16.mxu1 %v12519_v60  ;;  %v12603_v59 = vld [vmem:[%s13396_s26 + $0x1d2c] ss:$16 sps:$4 sm:$0xff]   ;;  %v12598_v60 = vld [vmem:[%s13396_s26 + $0x1d20] ss:$16 sps:$4 sm:$0xff]  }
 0x5ef   : > { %8513 = vmatpush1.bf16.msra.mxu0 %v12514_v53  ;;  %9169 = vmatpush1.bf16.msra.mxu1 %v12517_v62  ;;  %v12601_v53 = vld [vmem:[%s13396_s26 + $0x1d28] ss:$16 sps:$4 sm:$0xff]   ;;  %v12606_v62 = vld [vmem:[%s13396_s26 + $0x1d44] ss:$16 sps:$4 sm:$0xff]  }
 0x5f0   : > { %8514 = vmatprep.subr.bf16.mxu0 %v12522_v63  ;;  %9170 = vmatprep.subr.bf16.mxu1 %v12525_v3  ;;  %v12609_v63 = vld [vmem:[%s13396_s26 + $0x1d4c] ss:$16 sps:$4 sm:$0xff]   ;;  %v12604_v3 = vld [vmem:[%s13396_s26 + $0x1d40] ss:$16 sps:$4 sm:$0xff]  }
 0x5f3   : > { %8515 = vmatpush1.bf16.msra.mxu0 %v12520_v1  ;;  %9171 = vmatpush1.bf16.msra.mxu1 %v12523_v8  ;;  %v12607_v1 = vld [vmem:[%s13396_s26 + $0x1d48] ss:$16 sps:$4 sm:$0xff]   ;;  %v12612_v8 = vld [vmem:[%s13396_s26 + $0x1d64] ss:$16 sps:$4 sm:$0xff]  }
 0x5f4   : > { %8516 = vmatprep.subr.bf16.mxu0 %v12528_v10  ;;  %9172 = vmatprep.subr.bf16.mxu1 %v12531_v57  ;;  %v12615_v10 = vld [vmem:[%s13396_s26 + $0x1d6c] ss:$16 sps:$4 sm:$0xff]   ;;  %v12610_v57 = vld [vmem:[%s13396_s26 + $0x1d60] ss:$16 sps:$4 sm:$0xff]  }
 0x5f7   : > { %8517 = vmatpush1.bf16.msra.mxu0 %v12526_v44  ;;  %9173 = vmatpush1.bf16.msra.mxu1 %v12529_v11  ;;  %v12613_v44 = vld [vmem:[%s13396_s26 + $0x1d68] ss:$16 sps:$4 sm:$0xff]   ;;  %v12618_v11 = vld [vmem:[%s13396_s26 + $0x1d84] ss:$16 sps:$4 sm:$0xff]  }
 0x5f8   : > { %8518 = vmatprep.subr.bf16.mxu0 %v12534_v12  ;;  %9174 = vmatprep.subr.bf16.mxu1 %v12537_v0  ;;  %v12621_v12 = vld [vmem:[%s13396_s26 + $0x1d8c] ss:$16 sps:$4 sm:$0xff]   ;;  %v12616_v0 = vld [vmem:[%s13396_s26 + $0x1d80] ss:$16 sps:$4 sm:$0xff]  }
 0x5fb   : > { %8519 = vmatpush1.bf16.msra.mxu0 %v12532_v2  ;;  %9175 = vmatpush1.bf16.msra.mxu1 %v12535_v54  ;;  %v12624_v2 = vld [vmem:[%s13396_s26 + $0x1da4] ss:$16 sps:$4 sm:$0xff]   ;;  %v12627_v54 = vld [vmem:[%s13396_s26 + $0x1dac] ss:$16 sps:$4 sm:$0xff]  }
 0x5fc   : > { %8520 = vmatprep.subr.bf16.mxu0 %v12540_v16  ;;  %9176 = vmatprep.subr.bf16.mxu1 %v12543_v18  ;;  %v12622_v16 = vld [vmem:[%s13396_s26 + $0x1da0] ss:$16 sps:$4 sm:$0xff]   ;;  %v12625_v18 = vld [vmem:[%s13396_s26 + $0x1da8] ss:$16 sps:$4 sm:$0xff]  }
 0x5ff   : > { %8521 = vmatpush1.bf16.msra.mxu0 %v12538_v61  ;;  %9177 = vmatpush1.bf16.msra.mxu1 %v12541_v20  ;;  %v12630_v61 = vld [vmem:[%s13396_s26 + $0x1dc4] ss:$16 sps:$4 sm:$0xff]   ;;  %v12633_v20 = vld [vmem:[%s13396_s26 + $0x1dcc] ss:$16 sps:$4 sm:$0xff]  }
 0x600   : > { %8531 = vmatprep.subr.bf16.mxu0 %v12546_v21  ;;  %9187 = vmatprep.subr.bf16.mxu1 %v12549_v4  ;;  %v12628_v21 = vld [vmem:[%s13396_s26 + $0x1dc0] ss:$16 sps:$4 sm:$0xff]   ;;  %v12631_v4 = vld [vmem:[%s13396_s26 + $0x1dc8] ss:$16 sps:$4 sm:$0xff]  }
 0x602   : > { %8523 = vmatmul.mubr.bf16.vlgmr.msra.gmra.mrb[0].mxu0 %v2801_v9  ;;  %9179 = vmatmul.mubr.bf16.vlgmr.msra.gmra.mrb[0].mxu1 %v2801_v9  ;;  %v12639_v9 = vld [vmem:[%s13396_s26 + $0x1dec] ss:$16 sps:$4 sm:$0xff]  }
 0x603   : > { %8532 = vmatpush1.bf16.msra.mxu0 %v12544_v23  ;;  %9188 = vmatpush1.bf16.msra.mxu1 %v12547_v14  ;;  %v12634_v23 = vld [vmem:[%s13396_s26 + $0x1de0] ss:$16 sps:$4 sm:$0xff]   ;;  %v12637_v14 = vld [vmem:[%s13396_s26 + $0x1de8] ss:$16 sps:$4 sm:$0xff]  }
 0x604   : > { %8533 = vmatprep.subr.bf16.mxu0 %v12552_v25  ;;  %9189 = vmatprep.subr.bf16.mxu1 %v12555_v26  ;;  %v12643_v25 = vld [vmem:[%s13396_s26 + $0x1e04] ss:$16 sps:$4 sm:$0xff]   ;;  %v12646_v26 = vld [vmem:[%s13396_s26 + $0x1e0c] ss:$16 sps:$4 sm:$0xff]  }
 0x605   : > { %8563 = vmatprep.mubr.bf16.mxu0 %v14533_v17  ;;  %9219 = vmatprep.mubr.bf16.mxu1 %v14533_v17 }
 0x607   : > { %8534 = vmatpush1.bf16.msra.mxu0 %v12550_v15  ;;  %9190 = vmatpush1.bf16.msra.mxu1 %v12553_v27  ;;  %v14599_v15 = vrot.slane %v14518_v19, %v13524_v41  ;;  %v12641_v27 = vld [vmem:[%s13396_s26 + $0x1e00] ss:$16 sps:$4 sm:$0xff]   ;;  %v12650_v19 = vld [vmem:[%s13396_s26 + $0x1e28] ss:$16 sps:$4 sm:$0xff]  }
 0x608   : > { %8535 = vmatprep.subr.bf16.mxu0 %v12558_v28  ;;  %9191 = vmatprep.subr.bf16.mxu1 %v12561_v29  ;;  %v12644_v28 = vld [vmem:[%s13396_s26 + $0x1e08] ss:$16 sps:$4 sm:$0xff]   ;;  %v12649_v29 = vld [vmem:[%s13396_s26 + $0x1e24] ss:$16 sps:$4 sm:$0xff]   ;;  %v12647_v41 = vld [vmem:[%s13396_s26 + $0x1e20] ss:$16 sps:$4 sm:$0xff]  }
 0x60b   : > { %8536 = vmatpush1.bf16.msra.mxu0 %v12556_v31  ;;  %9192 = vmatpush1.bf16.msra.mxu1 %v12559_v32  ;;  %v12652_v31 = vld [vmem:[%s13396_s26 + $0x1e2c] ss:$16 sps:$4 sm:$0xff]   ;;  %v2804_v32 = vcombine.high %v14533_v17, %v14533_v17  ;;  %v12653_v17 = vld [vmem:[%s13396_s26 + $0x1e40] ss:$16 sps:$4 sm:$0xff]  }
 0x60c   : > { %8537 = vmatprep.subr.bf16.mxu0 %v12564_v5  ;;  %9193 = vmatprep.subr.bf16.mxu1 %v12567_v33  ;;  %v12655_v5 = vld [vmem:[%s13396_s26 + $0x1e44] ss:$16 sps:$4 sm:$0xff]   ;;  %v12658_v33 = vld [vmem:[%s13396_s26 + $0x1e4c] ss:$16 sps:$4 sm:$0xff]  }
 0x60f   : > { %8538 = vmatpush1.bf16.msra.mxu0 %v12562_v35  ;;  %9194 = vmatpush1.bf16.msra.mxu1 %v12565_v36  ;;  %v12656_v35 = vld [vmem:[%s13396_s26 + $0x1e48] ss:$16 sps:$4 sm:$0xff]   ;;  %v12661_v36 = vld [vmem:[%s13396_s26 + $0x1e64] ss:$16 sps:$4 sm:$0xff]  }
 0x610   : > { %8539 = vmatprep.subr.bf16.mxu0 %v12570_v37  ;;  %9195 = vmatprep.subr.bf16.mxu1 %v12573_v38  ;;  %v12664_v37 = vld [vmem:[%s13396_s26 + $0x1e6c] ss:$16 sps:$4 sm:$0xff]   ;;  %v12659_v38 = vld [vmem:[%s13396_s26 + $0x1e60] ss:$16 sps:$4 sm:$0xff]  }
 0x613   : > { %8540 = vmatpush1.bf16.msra.mxu0 %v12568_v39  ;;  %9196 = vmatpush1.bf16.msra.mxu1 %v12571_v42  ;;  %v12662_v39 = vld [vmem:[%s13396_s26 + $0x1e68] ss:$16 sps:$4 sm:$0xff]   ;;  %v12667_v42 = vld [vmem:[%s13396_s26 + $0x1e84] ss:$16 sps:$4 sm:$0xff]  }
 0x614   : > { %8541 = vmatprep.subr.bf16.mxu0 %v12576_v45  ;;  %9197 = vmatprep.subr.bf16.mxu1 %v12579_v46  ;;  %v12670_v45 = vld [vmem:[%s13396_s26 + $0x1e8c] ss:$16 sps:$4 sm:$0xff]   ;;  %v12665_v46 = vld [vmem:[%s13396_s26 + $0x1e80] ss:$16 sps:$4 sm:$0xff]  }
 0x617   : > { %8542 = vmatpush1.bf16.msra.mxu0 %v12574_v47  ;;  %9198 = vmatpush1.bf16.msra.mxu1 %v12577_v30  ;;  %v12668_v47 = vld [vmem:[%s13396_s26 + $0x1e88] ss:$16 sps:$4 sm:$0xff]   ;;  %v12673_v30 = vld [vmem:[%s13396_s26 + $0x1ea4] ss:$16 sps:$4 sm:$0xff]  }
 0x618   : > { %8543 = vmatprep.subr.bf16.mxu0 %v12582_v48  ;;  %9199 = vmatprep.subr.bf16.mxu1 %v12585_v49  ;;  %v12676_v48 = vld [vmem:[%s13396_s26 + $0x1eac] ss:$16 sps:$4 sm:$0xff]   ;;  %v12671_v49 = vld [vmem:[%s13396_s26 + $0x1ea0] ss:$16 sps:$4 sm:$0xff]  }
 0x61b   : > { %8544 = vmatpush1.bf16.msra.mxu0 %v12580_v50  ;;  %9200 = vmatpush1.bf16.msra.mxu1 %v12583_v40  ;;  %v12674_v50 = vld [vmem:[%s13396_s26 + $0x1ea8] ss:$16 sps:$4 sm:$0xff]   ;;  %v12679_v40 = vld [vmem:[%s13396_s26 + $0x1ec4] ss:$16 sps:$4 sm:$0xff]  }
 0x61c   : > { %8545 = vmatprep.subr.bf16.mxu0 %v12588_v51  ;;  %9201 = vmatprep.subr.bf16.mxu1 %v12591_v52  ;;  %v12682_v51 = vld [vmem:[%s13396_s26 + $0x1ecc] ss:$16 sps:$4 sm:$0xff]   ;;  %v12677_v52 = vld [vmem:[%s13396_s26 + $0x1ec0] ss:$16 sps:$4 sm:$0xff]  }
 0x61f   : > { %8546 = vmatpush1.bf16.msra.mxu0 %v12586_v7  ;;  %9202 = vmatpush1.bf16.msra.mxu1 %v12589_v55  ;;  %v12680_v7 = vld [vmem:[%s13396_s26 + $0x1ec8] ss:$16 sps:$4 sm:$0xff]   ;;  %v12685_v55 = vld [vmem:[%s13396_s26 + $0x1ee4] ss:$16 sps:$4 sm:$0xff]  }
 0x620   : > { %8547 = vmatprep.subr.bf16.mxu0 %v12594_v56  ;;  %9203 = vmatprep.subr.bf16.mxu1 %v12597_v24  ;;  %v12688_v56 = vld [vmem:[%s13396_s26 + $0x1eec] ss:$16 sps:$4 sm:$0xff]   ;;  %v12683_v24 = vld [vmem:[%s13396_s26 + $0x1ee0] ss:$16 sps:$4 sm:$0xff]  }
 0x623   : > { %8548 = vmatpush1.bf16.msra.mxu0 %v12592_v6  ;;  %9204 = vmatpush1.bf16.msra.mxu1 %v12595_v58  ;;  %v12686_v6 = vld [vmem:[%s13396_s26 + $0x1ee8] ss:$16 sps:$4 sm:$0xff]   ;;  %v12691_v58 = vld [vmem:[%s13396_s26 + $0x1f04] ss:$16 sps:$4 sm:$0xff]  }
 0x624   : > { %8549 = vmatprep.subr.bf16.mxu0 %v12600_v43  ;;  %9205 = vmatprep.subr.bf16.mxu1 %v12603_v59  ;;  %v12694_v43 = vld [vmem:[%s13396_s26 + $0x1f0c] ss:$16 sps:$4 sm:$0xff]   ;;  %v12689_v59 = vld [vmem:[%s13396_s26 + $0x1f00] ss:$16 sps:$4 sm:$0xff]  }
 0x627   : > { %8550 = vmatpush1.bf16.msra.mxu0 %v12598_v60  ;;  %9206 = vmatpush1.bf16.msra.mxu1 %v12601_v53  ;;  %v12692_v60 = vld [vmem:[%s13396_s26 + $0x1f08] ss:$16 sps:$4 sm:$0xff]   ;;  %v12697_v53 = vld [vmem:[%s13396_s26 + $0x1f24] ss:$16 sps:$4 sm:$0xff]  }
 0x628   : > { %8551 = vmatprep.subr.bf16.mxu0 %v12606_v62  ;;  %9207 = vmatprep.subr.bf16.mxu1 %v12609_v63  ;;  %v12700_v62 = vld [vmem:[%s13396_s26 + $0x1f2c] ss:$16 sps:$4 sm:$0xff]   ;;  %v12695_v63 = vld [vmem:[%s13396_s26 + $0x1f20] ss:$16 sps:$4 sm:$0xff]  }
 0x62b   : > { %8552 = vmatpush1.bf16.msra.mxu0 %v12604_v3  ;;  %9208 = vmatpush1.bf16.msra.mxu1 %v12607_v1  ;;  %v12698_v3 = vld [vmem:[%s13396_s26 + $0x1f28] ss:$16 sps:$4 sm:$0xff]   ;;  %v12703_v1 = vld [vmem:[%s13396_s26 + $0x1f44] ss:$16 sps:$4 sm:$0xff]  }
 0x62c   : > { %8553 = vmatprep.subr.bf16.mxu0 %v12612_v8  ;;  %9209 = vmatprep.subr.bf16.mxu1 %v12615_v10  ;;  %v12706_v8 = vld [vmem:[%s13396_s26 + $0x1f4c] ss:$16 sps:$4 sm:$0xff]   ;;  %v12701_v10 = vld [vmem:[%s13396_s26 + $0x1f40] ss:$16 sps:$4 sm:$0xff]  }
 0x62f   : > { %8554 = vmatpush1.bf16.msra.mxu0 %v12610_v57  ;;  %9210 = vmatpush1.bf16.msra.mxu1 %v12613_v44  ;;  %v12704_v57 = vld [vmem:[%s13396_s26 + $0x1f48] ss:$16 sps:$4 sm:$0xff]   ;;  %v12709_v44 = vld [vmem:[%s13396_s26 + $0x1f64] ss:$16 sps:$4 sm:$0xff]  }
 0x630   : > { %8555 = vmatprep.subr.bf16.mxu0 %v12618_v11  ;;  %9211 = vmatprep.subr.bf16.mxu1 %v12621_v12  ;;  %v12712_v11 = vld [vmem:[%s13396_s26 + $0x1f6c] ss:$16 sps:$4 sm:$0xff]   ;;  %v12707_v12 = vld [vmem:[%s13396_s26 + $0x1f60] ss:$16 sps:$4 sm:$0xff]  }
 0x633   : > { %8556 = vmatpush1.bf16.msra.mxu0 %v12616_v0  ;;  %9212 = vmatpush1.bf16.msra.mxu1 %v12619_v13  ;;  %v12710_v0 = vld [vmem:[%s13396_s26 + $0x1f68] ss:$16 sps:$4 sm:$0xff]   ;;  %v12715_v13 = vld [vmem:[%s13396_s26 + $0x1f84] ss:$16 sps:$4 sm:$0xff]  }
 0x634   : > { %8557 = vmatprep.subr.bf16.mxu0 %v12624_v2  ;;  %9213 = vmatprep.subr.bf16.mxu1 %v12627_v54  ;;  %v12718_v2 = vld [vmem:[%s13396_s26 + $0x1f8c] ss:$16 sps:$4 sm:$0xff]   ;;  %v12713_v54 = vld [vmem:[%s13396_s26 + $0x1f80] ss:$16 sps:$4 sm:$0xff]  }
 0x637   : > { %8558 = vmatpush1.bf16.msra.mxu0 %v12622_v16  ;;  %9214 = vmatpush1.bf16.msra.mxu1 %v12625_v18  ;;  %v12716_v16 = vld [vmem:[%s13396_s26 + $0x1f88] ss:$16 sps:$4 sm:$0xff]   ;;  %v12721_v18 = vld [vmem:[%s13396_s26 + $0x1fa4] ss:$16 sps:$4 sm:$0xff]  }
 0x638   : > { %8559 = vmatprep.subr.bf16.mxu0 %v12630_v61  ;;  %9215 = vmatprep.subr.bf16.mxu1 %v12633_v20  ;;  %v12724_v61 = vld [vmem:[%s13396_s26 + $0x1fac] ss:$16 sps:$4 sm:$0xff]   ;;  %v12719_v20 = vld [vmem:[%s13396_s26 + $0x1fa0] ss:$16 sps:$4 sm:$0xff]  }
 0x63b   : > { %8560 = vmatpush1.bf16.msra.mxu0 %v12628_v21  ;;  %9216 = vmatpush1.bf16.msra.mxu1 %v12631_v4  ;;  %v12722_v21 = vld [vmem:[%s13396_s26 + $0x1fa8] ss:$16 sps:$4 sm:$0xff]   ;;  %v12727_v4 = vld [vmem:[%s13396_s26 + $0x1fc4] ss:$16 sps:$4 sm:$0xff]  }
 0x63c   : > { %8561 = vmatprep.subr.bf16.mxu0 %v12636_v22  ;;  %9217 = vmatprep.subr.bf16.mxu1 %v12639_v9  ;;  %v12730_v22 = vld [vmem:[%s13396_s26 + $0x1fcc] ss:$16 sps:$4 sm:$0xff]   ;;  %v12725_v9 = vld [vmem:[%s13396_s26 + $0x1fc0] ss:$16 sps:$4 sm:$0xff]  }
 0x63f   : > { %8562 = vmatpush1.bf16.msra.mxu0 %v12634_v23  ;;  %9218 = vmatpush1.bf16.msra.mxu1 %v12637_v14  ;;  %v12728_v23 = vld [vmem:[%s13396_s26 + $0x1fc8] ss:$16 sps:$4 sm:$0xff]   ;;  %v12733_v14 = vld [vmem:[%s13396_s26 + $0x1fe4] ss:$16 sps:$4 sm:$0xff]  }
 0x640   : > { %8572 = vmatprep.subr.bf16.mxu0 %v12643_v25  ;;  %9228 = vmatprep.subr.bf16.mxu1 %v12646_v26  ;;  %v12736_v25 = vld [vmem:[%s13396_s26 + $0x1fec] ss:$16 sps:$4 sm:$0xff]   ;;  %v12731_v26 = vld [vmem:[%s13396_s26 + $0x1fe0] ss:$16 sps:$4 sm:$0xff]  }
 0x642   : > { %8564 = vmatmul.mubr.bf16.vlgmr.msra.gmra.mrb[0].mxu0 %v14599_v15  ;;  %9220 = vmatmul.mubr.bf16.vlgmr.msra.gmra.mrb[0].mxu1 %v14599_v15 }
 0x643   : > { %8573 = vmatpush1.bf16.msra.mxu0 %v12641_v27  ;;  %9229 = vmatpush1.bf16.msra.mxu1 %v12644_v28  ;;  %v12734_v27 = vld [vmem:[%s13396_s26 + $0x1fe8] ss:$16 sps:$4 sm:$0xff]  }
 0x644   : > { %8574 = vmatprep.subr.bf16.mxu0 %v12649_v29  ;;  %9230 = vmatprep.subr.bf16.mxu1 %v12652_v31  ;;  %v12737_v28 = vld [vmem:[%s13404_s24 + $0x40] sm:$0xff]   ;;  %v2802_v31 = vcombine.high %v14599_v15, %v14599_v15  ;;  %v12744_v15 = vld [vmem:[%s13404_s24 + $0x88] sm:$0xff]  }
 0x645   : > { %8604 = vmatprep.mubr.bf16.mxu0 %v2804_v32  ;;  %9260 = vmatprep.mubr.bf16.mxu1 %v2804_v32  ;;  %v12738_v29 = vld [vmem:[%s13404_s24 + $0xc0] sm:$0xff]  }
 0x646   : > { %v12739_v32 = vld [vmem:[%s13404_s24] sm:$0xff]  }
 0x647   : > { %8575 = vmatpush1.bf16.msra.mxu0 %v12647_v41  ;;  %9231 = vmatpush1.bf16.msra.mxu1 %v12650_v19  ;;  %v12740_v41 = vld [vmem:[%s13404_s24 + $0x80] sm:$0xff]   ;;  %v12741_v19 = vld [vmem:[%s13404_s24 + $0x48] sm:$0xff]  }
 0x648   : > { %8576 = vmatprep.subr.bf16.mxu0 %v12655_v5  ;;  %9232 = vmatprep.subr.bf16.mxu1 %v12658_v33  ;;  %v12742_v5 = vld [vmem:[%s13404_s24 + $0xc8] sm:$0xff]  }
 0x649   : > { %v12743_v33 = vld [vmem:[%s13404_s24 + $0x8] sm:$0xff]  }
 0x64b   : > { %8577 = vmatpush1.bf16.msra.mxu0 %v12653_v17  ;;  %9233 = vmatpush1.bf16.msra.mxu1 %v12656_v35  ;;  %v12745_v17 = vld [vmem:[%s13404_s24 + $0x50] sm:$0xff]  }
 0x64c   : > { %8578 = vmatprep.subr.bf16.mxu0 %v12661_v36  ;;  %9234 = vmatprep.subr.bf16.mxu1 %v12664_v37  ;;  %v12746_v35 = vld [vmem:[%s13404_s24 + $0xd0] sm:$0xff]  }
 0x64d   : > { %v12747_v36 = vld [vmem:[%s13404_s24 + $0x10] sm:$0xff]  }
 0x64e   : > { %v12748_v37 = vld [vmem:[%s13404_s24 + $0x90] sm:$0xff]  }
 0x64f   : > { %8579 = vmatpush1.bf16.msra.mxu0 %v12659_v38  ;;  %9235 = vmatpush1.bf16.msra.mxu1 %v12662_v39  ;;  %v12749_v38 = vld [vmem:[%s13404_s24 + $0x58] sm:$0xff]  }
 0x650   : > { %8580 = vmatprep.subr.bf16.mxu0 %v12667_v42  ;;  %9236 = vmatprep.subr.bf16.mxu1 %v12670_v45  ;;  %v12750_v39 = vld [vmem:[%s13404_s24 + $0xd8] sm:$0xff]  }
 0x651   : > { %v12751_v42 = vld [vmem:[%s13404_s24 + $0x18] sm:$0xff]  }
 0x652   : > { %v12752_v45 = vld [vmem:[%s13404_s24 + $0x98] sm:$0xff]  }
 0x653   : > { %8581 = vmatpush1.bf16.msra.mxu0 %v12665_v46  ;;  %9237 = vmatpush1.bf16.msra.mxu1 %v12668_v47  ;;  %v12753_v46 = vld [vmem:[%s13404_s24 + $0x60] sm:$0xff]  }
 0x654   : > { %8582 = vmatprep.subr.bf16.mxu0 %v12673_v30  ;;  %9238 = vmatprep.subr.bf16.mxu1 %v12676_v48  ;;  %v12754_v47 = vld [vmem:[%s13404_s24 + $0xe0] sm:$0xff]  }
 0x655   : > { %v12755_v30 = vld [vmem:[%s13404_s24 + $0x20] sm:$0xff]  }
 0x656   : > { %v12756_v48 = vld [vmem:[%s13404_s24 + $0xa0] sm:$0xff]  }
 0x657   : > { %8583 = vmatpush1.bf16.msra.mxu0 %v12671_v49  ;;  %9239 = vmatpush1.bf16.msra.mxu1 %v12674_v50  ;;  %v12757_v49 = vld [vmem:[%s13404_s24 + $0x68] sm:$0xff]  }
 0x658   : > { %8584 = vmatprep.subr.bf16.mxu0 %v12679_v40  ;;  %9240 = vmatprep.subr.bf16.mxu1 %v12682_v51  ;;  %v12758_v50 = vld [vmem:[%s13404_s24 + $0xe8] sm:$0xff]  }
 0x659   : > { %v12759_v40 = vld [vmem:[%s13404_s24 + $0x28] sm:$0xff]  }
 0x65a   : > { %v12760_v51 = vld [vmem:[%s13404_s24 + $0xa8] sm:$0xff]  }
 0x65b   : > { %8585 = vmatpush1.bf16.msra.mxu0 %v12677_v52  ;;  %9241 = vmatpush1.bf16.msra.mxu1 %v12680_v7  ;;  %v12761_v52 = vld [vmem:[%s13404_s24 + $0x70] sm:$0xff]  }
 0x65c   : > { %8586 = vmatprep.subr.bf16.mxu0 %v12685_v55  ;;  %9242 = vmatprep.subr.bf16.mxu1 %v12688_v56  ;;  %v12762_v7 = vld [vmem:[%s13404_s24 + $0xf0] sm:$0xff]  }
 0x65d   : > { %v12763_v55 = vld [vmem:[%s13404_s24 + $0x30] sm:$0xff]  }
 0x65e   : > { %v12764_v56 = vld [vmem:[%s13404_s24 + $0xb0] sm:$0xff]  }
 0x65f   : > { %8587 = vmatpush1.bf16.msra.mxu0 %v12683_v24  ;;  %9243 = vmatpush1.bf16.msra.mxu1 %v12686_v6  ;;  %v12765_v24 = vld [vmem:[%s13404_s24 + $0x78] sm:$0xff]  }
 0x660   : > { %8588 = vmatprep.subr.bf16.mxu0 %v12691_v58  ;;  %9244 = vmatprep.subr.bf16.mxu1 %v12694_v43  ;;  %v12766_v6 = vld [vmem:[%s13404_s24 + $0xf8] sm:$0xff]  }
 0x661   : > { %v12767_v58 = vld [vmem:[%s13404_s24 + $0x38] sm:$0xff]  }
 0x662   : > { %v12768_v43 = vld [vmem:[%s13404_s24 + $0xb8] sm:$0xff]  }
 0x663   : > { %8589 = vmatpush1.bf16.msra.mxu0 %v12689_v59  ;;  %9245 = vmatpush1.bf16.msra.mxu1 %v12692_v60  ;;  %v2587_v59 = vsub.s32 0, %v13516_v34  ;;  %v2595_v60 = vsub.s32 2, %v13516_v34 }
 0x664   : > { %8590 = vmatprep.subr.bf16.mxu0 %v12697_v53  ;;  %9246 = vmatprep.subr.bf16.mxu1 %v12700_v62  ;;  %v2583_v53 = vld [vmem:[%s13402_s21] sm:$0xf]  ;;  %v2591_v62 = vsub.s32 1, %v13516_v34 }
 0x667   : > { %8591 = vmatpush1.bf16.msra.mxu0 %v12695_v63  ;;  %9247 = vmatpush1.bf16.msra.mxu1 %v12698_v3  ;;  %v2599_v63 = vsub.s32 3, %v13516_v34  ;;  %v2588_v3 = vrot.slane %v2583_v53, %v2587_v59 }
 0x668   : > { %8592 = vmatprep.subr.bf16.mxu0 %v12703_v1  ;;  %9248 = vmatprep.subr.bf16.mxu1 %v12706_v8  ;;  %v2596_v1 = vrot.slane %v2583_v53, %v2595_v60  ;;  %v2592_v8 = vrot.slane %v2583_v53, %v2591_v62 }
 0x66b   : > { %8593 = vmatpush1.bf16.msra.mxu0 %v12701_v10  ;;  %9249 = vmatpush1.bf16.msra.mxu1 %v12704_v57  ;;  %v2600_v10 = vrot.slane %v2583_v53, %v2599_v63 }
 0x66c   : > { %8594 = vmatprep.subr.bf16.mxu0 %v12709_v44  ;;  %9250 = vmatprep.subr.bf16.mxu1 %v12712_v11 }
 0x66f   : > { %8595 = vmatpush1.bf16.msra.mxu0 %v12707_v12  ;;  %9251 = vmatpush1.bf16.msra.mxu1 %v12710_v0 }
 0x670   : > { %8596 = vmatprep.subr.bf16.mxu0 %v12715_v13  ;;  %9252 = vmatprep.subr.bf16.mxu1 %v12718_v2 }
 0x673   : > { %8597 = vmatpush1.bf16.msra.mxu0 %v12713_v54  ;;  %9253 = vmatpush1.bf16.msra.mxu1 %v12716_v16 }
 0x674   : > { %8598 = vmatprep.subr.bf16.mxu0 %v12721_v18  ;;  %9254 = vmatprep.subr.bf16.mxu1 %v12724_v61 }
 0x677   : > { %8599 = vmatpush1.bf16.msra.mxu0 %v12719_v20  ;;  %9255 = vmatpush1.bf16.msra.mxu1 %v12722_v21 }
 0x678   : > { %8600 = vmatprep.subr.bf16.mxu0 %v12727_v4  ;;  %9256 = vmatprep.subr.bf16.mxu1 %v12730_v22 }
 0x67b   : > { %8601 = vmatpush1.bf16.msra.mxu0 %v12725_v9  ;;  %9257 = vmatpush1.bf16.msra.mxu1 %v12728_v23 }
 0x67c   : > { %8602 = vmatprep.subr.bf16.mxu0 %v12733_v14  ;;  %9258 = vmatprep.subr.bf16.mxu1 %v12736_v25 }
 0x67f   : > { %8603 = vmatpush1.bf16.msra.mxu0 %v12731_v26  ;;  %9259 = vmatpush1.bf16.msra.mxu1 %v12734_v27 }
 0x680   : > { %10894 = vmatprep.subr.bf16.mxu0 %v12737_v28  ;;  %10916 = vmatprep.subr.bf16.mxu1 %v12738_v29 }
 0x682   : > { %8605 = vmatmul.mubr.bf16.vlgmr.msra.gmra.mrb[0].mxu0 %v2802_v31  ;;  %9261 = vmatmul.mubr.bf16.vlgmr.msra.gmra.mrb[0].mxu1 %v2802_v31 }
 0x683   : > { %10895 = vmatpush3.bf16.msra.mxu0 %v12739_v32  ;;  %10917 = vmatpush3.bf16.msra.mxu1 %v12740_v41  ;;  %v9269_v41 = vld [vmem:[#allocation14] sm:$0x3] }
 0x684   : > { %10896 = vmatprep.subr.bf16.mxu0 %v12741_v19  ;;  %10918 = vmatprep.subr.bf16.mxu1 %v12742_v5 }
 0x687   : > { %10897 = vmatpush3.bf16.msra.mxu0 %v12743_v33  ;;  %10919 = vmatpush3.bf16.msra.mxu1 %v12744_v15 }
 0x688   : > { %10898 = vmatprep.subr.bf16.mxu0 %v12745_v17  ;;  %10920 = vmatprep.subr.bf16.mxu1 %v12746_v35 }
 0x68b   : > { %10899 = vmatpush3.bf16.msra.mxu0 %v12747_v36  ;;  %10921 = vmatpush3.bf16.msra.mxu1 %v12748_v37 }
 0x68c   : > { %10900 = vmatprep.subr.bf16.mxu0 %v12749_v38  ;;  %10922 = vmatprep.subr.bf16.mxu1 %v12750_v39 }
 0x68f   : > { %10901 = vmatpush3.bf16.msra.mxu0 %v12751_v42  ;;  %10923 = vmatpush3.bf16.msra.mxu1 %v12752_v45 }
 0x690   : > { %10902 = vmatprep.subr.bf16.mxu0 %v12753_v46  ;;  %10924 = vmatprep.subr.bf16.mxu1 %v12754_v47 }
 0x693   : > { %10903 = vmatpush3.bf16.msra.mxu0 %v12755_v30  ;;  %10925 = vmatpush3.bf16.msra.mxu1 %v12756_v48 }
 0x694   : > { %10904 = vmatprep.subr.bf16.mxu0 %v12757_v49  ;;  %10926 = vmatprep.subr.bf16.mxu1 %v12758_v50 }
 0x697   : > { %10905 = vmatpush3.bf16.msra.mxu0 %v12759_v40  ;;  %10927 = vmatpush3.bf16.msra.mxu1 %v12760_v51 }
 0x698   : > { %10906 = vmatprep.subr.bf16.mxu0 %v12761_v52  ;;  %10928 = vmatprep.subr.bf16.mxu1 %v12762_v7 }
 0x69b   : > { %10907 = vmatpush3.bf16.msra.mxu0 %v12763_v55  ;;  %10929 = vmatpush3.bf16.msra.mxu1 %v12764_v56 }
 0x69c   : > { %10908 = vmatprep.subr.bf16.mxu0 %v12765_v24  ;;  %10930 = vmatprep.subr.bf16.mxu1 %v12766_v6 }
 0x69f   : > { %10909 = vmatpush3.bf16.msra.mxu0 %v12767_v58  ;;  %10931 = vmatpush3.bf16.msra.mxu1 %v12768_v43 }
 0x755   : > { %v8606_v57 = vpop.f32.mrb[0].mxu0  ;;  %v9262_v44 = vpop.f32.mrb[0].mxu1 }
 0x756   : > { %v10938_v11 = vadd.f32 %v8606_v57, %v2588_v3  ;;  %v10940_v12 = vadd.f32 %v9262_v44, %v2596_v1  ;;  %v8608_v0 = vpop.f32.mrb[1].mxu0  ;;  %v9264_v13 = vpop.f32.mrb[1].mxu1 }
 0x757   : > { %v10939_v2 = vadd.f32 %v8608_v0, %v2592_v8  ;;  %v10941_v54 = vadd.f32 %v9264_v13, %v2600_v10  ;;  %v8610_v16 = vpop.f32.mrb[2].mxu0  ;;  %v9266_v18 = vpop.f32.mrb[2].mxu1 }
 0x758   : > { %v8611_v61 = vpop.f32.mrb[3].mxu0  ;;  %v9267_v20 = vpop.f32.mrb[3].mxu1  ;;  %v9270_v22 = vpack.c.bf16 %v10938_v11, %v10938_v11  ;;  %v9272_v34 = vpack.c.bf16 %v10940_v12, %v10940_v12 }
 0x759   : > { %v9271_v21 = vpack.c.bf16 %v10939_v2, %v10939_v2  ;;  %v9273_v4 = vpack.c.bf16 %v10941_v54, %v10941_v54 }
 0x75b   : > { %9562 = vmatprep.mubr.bf16.mxu0 %v9271_v21  ;;  %9602 = vmatprep.mubr.bf16.mxu1 %v9273_v4 }
 0x75c   : > { %9563 = vmatmul.mubr.bf16.vlgmr.msra.gmra.mrb[4].mxu0 %v9270_v22  ;;  %9603 = vmatmul.mubr.bf16.vlgmr.msra.gmra.mrb[4].mxu1 %v9272_v34 }
 0x82f   : > { %v10910_v9 = vpop.f32.mrb[4].mxu0  ;;  %v10932_v23 = vpop.f32.mrb[4].mxu1 }
 0x830   : > { %v10911_v14 = vpop.f32.mrb[5].mxu0  ;;  %v10933_v25 = vpop.f32.mrb[5].mxu1 }
 0x831   : > { %v10912_v26 = vadd.f32 %v10911_v14, %v10910_v9  ;;  %v10934_v27 = vadd.f32 %v10933_v25, %v10932_v23  ;;  %v10913_v28 = vpop.f32.mrb[6].mxu0  ;;  %v10935_v29 = vpop.f32.mrb[6].mxu1 }
 0x832   : > { %v10914_v31 = vpop.f32.mrb[7].mxu0  ;;  %v10936_v32 = vpop.f32.mrb[7].mxu1 }
 0x833   : > { %v9605_v19 = vadd.f32 %v10934_v27, %v10912_v26 }
 0x835   : > { %v9610_v5 = vadd.f32 %v9605_v19, %v9269_v41 }
 0x837   : > { %9611 = vst [vmem:[#allocation14] sm:$0x3] %v9610_v5 }
 0x838   : > { %12986 = shalt.err (!%p12983_p6)
}
 0x839   : > { %s14813_s18 = sld [smem:[#allocation28_spill]] }
 0x83f   : > { %s12987_s27 = scalar_lea.hbm %s14813_s18, 32 }
 0x840   : > { %p12988_p8 = scmp.ne.s32.totalorder %s14813_s18, %s12987_s27  ;;  %p12993_p5 = scmp.lt.u32.totalorder %s12987_s27, %s14813_s18 }
 0x842   : > { %p12989_p1 = pnand %p12988_p8, %p11120_p9 }
 0x844   : > { %p12990_p4 = pneg %p12989_p1 }
 0x846   : > { %p12995_p12 = pnand %p12993_p5, %p12990_p4 }
 0x848   : > { %12998 = shalt.err (!%p12995_p12)
}
 0x849   : > { %11085 = dma.vmem_to_hbm [thread:$0]  (%p11120_p9), %s9622_s23, 32, %s14813_s18, [#allocation5]  }
 0x84a   : > { %13040 = dma.done.wait (%p11120_p9), [#allocation5], 32  }
 0x84b   : > { %13042 = vsyncadd (%p11120_p9), [#allocation5], 4294967264 }
 0x84c PF: > { %s14814_s14 = sld [smem:[#allocation22_spill]]  ;;  %s14815_s16 = sld [smem:[#allocation20_spill]] }
 0x84d   : > { %s14816_s26 = sld [smem:[#allocation25_spill]]  ;;  %s14817_s7 = sld [smem:[#allocation24_spill]] }
 0x84e   : > { %s14818_s24 = smov %s13049_s25  ;;  %s14820_s27 = smov %s13061_s28 }
 0x852   : > { %s21_s29 = sadd.s32 1, %s14814_s14   ;;  %s14819_s25 = smov %s14815_s16 }
 0x853   : > { %p18_p2 = scmp.ge.s32.totalorder %s21_s29, 6   ;;  %s14821_s28 = smov %s14817_s7 }
 0x855   :  { %20 = sbr.rel (!%p18_p2) target bundleno = 10 (0xa), region = 127 }
 0x85c   :  { %9634 = vsyncpa [#allocation4], 1 }
 0x85d   :  { %9636 = vsyncpa [#allocation4 + $0x1], 1 }
 0x85e   :  { %9637 = vsyncpa [#allocation7], 1 }
 0x85f   :  { %9638 = vsyncpa [#allocation10], 1 }
 0x860   :  { %9639 = vsyncpa [#allocation5], 1 }
 0x861   :  { %9641 = vsyncpa [#allocation5 + $0x1], 1 }

</bundles_post_ra>
